<compile_context>
chip_gen: v6e
topology: v6e:2x2x1
jax: 0.10.0
libtpu: 0.0.40
codegen_flags: <defaults>
</compile_context>

<pallas_src>
import jax
import jax.numpy as jnp
import numpy as np
from jax.experimental import pallas as pl
from jax.experimental.pallas import tpu as pltpu

# --- module hyper-parameters (ActorCritic(input_dim=8, output_dim=4, hidden_size=32)) ---
INPUT_DIM = 8          # state dimension
OUTPUT_DIM = 4         # number of discrete actions
HIDDEN_SIZE = 32       # hidden units per MLP (fused actor|critic width = 64)
HIDDEN_LAYERS = 2      # -> 4 Linear layers per MLP
L = 7                  # positional-mapping order
PI = 3.1415927410125732            # exact constant used in PositionalMapping
N_CHUNKS = 2 * L + 1               # 15 chunks: [x, sin, cos, sin, cos, ...]
MAP_DIM = INPUT_DIM * N_CHUNKS     # 120

LANES = 128            # lane width / padded feature width
ROWS = 128             # batch rows per grid step (raise to 256 on v6e/v7x for large B)
FUSED_HIDDEN = 2 * HIDDEN_SIZE
ONES_LANE = LANES - 1  # constant-1 feature lane -> every bias becomes a weight row
W_ROWS = 4 * LANES     # 4 fused (128, 128) layers stacked on rows

assert MAP_DIM <= ONES_LANE
assert FUSED_HIDDEN <= ONES_LANE
assert OUTPUT_DIM + 1 <= ONES_LANE

# f32 aux slab row layout (16 x 128 = 8 KiB, independent of ROWS)
_TILE_ROW = 0          # rows 0..7 : freq-folded lane-tiling matrix
_PHASE_ROW = 8         # +pi/2 on cos-chunk lanes and on padding/ones lanes
_PASS_ROW = 9          # 1.0 on chunk-0 (raw x) lanes
_LOGIT_ROW = 10        # 1.0 on actor-logit lanes 0..3
_VALUE_ROW = 11        # 1.0 on the critic-value lane 4
AUX_ROWS = 16


def actor_critic_kernel(x_ref, w_ref, aux_ref, out_ref):
    x = x_ref[...]                                          # (ROWS, 8) f32

    tile = aux_ref[pl.ds(_TILE_ROW, INPUT_DIM), :]          # (8, 128) f32
    phase = aux_ref[pl.ds(_PHASE_ROW, 1), :]                # (1, 128)
    keepx = aux_ref[pl.ds(_PASS_ROW, 1), :]                 # (1, 128)
    lmask = aux_ref[pl.ds(_LOGIT_ROW, 1), :]                # (1, 128)
    vmask = aux_ref[pl.ds(_VALUE_ROW, 1), :]                # (1, 128)

    # ---- fused positional mapping: ONE sin per vreg ------------------------
    # xs[:, 8c+d] = freq(chunk c) * x[:, d].  This tiny tiling dot stays
    # f32/HIGHEST so the sin arguments (up to 2^6*pi*x) are not rounded to bf16.
    xs = jnp.dot(x, tile, preferred_element_type=jnp.float32,
                 precision=jax.lax.Precision.HIGHEST)       # (ROWS, 128)
    mapped = keepx * xs + (1.0 - keepx) * jnp.sin(xs + phase)
    # cos-chunk lanes: sin(x + pi/2) == cos(x).
    # lane 127: xs == 0, phase == pi/2 -> sin == 1.0, the constant-one feature
    # that turns every layer bias into row 127 of that layer's weight block.

    # ---- fused actor|critic MLP (block-diagonal bf16 weights, f32 accum) ----
    def fused_layer(h, idx, activate):
        w = w_ref[pl.ds(idx * LANES, LANES), :]             # (128, 128) bf16
        y = jnp.dot(h.astype(jnp.bfloat16), w,
                    preferred_element_type=jnp.float32)     # bias folded into w
        return jnp.maximum(y, 0.2 * y) if activate else y   # LeakyReLU(0.2)

    h = fused_layer(mapped, 0, True)
    h = fused_layer(h, 1, True)
    h = fused_layer(h, 2, True)
    row = fused_layer(h, 3, False)    # lanes 0..3 actor logits, lane 4 critic value

    # ---- EXACT softmax over the 4 actor lanes (module uses nn.Softmax) ------
    masked = row * lmask - (1.0 - lmask) * 1e30
    m = jnp.max(masked, axis=-1, keepdims=True)
    e = jnp.exp(masked - m) * lmask          # non-logit lanes contribute exactly 0
    s = jnp.sum(e, axis=-1, keepdims=True)
    probs = e * (1.0 / s)                    # exact f32 divide (no approx recip)
    out_ref[...] = probs + vmask * row       # lanes 0..3 probs, lane 4 value, rest 0


@jax.jit
def actor_critic_forward(x, w_slab, aux):
    """x: (B, INPUT_DIM) f32 -> (probs (B, OUTPUT_DIM), value (B, 1)).

    The PyTorch module forces B == 1 (x.view([1, -1])); larger B just stacks
    independent states row-wise (identical per-row math)."""
    B = x.shape[0]
    b_pad = ((B + ROWS - 1) // ROWS) * ROWS
    x_pad = jnp.zeros((b_pad, INPUT_DIM), jnp.float32).at[:B, :].set(
        x.astype(jnp.float32))

    out = pl.pallas_call(
        actor_critic_kernel,
        out_shape=jax.ShapeDtypeStruct((b_pad, LANES), jnp.float32),
        grid=(b_pad // ROWS,),
        in_specs=[
            pl.BlockSpec((ROWS, INPUT_DIM), lambda i: (i, 0)),   # states
            # grid-invariant slabs (index (0,0) every step); default buffering
            # costs < 150 KiB VMEM, left as-is.
            pl.BlockSpec((W_ROWS, LANES), lambda i: (0, 0)),     # bf16 fused weights
            pl.BlockSpec((AUX_ROWS, LANES), lambda i: (0, 0)),   # f32 tile/phase/masks
        ],
        out_specs=pl.BlockSpec((ROWS, LANES), lambda i: (i, 0)),
        compiler_params=pltpu.CompilerParams(
            dimension_semantics=("parallel",)),
    )(x_pad, w_slab, aux)

    return out[:B, :OUTPUT_DIM], out[:B, OUTPUT_DIM:OUTPUT_DIM + 1]


# ---------------- deterministic parameter construction (plain JAX glue) -----
def init_mlp_params(key, output_dim):
    """[(W, b)] per Linear; W stored pre-transposed as (in_features, out_features)."""
    dims = [MAP_DIM] + [HIDDEN_SIZE] * (HIDDEN_LAYERS + 1) + [output_dim]
    params = []
    for i in range(len(dims) - 1):
        key, kw, kb = jax.random.split(key, 3)
        bound = 1.0 / float(np.sqrt(dims[i]))
        W = jax.random.uniform(kw, (dims[i], dims[i + 1]), jnp.float32, -bound, bound)
        b = jax.random.uniform(kb, (dims[i + 1],), jnp.float32, -bound, bound)
        params.append((W, b))
    return params


def pack_params(actor_params, critic_params):
    """Pack both MLPs (weights AND biases) into one bf16 slab + one f32 aux slab."""
    H = HIDDEN_SIZE

    # ---- bf16 weight slab, biases on the constant-1 lane (row ONES_LANE) ----
    w = np.zeros((W_ROWS, LANES), np.float32)

    # layer 1: mapped features -> [actor hidden | critic hidden]
    aW1 = np.asarray(actor_params[0][0]); cW1 = np.asarray(critic_params[0][0])
    for c in range(N_CHUNKS):
        dst = slice(8 * c, 8 * c + INPUT_DIM)                # mapped lane layout
        src = slice(c * INPUT_DIM, (c + 1) * INPUT_DIM)      # torch.cat layout
        w[dst, 0:H] = aW1[src, :]
        w[dst, H:2 * H] = cW1[src, :]
    w[ONES_LANE, 0:H] = np.asarray(actor_params[0][1])
    w[ONES_LANE, H:2 * H] = np.asarray(critic_params[0][1])
    w[ONES_LANE, ONES_LANE] = 1.0                            # propagate ones lane

    # layers 2..3: block-diagonal hidden -> hidden
    for li in (1, 2):
        base = li * LANES
        w[base:base + H, 0:H] = np.asarray(actor_params[li][0])
        w[base + H:base + 2 * H, H:2 * H] = np.asarray(critic_params[li][0])
        w[base + ONES_LANE, 0:H] = np.asarray(actor_params[li][1])
        w[base + ONES_LANE, H:2 * H] = np.asarray(critic_params[li][1])
        w[base + ONES_LANE, ONES_LANE] = 1.0

    # layer 4: actor -> lanes 0..3, critic -> lane 4
    base = 3 * LANES
    w[base:base + H, 0:OUTPUT_DIM] = np.asarray(actor_params[3][0])
    w[base + H:base + 2 * H, OUTPUT_DIM:OUTPUT_DIM + 1] = np.asarray(critic_params[3][0])
    w[base + ONES_LANE, 0:OUTPUT_DIM] = np.asarray(actor_params[3][1])
    w[base + ONES_LANE, OUTPUT_DIM] = float(np.asarray(critic_params[3][1])[0])
    w_slab = jnp.asarray(w, jnp.bfloat16)

    # ---- f32 aux slab: freq-tiling matrix, phase row, 0/1 mask rows ---------
    aux = np.zeros((AUX_ROWS, LANES), np.float32)
    freqs = [np.float32(1.0)]
    for i in range(L):
        f = np.float32(2.0 ** i) * np.float32(PI)
        freqs += [f, f]                                      # sin chunk, cos chunk
    for c in range(N_CHUNKS):
        for d in range(INPUT_DIM):
            aux[_TILE_ROW + d, 8 * c + d] = freqs[c]

    half_pi = np.float32(np.pi / 2.0)
    for c in range(2, N_CHUNKS, 2):                          # cos chunks 2,4,...,14
        aux[_PHASE_ROW, 8 * c:8 * c + INPUT_DIM] = half_pi
    aux[_PHASE_ROW, MAP_DIM:LANES] = half_pi                 # padding + ones lane -> sin == 1
    aux[_PASS_ROW, 0:INPUT_DIM] = 1.0                        # chunk-0 passthrough
    aux[_LOGIT_ROW, 0:OUTPUT_DIM] = 1.0                      # actor logit lanes
    aux[_VALUE_ROW, OUTPUT_DIM] = 1.0                        # critic value lane

    return w_slab, jnp.asarray(aux)


# ---------------- pure-JAX reference (sanity check) --------------------------
def _reference_forward(x, actor_params, critic_params):
    """Module math (pos-map -> 4 Linear, LeakyReLU(0.2), exact softmax / value)
    with the kernel's bf16-weight / f32-accumulate numerics."""
    pi32 = np.float32(PI)

    def pos_map(v):
        h = [v]
        for i in range(L):
            arg = (np.float32(2.0 ** i) * pi32) * v
            h.append(jnp.sin(arg))
            h.append(jnp.cos(arg))
        return jnp.concatenate(h, axis=-1)

    def mlp(params):
        h = pos_map(x.astype(jnp.float32))
        for k, (W, b) in enumerate(params):
            h = jnp.dot(h.astype(jnp.bfloat16), W.astype(jnp.bfloat16),
                        preferred_element_type=jnp.float32)
            h = h + b.astype(jnp.bfloat16).astype(jnp.float32)
            if k < len(params) - 1:
                h = jnp.where(h >= 0, h, 0.2 * h)
        return h

    logits = mlp(actor_params)
    probs = jax.nn.softmax(logits, axis=-1)
    value = mlp(critic_params)
    return probs, value


if __name__ == "__main__":
    key = jax.random.PRNGKey(0)
    k_state, k_actor, k_critic, k_batch = jax.random.split(key, 4)

    actor_params = init_mlp_params(k_actor, OUTPUT_DIM)
    critic_params = init_mlp_params(k_critic, 1)
    w_slab, aux = pack_params(actor_params, critic_params)

    # (a) module-faithful call: a single state, x.view([1, -1]) -> batch 1
    state = jax.random.uniform(k_state, (INPUT_DIM,), jnp.float32, -1.0, 1.0)
    x1 = state.reshape(1, -1)
    probs1, value1 = actor_critic_forward(x1, w_slab, aux)

    # (b) a batched stack of rollout states (2 grid steps at ROWS=128)
    xb = jax.random.uniform(k_batch, (160, INPUT_DIM), jnp.float32, -1.0, 1.0)
    probsb, valueb = actor_critic_forward(xb, w_slab, aux)
    jax.block_until_ready((probs1, value1, probsb, valueb))

    assert probs1.shape == (1, OUTPUT_DIM) and probs1.dtype == jnp.float32
    assert value1.shape == (1, 1) and value1.dtype == jnp.float32
    assert probsb.shape == (160, OUTPUT_DIM) and valueb.shape == (160, 1)

    # exact softmax -> every row sums to 1 up to f32 rounding
    assert float(jnp.max(jnp.abs(jnp.sum(probs1, axis=-1) - 1.0))) < 1e-4
    assert float(jnp.max(jnp.abs(jnp.sum(probsb, axis=-1) - 1.0))) < 1e-4

    rp1, rv1 = _reference_forward(x1, actor_params, critic_params)
    rpb, rvb = _reference_forward(xb, actor_params, critic_params)
    assert jnp.allclose(probs1, rp1, atol=5e-3, rtol=5e-3)
    assert jnp.allclose(value1, rv1, atol=5e-3, rtol=5e-3)
    assert jnp.allclose(probsb, rpb, atol=5e-3, rtol=5e-3)
    assert jnp.allclose(valueb, rvb, atol=5e-3, rtol=5e-3)

    print("KERNEL_OK")
</pallas_src>

<mosaic_0001>
module attributes {stable_mosaic.version = 11 : i64} {
  func.func @actor_critic_kernel(%arg0: i32, %arg1: memref<128x8xf32, #tpu.memory_space<vmem>>, %arg2: memref<512x128xbf16, #tpu.memory_space<vmem>>, %arg3: memref<16x128xf32, #tpu.memory_space<vmem>>, %arg4: memref<128x128xf32, #tpu.memory_space<vmem>>) attributes {dimension_semantics = [#tpu.dimension_semantics<parallel>], iteration_bounds = array<i64: 1>, scalar_prefetch = 0 : i64, scratch_operands = 0 : i64, tpu.core_type = #tpu.core_type<tc>, window_params = [{transform_indices = @transform_0, window_bounds = array<i64: 128, 8>}, {pipeline_mode = #tpu.pipeline_mode<synchronous>, transform_indices = @transform_1, window_bounds = array<i64: 512, 128>}, {pipeline_mode = #tpu.pipeline_mode<synchronous>, transform_indices = @transform_2, window_bounds = array<i64: 16, 128>}, {transform_indices = @transform_3, window_bounds = array<i64: 128, 128>}]} {
    %c0 = arith.constant 0 : index
    %c0_0 = arith.constant 0 : index
    %0 = vector.load %arg1[%c0, %c0_0] : memref<128x8xf32, #tpu.memory_space<vmem>>, vector<128x8xf32>
    %c0_1 = arith.constant 0 : index
    %c0_2 = arith.constant 0 : index
    %1 = vector.load %arg3[%c0_1, %c0_2] : memref<16x128xf32, #tpu.memory_space<vmem>>, vector<8x128xf32>
    %c8 = arith.constant 8 : index
    %c0_3 = arith.constant 0 : index
    %2 = vector.load %arg3[%c8, %c0_3] : memref<16x128xf32, #tpu.memory_space<vmem>>, vector<1x128xf32>
    %c9 = arith.constant 9 : index
    %c0_4 = arith.constant 0 : index
    %3 = vector.load %arg3[%c9, %c0_4] : memref<16x128xf32, #tpu.memory_space<vmem>>, vector<1x128xf32>
    %c10 = arith.constant 10 : index
    %c0_5 = arith.constant 0 : index
    %4 = vector.load %arg3[%c10, %c0_5] : memref<16x128xf32, #tpu.memory_space<vmem>>, vector<1x128xf32>
    %c11 = arith.constant 11 : index
    %c0_6 = arith.constant 0 : index
    %5 = vector.load %arg3[%c11, %c0_6] : memref<16x128xf32, #tpu.memory_space<vmem>>, vector<1x128xf32>
    %cst = arith.constant dense<0.000000e+00> : vector<128x128xf32>
    %6 = tpu.matmul %0, %1, %cst {dimension_numbers = #tpu.dot_dimension_numbers<[1], [0], [0], [1], [0, 0, 1, 1], [], []>, precision = #tpu.contract_precision<fp32>} : vector<128x8xf32>, vector<8x128xf32>, vector<128x128xf32> -> vector<128x128xf32>
    %7 = vector.broadcast %3 : vector<1x128xf32> to vector<128x128xf32>
    %8 = arith.mulf %7, %6 : vector<128x128xf32>
    %cst_7 = arith.constant 1.000000e+00 : f32
    %9 = vector.broadcast %cst_7 : f32 to vector<1x128xf32>
    %10 = arith.subf %9, %3 : vector<1x128xf32>
    %11 = vector.broadcast %2 : vector<1x128xf32> to vector<128x128xf32>
    %12 = arith.addf %6, %11 : vector<128x128xf32>
    %13 = math.sin %12 : vector<128x128xf32>
    %14 = vector.broadcast %10 : vector<1x128xf32> to vector<128x128xf32>
    %15 = arith.mulf %14, %13 : vector<128x128xf32>
    %16 = arith.addf %8, %15 : vector<128x128xf32>
    %c0_8 = arith.constant 0 : index
    %c0_9 = arith.constant 0 : index
    %17 = vector.load %arg2[%c0_8, %c0_9] : memref<512x128xbf16, #tpu.memory_space<vmem>>, vector<128x128xbf16>
    %18 = arith.truncf %16 : vector<128x128xf32> to vector<128x128xbf16>
    %cst_10 = arith.constant dense<0.000000e+00> : vector<128x128xf32>
    %19 = tpu.matmul %18, %17, %cst_10 {dimension_numbers = #tpu.dot_dimension_numbers<[1], [0], [0], [1], [0, 0, 1, 1], [], []>} : vector<128x128xbf16>, vector<128x128xbf16>, vector<128x128xf32> -> vector<128x128xf32>
    %cst_11 = arith.constant 2.000000e-01 : f32
    %20 = vector.broadcast %cst_11 : f32 to vector<128x128xf32>
    %21 = arith.mulf %20, %19 : vector<128x128xf32>
    %22 = arith.maximumf %19, %21 : vector<128x128xf32>
    %c128 = arith.constant 128 : index
    %c0_12 = arith.constant 0 : index
    %23 = vector.load %arg2[%c128, %c0_12] : memref<512x128xbf16, #tpu.memory_space<vmem>>, vector<128x128xbf16>
    %24 = arith.truncf %22 : vector<128x128xf32> to vector<128x128xbf16>
    %cst_13 = arith.constant dense<0.000000e+00> : vector<128x128xf32>
    %25 = tpu.matmul %24, %23, %cst_13 {dimension_numbers = #tpu.dot_dimension_numbers<[1], [0], [0], [1], [0, 0, 1, 1], [], []>} : vector<128x128xbf16>, vector<128x128xbf16>, vector<128x128xf32> -> vector<128x128xf32>
    %cst_14 = arith.constant 2.000000e-01 : f32
    %26 = vector.broadcast %cst_14 : f32 to vector<128x128xf32>
    %27 = arith.mulf %26, %25 : vector<128x128xf32>
    %28 = arith.maximumf %25, %27 : vector<128x128xf32>
    %c256 = arith.constant 256 : index
    %c0_15 = arith.constant 0 : index
    %29 = vector.load %arg2[%c256, %c0_15] : memref<512x128xbf16, #tpu.memory_space<vmem>>, vector<128x128xbf16>
    %30 = arith.truncf %28 : vector<128x128xf32> to vector<128x128xbf16>
    %cst_16 = arith.constant dense<0.000000e+00> : vector<128x128xf32>
    %31 = tpu.matmul %30, %29, %cst_16 {dimension_numbers = #tpu.dot_dimension_numbers<[1], [0], [0], [1], [0, 0, 1, 1], [], []>} : vector<128x128xbf16>, vector<128x128xbf16>, vector<128x128xf32> -> vector<128x128xf32>
    %cst_17 = arith.constant 2.000000e-01 : f32
    %32 = vector.broadcast %cst_17 : f32 to vector<128x128xf32>
    %33 = arith.mulf %32, %31 : vector<128x128xf32>
    %34 = arith.maximumf %31, %33 : vector<128x128xf32>
    %c384 = arith.constant 384 : index
    %c0_18 = arith.constant 0 : index
    %35 = vector.load %arg2[%c384, %c0_18] : memref<512x128xbf16, #tpu.memory_space<vmem>>, vector<128x128xbf16>
    %36 = arith.truncf %34 : vector<128x128xf32> to vector<128x128xbf16>
    %cst_19 = arith.constant dense<0.000000e+00> : vector<128x128xf32>
    %37 = tpu.matmul %36, %35, %cst_19 {dimension_numbers = #tpu.dot_dimension_numbers<[1], [0], [0], [1], [0, 0, 1, 1], [], []>} : vector<128x128xbf16>, vector<128x128xbf16>, vector<128x128xf32> -> vector<128x128xf32>
    %38 = vector.broadcast %4 : vector<1x128xf32> to vector<128x128xf32>
    %39 = arith.mulf %37, %38 : vector<128x128xf32>
    %cst_20 = arith.constant 1.000000e+00 : f32
    %40 = vector.broadcast %cst_20 : f32 to vector<1x128xf32>
    %41 = arith.subf %40, %4 : vector<1x128xf32>
    %cst_21 = arith.constant 1.000000e+30 : f32
    %42 = vector.broadcast %cst_21 : f32 to vector<1x128xf32>
    %43 = arith.mulf %41, %42 : vector<1x128xf32>
    %44 = vector.broadcast %43 : vector<1x128xf32> to vector<128x128xf32>
    %45 = arith.subf %39, %44 : vector<128x128xf32>
    %cst_22 = arith.constant dense<0xFF800000> : vector<128xf32>
    %46 = vector.multi_reduction <maximumf>, %45, %cst_22 [1] : vector<128x128xf32> to vector<128xf32>
    %47 = vector.shape_cast %46 : vector<128xf32> to vector<128x1xf32>
    %48 = vector.broadcast %47 : vector<128x1xf32> to vector<128x128xf32>
    %49 = arith.subf %45, %48 : vector<128x128xf32>
    %50 = math.exp %49 : vector<128x128xf32>
    %51 = vector.broadcast %4 : vector<1x128xf32> to vector<128x128xf32>
    %52 = arith.mulf %50, %51 : vector<128x128xf32>
    %cst_23 = arith.constant dense<0.000000e+00> : vector<128xf32>
    %53 = vector.multi_reduction <add>, %52, %cst_23 [1] : vector<128x128xf32> to vector<128xf32>
    %54 = vector.shape_cast %53 : vector<128xf32> to vector<128x1xf32>
    %cst_24 = arith.constant 1.000000e+00 : f32
    %55 = vector.broadcast %cst_24 : f32 to vector<128x1xf32>
    %56 = arith.divf %55, %54 : vector<128x1xf32>
    %57 = vector.broadcast %56 : vector<128x1xf32> to vector<128x128xf32>
    %58 = arith.mulf %52, %57 : vector<128x128xf32>
    %59 = vector.broadcast %5 : vector<1x128xf32> to vector<128x128xf32>
    %60 = arith.mulf %59, %37 : vector<128x128xf32>
    %61 = arith.addf %58, %60 : vector<128x128xf32>
    %c0_25 = arith.constant 0 : index
    %c0_26 = arith.constant 0 : index
    %62 = vector.load %arg4[%c0_25, %c0_26] : memref<128x128xf32, #tpu.memory_space<vmem>>, vector<128x128xf32>
    tpu.vector_store %arg4[%c0_25, %c0_26], %61 {strides = array<i32>} : memref<128x128xf32, #tpu.memory_space<vmem>>, vector<128x128xf32>,
    return
  }
  func.func @transform_0(%arg0: i32) -> (i32, i32) {
    %c0_i32 = arith.constant 0 : i32
    %c0_i32_0 = arith.constant 0 : i32
    return %arg0, %c0_i32 : i32, i32
  }
  func.func @transform_1(%arg0: i32) -> (i32, i32) {
    %c0_i32 = arith.constant 0 : i32
    %c0_i32_0 = arith.constant 0 : i32
    %c0_i32_1 = arith.constant 0 : i32
    return %c0_i32, %c0_i32_0 : i32, i32
  }
  func.func @transform_2(%arg0: i32) -> (i32, i32) {
    %c0_i32 = arith.constant 0 : i32
    %c0_i32_0 = arith.constant 0 : i32
    %c0_i32_1 = arith.constant 0 : i32
    return %c0_i32, %c0_i32_0 : i32, i32
  }
  func.func @transform_3(%arg0: i32) -> (i32, i32) {
    %c0_i32 = arith.constant 0 : i32
    %c0_i32_0 = arith.constant 0 : i32
    return %arg0, %c0_i32 : i32, i32
  }
}

</mosaic_0001>

<bundles_post_ra>
// kernel: actor_critic_forward.1
= control target key start
LH: loop header
LB: loop body
LE: loop exit
PB: predicated region body
PF: predicated region fallthrough
CT: control target
= control target key end

     0   :  { %8 = vsyncpa [#allocation3], 0  ;;  %s4783_s12 = smov [#allocation2]   ;;  %s7215_s0 = inlined_call_operand.vmem [shape: f32[128,8], index: 0, kind: input, shape index: {}]   ;;  %s7216_s1 = inlined_call_operand.hbm [shape: bf16[512,128], index: 1, kind: input, shape index: {}]   ;;  %s7217_s2 = inlined_call_operand.vmem [shape: f32[16,128], index: 2, kind: input, shape index: {}]   ;;  %s7218_s3 = inlined_call_operand.vmem [shape: f32[128,128], index: 3, kind: output, shape index: {}]  }
   0x1   :  { %s16_s13 = sshll.u32 %s4783_s12, 4  ;;  %s17_s13 = int_to_ptr.vmem [resolvable:$true] %s16_s13 }
   0x2   :  { %s4769_s14 = scalar_lea.vmem %s17_s13, 4096  ;;  %p4774_p1 = scmp.lt.s32.totalorder %s17_s13, %s17_s13 }
   0x3   :  { %p4770_p0 = scmp.ne.s32.totalorder %s17_s13, %s4769_s14  ;;  %p4775_p2 = scmp.lt.s32.totalorder %s4769_s14, %s4769_s14 }
   0x5   :  { %p4776_p3 = por %p4775_p2, %p4774_p1 }
   0x7   :  { %p4777_p4 = pnand %p4776_p3, %p4770_p0 }
   0x9   :  { %4780 = shalt.err (!%p4777_p4)
}
   0xa   :  { %s4784_s15 = smov 64   ;;  %s4785_s16 = smov 4  }
   0xb   :  { %22 = dma.hbm_to_vmem [thread:$0]  %s7216_s1, 4096, %s17_s13, [#allocation3], %s4784_s15, %s4784_s15, %s4785_s16  }
   0xc   :  { %4781 = dma.done.wait [#allocation3], 4096  }
   0xd   :  { %4782 = vsyncadd [#allocation3], 4294963200  ;;  %vm50_vm0 = vcmask 64512   ;;  %v45_v0 = vld [vmem:[%s7217_s2] sm:$0xff]  ;;  %v30_v2 = vld [vmem:[%s7215_s0 + $0x8] sm:$0xff] }
   0xe   :  { %v29_v1 = vld [vmem:[%s7215_s0] sm:$0xff]  ;;  %v4824_v3 = vand.u32 4294901760, %v45_v0  ;;  %v55_v5 = vsel %vm50_vm0, %v30_v2, 0  ;;  %v31_v6 = vld [vmem:[%s7215_s0 + $0x10] sm:$0xff]  ;;  %v32_v7 = vld [vmem:[%s7215_s0 + $0x18] sm:$0xff] }
   0xf   :  { %v52_v4 = vsel %vm50_vm0, %v29_v1, 0  ;;  %v33_v8 = vld [vmem:[%s7215_s0 + $0x20] sm:$0xff]  ;;  %v4839_v10 = vand.u32 4294901760, %v55_v5  ;;  %v58_v11 = vsel %vm50_vm0, %v31_v6, 0  ;;  %v61_v12 = vsel %vm50_vm0, %v32_v7, 0  ;;  %v34_v13 = vld [vmem:[%s7215_s0 + $0x28] sm:$0xff] }
  0x10   :  { %v4837_v9 = vand.u32 4294901760, %v52_v4  ;;  %4242 = vmatprep.subr.mxu0 %v4824_v3  ;;  %v357_v14 = vsub.f32 %v45_v0, %v4824_v3  ;;  %v4848_v15 = vand.u32 4294901760, %v58_v11  ;;  %v4850_v16 = vand.u32 4294901760, %v61_v12  ;;  %v35_v18 = vld [vmem:[%s7215_s0 + $0x30] sm:$0xff]  ;;  %v36_v31 = vld [vmem:[%s7215_s0 + $0x38] sm:$0xff]  ;;  %v37_v36 = vld [vmem:[%s7215_s0 + $0x40] sm:$0xff] }
  0x11   :  { %v64_v17 = vsel %vm50_vm0, %v33_v8, 0  ;;  %4243 = vmatpush3.msra.mxu0 %v4824_v3  ;;  %v4862_v20 = vsub.f32 %v55_v5, %v4839_v10  ;;  %v67_v22 = vsel %vm50_vm0, %v34_v13, 0  ;;  %v70_v30 = vsel %vm50_vm0, %v35_v18, 0  ;;  %v38_v41 = vld [vmem:[%s7215_s0 + $0x48] sm:$0xff]  ;;  %v39_v42 = vld [vmem:[%s7215_s0 + $0x50] sm:$0xff]  ;;  %v40_v51 = vld [vmem:[%s7215_s0 + $0x58] sm:$0xff] }
  0x12   :  { %v4858_v19 = vsub.f32 %v52_v4, %v4837_v9  ;;  %4270 = vmatprep.mubr.f32.mxu1 %v4837_v9  ;;  %v4864_v21 = vand.u32 4294901760, %v64_v17  ;;  %v4867_v23 = vand.u32 4294901760, %v357_v14  ;;  %4294 = vmatprep.subr.mxu0 %v357_v14  ;;  %v4870_v24 = vsub.f32 %v58_v11, %v4848_v15  ;;  %v41_v52 = vld [vmem:[%s7215_s0 + $0x60] sm:$0xff]  ;;  %v42_v57 = vld [vmem:[%s7215_s0 + $0x68] sm:$0xff]  ;;  %v43_v13 = vld [vmem:[%s7215_s0 + $0x70] sm:$0xff] }
  0x13   :  { %v4873_v25 = vsub.f32 %v61_v12, %v4850_v16  ;;  %v4875_v26 = vand.u32 4294901760, %v67_v22  ;;  %v177_v28 = vand.u32 4294901760, %v4862_v20  ;;  %v4902_v40 = vand.u32 4294901760, %v70_v30 }
  0x14   :  { %v167_v27 = vand.u32 4294901760, %v4858_v19  ;;  %v4880_v29 = vsub.f32 %v64_v17, %v4864_v21  ;;  %v359_v32 = vsub.f32 %v357_v14, %v4867_v23  ;;  %v187_v33 = vand.u32 4294901760, %v4870_v24 }
  0x15   :  { %v197_v34 = vand.u32 4294901760, %v4873_v25  ;;  %v4890_v35 = vsub.f32 %v67_v22, %v4875_v26  ;;  %v178_v38 = vsub.f32 %v4862_v20, %v177_v28  ;;  %v4921_v50 = vsub.f32 %v70_v30, %v4902_v40 }
  0x16   :  { %v168_v37 = vsub.f32 %v4858_v19, %v167_v27  ;;  %v207_v39 = vand.u32 4294901760, %v4880_v29  ;;  %v360_v43 = vand.u32 4294901760, %v359_v32  ;;  %v188_v44 = vsub.f32 %v4870_v24, %v187_v33 }
  0x17   :  { %v198_v45 = vsub.f32 %v4873_v25, %v197_v34  ;;  %v217_v46 = vand.u32 4294901760, %v4890_v35  ;;  %v179_v48 = vand.u32 4294901760, %v178_v38  ;;  %v73_v56 = vsel %vm50_vm0, %v36_v31, 0 }
  0x18   :  { %v169_v47 = vand.u32 4294901760, %v168_v37  ;;  %v208_v49 = vsub.f32 %v4880_v29, %v207_v39  ;;  %4268 = vmatprep.subr.mxu1 %v360_v43  ;;  %v189_v53 = vand.u32 4294901760, %v188_v44  ;;  %v227_v59 = vand.u32 4294901760, %v4921_v50 }
  0x19   :  { %v199_v54 = vand.u32 4294901760, %v198_v45  ;;  %v218_v55 = vsub.f32 %v4890_v35, %v217_v46  ;;  %4269 = vmatpush3.msra.mxu1 %v360_v43  ;;  %v4937_v60 = vand.u32 4294901760, %v73_v56  ;;  %v76_v61 = vsel %vm50_vm0, %v37_v36, 0  ;;  %v44_v43 = vld [vmem:[%s7215_s0 + $0x78] sm:$0xff] }
  0x1a   :  { %4244 = vmatprep.mubr.f32.mxu0 %v169_v47  ;;  %v209_v58 = vand.u32 4294901760, %v208_v49  ;;  %4271 = vmatmul.mubr.f32.vlgmr.msra.gmra.mxu1 %v4839_v10  ;;  %v4941_v63 = vand.u32 4294901760, %v76_v61  ;;  %v79_v0 = vsel %vm50_vm0, %v38_v41, 0  ;;  %v82_v1 = vsel %vm50_vm0, %v39_v42, 0 }
  0x1b   :  { %4245 = vmatmul.mubr.f32.vlgmr.msra.gmra.mxu0 %v179_v48  ;;  %v219_v62 = vand.u32 4294901760, %v218_v55  ;;  %4320 = vmatprep.subr.mxu1 %v4824_v3  ;;  %v228_v2 = vsub.f32 %v4921_v50, %v227_v59  ;;  %v4950_v4 = vsub.f32 %v73_v56, %v4937_v60  ;;  %v4952_v5 = vand.u32 4294901760, %v79_v0 }
  0x1c   :  { %4295 = vmatpush3.msra.mxu0 %v357_v14  ;;  %v4954_v6 = vand.u32 4294901760, %v82_v1  ;;  %4321 = vmatpush3.msra.mxu1 %v4824_v3  ;;  %v4958_v7 = vsub.f32 %v76_v61, %v4941_v63  ;;  %v85_v8 = vsel %vm50_vm0, %v40_v51, 0  ;;  %v88_v11 = vsel %vm50_vm0, %v41_v52, 0 }
  0x1d   :  { %4247 = vmatprep.mubr.f32.mxu0 %v189_v53  ;;  %v91_v12 = vsel %vm50_vm0, %v42_v57, 0  ;;  %4273 = vmatprep.mubr.f32.mxu1 %v4848_v15  ;;  %v229_v14 = vand.u32 4294901760, %v228_v2  ;;  %v237_v17 = vand.u32 4294901760, %v4950_v4  ;;  %v4969_v18 = vsub.f32 %v79_v0, %v4952_v5 }
  0x1e   :  { %v4972_v22 = vsub.f32 %v82_v1, %v4954_v6  ;;  %4346 = vmatprep.subr.mxu0 %v4867_v23  ;;  %4274 = vmatmul.mubr.f32.gmra.mxu1 %v4850_v16  ;;  %v247_v30 = vand.u32 4294901760, %v4958_v7  ;;  %v4977_v31 = vand.u32 4294901760, %v85_v8  ;;  %v4979_v32 = vand.u32 4294901760, %v88_v11 }
  0x1f   :  { %4248 = vmatmul.mubr.f32.gmra.mxu0 %v199_v54  ;;  %v4981_v36 = vand.u32 4294901760, %v91_v12  ;;  %4276 = vmatprep.mubr.f32.mxu1 %v4864_v21  ;;  %v238_v37 = vsub.f32 %v4950_v4, %v237_v17  ;;  %v257_v38 = vand.u32 4294901760, %v4969_v18  ;;  %v94_v42 = vsel %vm50_vm0, %v43_v13, 0 }
  0x20   :  { %4250 = vmatprep.mubr.f32.mxu0 %v209_v58  ;;  %v267_v41 = vand.u32 4294901760, %v4972_v22  ;;  %v248_v44 = vsub.f32 %v4958_v7, %v247_v30  ;;  %v4997_v45 = vsub.f32 %v85_v8, %v4977_v31  ;;  %v5000_v47 = vsub.f32 %v88_v11, %v4979_v32  ;;  %4372 = vmatprep.subr.mxu1 %v4824_v3 }
  0x21   :  { %v5003_v48 = vsub.f32 %v91_v12, %v4981_v36  ;;  %v239_v49 = vand.u32 4294901760, %v238_v37  ;;  %v258_v51 = vsub.f32 %v4969_v18, %v257_v38  ;;  %v5009_v52 = vand.u32 4294901760, %v94_v42 }
  0x22   :  { %4277 = vmatmul.mubr.f32.gmra.mxu1 %v4875_v26  ;;  %v268_v53 = vsub.f32 %v4972_v22, %v267_v41  ;;  %v277_v54 = vand.u32 4294901760, %v4997_v45  ;;  %v287_v55 = vand.u32 4294901760, %v5000_v47  ;;  %v249_v57 = vand.u32 4294901760, %v248_v44 }
  0x23   :  { %4251 = vmatmul.mubr.f32.gmra.mxu0 %v219_v62  ;;  %v7219_v56 = vand.u32 4294901760, %v5003_v48  ;;  %4279 = vmatprep.mubr.f32.mxu1 %v4902_v40  ;;  %v5020_v58 = vsub.f32 %v94_v42, %v5009_v52  ;;  %v97_v61 = vsel %vm50_vm0, %v44_v43, 0  ;;  %v259_v11 = vand.u32 4294901760, %v258_v51 }
  0x24   :  { %4253 = vmatprep.mubr.f32.mxu0 %v229_v14  ;;  %v278_v62 = vsub.f32 %v4997_v45, %v277_v54  ;;  %v5026_v0 = vand.u32 4294901760, %v97_v61  ;;  %v288_v1 = vsub.f32 %v5000_v47, %v287_v55  ;;  %v269_v12 = vand.u32 4294901760, %v268_v53 }
  0x25   :  { %v298_v2 = vsub.f32 %v5003_v48, %v7219_v56  ;;  %v307_v8 = vand.u32 4294901760, %v5020_v58 }
  0x26   :  { %4280 = vmatmul.mubr.f32.gmra.mxu1 %v4937_v60  ;;  %v316_v13 = vsub.f32 %v97_v61, %v5026_v0  ;;  %v279_v14 = vand.u32 4294901760, %v278_v62  ;;  %v289_v43 = vand.u32 4294901760, %v288_v1 }
  0x27   :  { %4254 = vmatmul.mubr.f32.gmra.mxu0 %v239_v49  ;;  %4282 = vmatprep.mubr.f32.mxu1 %v4941_v63  ;;  %v308_v37 = vsub.f32 %v5020_v58, %v307_v8  ;;  %v299_v44 = vand.u32 4294901760, %v298_v2 }
  0x28   :  { %4256 = vmatprep.mubr.f32.mxu0 %v249_v57  ;;  %v317_v42 = vand.u32 4294901760, %v316_v13 }
  0x29   :  { %v309_v49 = vand.u32 4294901760, %v308_v37 }
  0x2a   :  { %4283 = vmatmul.mubr.f32.gmra.mxu1 %v4952_v5  ;;  %v318_v56 = vsub.f32 %v316_v13, %v317_v42 }
  0x2b   :  { %4257 = vmatmul.mubr.f32.gmra.mxu0 %v259_v11  ;;  %4285 = vmatprep.mubr.f32.mxu1 %v4954_v6 }
  0x2c   :  { %4259 = vmatprep.mubr.f32.mxu0 %v269_v12  ;;  %v319_v51 = vand.u32 4294901760, %v318_v56 }
  0x2e   :  { %4286 = vmatmul.mubr.f32.gmra.mxu1 %v4977_v31 }
  0x2f   :  { %4260 = vmatmul.mubr.f32.gmra.mxu0 %v279_v14  ;;  %4288 = vmatprep.mubr.f32.mxu1 %v4979_v32 }
  0x30   :  { %4262 = vmatprep.mubr.f32.mxu0 %v289_v43 }
  0x32   :  { %4289 = vmatmul.mubr.f32.gmra.mxu1 %v4981_v36 }
  0x33   :  { %4263 = vmatmul.mubr.f32.gmra.mxu0 %v299_v44  ;;  %4291 = vmatprep.mubr.f32.mxu1 %v5009_v52 }
  0x34   :  { %4265 = vmatprep.mubr.f32.mxu0 %v309_v49 }
  0x36   :  { %4292 = vmatmul.mubr.f32.gmra.mxu1 %v5026_v0 }
  0x37   :  { %4266 = vmatmul.mubr.f32.gmra.mxu0 %v319_v51  ;;  %4322 = vmatprep.mubr.f32.mxu1 %v167_v27 }
  0x38   :  { %4296 = vmatprep.mubr.f32.mxu0 %v4858_v19 }
  0x3a   :  { %4323 = vmatmul.mubr.f32.vlgmr.msra.gmra.mxu1 %v177_v28 }
  0x3b   :  { %4297 = vmatmul.mubr.f32.vlgmr.msra.gmra.mxu0 %v4862_v20  ;;  %4373 = vmatpush3.msra.mxu1 %v4824_v3  ;;  %v7254_v3 = vand.u32 4294901760, %v5003_v48 }
  0x3c   :  { %4347 = vmatpush3.msra.mxu0 %v4867_v23  ;;  %4299 = vmatprep.mubr.f32.mxu0 %v4870_v24 }
  0x3d   :  { %4325 = vmatprep.mubr.f32.mxu1 %v187_v33 }
  0x3e   :  { %4326 = vmatmul.mubr.f32.gmra.mxu1 %v197_v34 }
  0x3f   :  { %4300 = vmatmul.mubr.f32.gmra.mxu0 %v4873_v25  ;;  %4328 = vmatprep.mubr.f32.mxu1 %v207_v39 }
  0x40   :  { %4302 = vmatprep.mubr.f32.mxu0 %v4880_v29 }
  0x42   :  { %4329 = vmatmul.mubr.f32.gmra.mxu1 %v217_v46 }
  0x43   :  { %4303 = vmatmul.mubr.f32.gmra.mxu0 %v4890_v35  ;;  %4331 = vmatprep.mubr.f32.mxu1 %v227_v59 }
  0x44   :  { %4305 = vmatprep.mubr.f32.mxu0 %v4921_v50 }
  0x46   :  { %4332 = vmatmul.mubr.f32.gmra.mxu1 %v237_v17 }
  0x47   :  { %4306 = vmatmul.mubr.f32.gmra.mxu0 %v4950_v4  ;;  %4334 = vmatprep.mubr.f32.mxu1 %v247_v30 }
  0x48   :  { %4308 = vmatprep.mubr.f32.mxu0 %v4958_v7 }
  0x4a   :  { %4335 = vmatmul.mubr.f32.gmra.mxu1 %v257_v38 }
  0x4b   :  { %4309 = vmatmul.mubr.f32.gmra.mxu0 %v4969_v18  ;;  %4337 = vmatprep.mubr.f32.mxu1 %v267_v41 }
  0x4c   :  { %4311 = vmatprep.mubr.f32.mxu0 %v4972_v22 }
  0x4e   :  { %4338 = vmatmul.mubr.f32.gmra.mxu1 %v277_v54 }
  0x4f   :  { %4312 = vmatmul.mubr.f32.gmra.mxu0 %v4997_v45  ;;  %4340 = vmatprep.mubr.f32.mxu1 %v287_v55 }
  0x50   :  { %4314 = vmatprep.mubr.f32.mxu0 %v5000_v47 }
  0x52   :  { %4341 = vmatmul.mubr.f32.gmra.mxu1 %v7254_v3 }
  0x53   :  { %4315 = vmatmul.mubr.f32.gmra.mxu0 %v5003_v48  ;;  %4343 = vmatprep.mubr.f32.mxu1 %v307_v8 }
  0x54   :  { %4317 = vmatprep.mubr.f32.mxu0 %v5020_v58 }
  0x56   :  { %4344 = vmatmul.mubr.f32.gmra.mxu1 %v317_v42 }
  0x57   :  { %4318 = vmatmul.mubr.f32.gmra.mxu0 %v316_v13  ;;  %4374 = vmatprep.mubr.f32.mxu1 %v4837_v9 }
  0x58   :  { %4348 = vmatprep.mubr.f32.mxu0 %v4837_v9 }
  0x5a   :  { %4375 = vmatmul.mubr.f32.vlgmr.msra.gmra.mxu1 %v4839_v10 }
  0x5b   :  { %4349 = vmatmul.mubr.f32.vlgmr.msra.gmra.mxu0 %v4839_v10  ;;  %4377 = vmatprep.mubr.f32.mxu1 %v4848_v15 }
  0x5c   :  { %4351 = vmatprep.mubr.f32.mxu0 %v4848_v15 }
  0x5e   :  { %4378 = vmatmul.mubr.f32.gmra.mxu1 %v4850_v16 }
  0x5f   :  { %4352 = vmatmul.mubr.f32.gmra.mxu0 %v4850_v16  ;;  %4380 = vmatprep.mubr.f32.mxu1 %v4864_v21 }
  0x60   :  { %4354 = vmatprep.mubr.f32.mxu0 %v4864_v21 }
  0x62   :  { %4381 = vmatmul.mubr.f32.gmra.mxu1 %v4875_v26 }
  0x63   :  { %4355 = vmatmul.mubr.f32.gmra.mxu0 %v4875_v26  ;;  %4383 = vmatprep.mubr.f32.mxu1 %v4902_v40 }
  0x64   :  { %4357 = vmatprep.mubr.f32.mxu0 %v4902_v40 }
  0x66   :  { %4384 = vmatmul.mubr.f32.gmra.mxu1 %v4937_v60 }
  0x67   :  { %4358 = vmatmul.mubr.f32.gmra.mxu0 %v4937_v60  ;;  %4386 = vmatprep.mubr.f32.mxu1 %v4941_v63 }
  0x68   :  { %4360 = vmatprep.mubr.f32.mxu0 %v4941_v63 }
  0x6a   :  { %4387 = vmatmul.mubr.f32.gmra.mxu1 %v4952_v5 }
  0x6b   :  { %4361 = vmatmul.mubr.f32.gmra.mxu0 %v4952_v5  ;;  %4389 = vmatprep.mubr.f32.mxu1 %v4954_v6 }
  0x6c   :  { %4363 = vmatprep.mubr.f32.mxu0 %v4954_v6 }
  0x6e   :  { %4390 = vmatmul.mubr.f32.gmra.mxu1 %v4977_v31 }
  0x6f   :  { %4364 = vmatmul.mubr.f32.gmra.mxu0 %v4977_v31  ;;  %4392 = vmatprep.mubr.f32.mxu1 %v4979_v32 }
  0x70   :  { %4366 = vmatprep.mubr.f32.mxu0 %v4979_v32 }
  0x72   :  { %4393 = vmatmul.mubr.f32.gmra.mxu1 %v4981_v36 }
  0x73   :  { %4367 = vmatmul.mubr.f32.gmra.mxu0 %v4981_v36  ;;  %4395 = vmatprep.mubr.f32.mxu1 %v5009_v52 }
  0x74   :  { %4369 = vmatprep.mubr.f32.mxu0 %v5009_v52 }
  0x76   :  { %4396 = vmatmul.mubr.f32.gmra.mxu1 %v5026_v0 }
  0x77   :  { %4370 = vmatmul.mubr.f32.gmra.mxu0 %v5026_v0 }
  0xda   :  { %v4272_v10 = vpop.f32.mrf.mxu1 }
  0xdb   :  { %v4246_v9 = vpop.f32.mrf.mxu0 }
  0xdc   :  { %v5123_v15 = vadd.f32 %v4272_v10, %v4246_v9  ;;  %v5127_v19 = vpop.f32.mrf.mxu1 }
  0xdd   :  { %v5125_v16 = vpop.f32.mrf.mxu0 }
  0xde   :  { %v5131_v21 = vpop.f32.mrf.mxu1 }
  0xdf   :  { %v5129_v20 = vpop.f32.mrf.mxu0 }
  0xe0   :  { %v5135_v24 = vpop.f32.mrf.mxu1 }
  0xe1   :  { %v5133_v23 = vpop.f32.mrf.mxu0 }
  0xe2   :  { %v5139_v26 = vpop.f32.mrf.mxu1 }
  0xe3   :  { %v5137_v25 = vpop.f32.mrf.mxu0 }
  0xe4   :  { %v5143_v28 = vpop.f32.mrf.mxu1 }
  0xe5   :  { %v5141_v27 = vpop.f32.mrf.mxu0 }
  0xe6   :  { %v5147_v33 = vpop.f32.mrf.mxu1 }
  0xe7   :  { %v5145_v29 = vpop.f32.mrf.mxu0 }
  0xe8   :  { %v5151_v35 = vpop.f32.mrf.mxu1 }
  0xe9   :  { %v5149_v34 = vpop.f32.mrf.mxu0 }
  0xea   :  { %v4284_v40 = vpop.f32.mrf.mxu1 }
  0xeb   :  { %v4258_v39 = vpop.f32.mrf.mxu0 }
  0xec   :  { %v5153_v46 = vadd.f32 %v4284_v40, %v4258_v39  ;;  %v445_v59 = vpop.f32.mrf.mxu1 }
  0xed   :  { %v251_v50 = vpop.f32.mrf.mxu0 }
  0xee   :  { %v5155_v60 = vadd.f32 %v445_v59, %v251_v50  ;;  %v4287_v4 = vpop.f32.mrf.mxu1 }
  0xef   :  { %v4261_v63 = vpop.f32.mrf.mxu0 }
  0xf0   :  { %v5157_v5 = vadd.f32 %v4287_v4, %v4261_v63  ;;  %v457_v7 = vpop.f32.mrf.mxu1  ;;  %v398_v63 = vadd.f32 %v5127_v19, %v5125_v16 }
  0xf1   :  { %v271_v6 = vpop.f32.mrf.mxu0 }
  0xf2   :  { %7255 = vst [vmem:[#allocation5_spill] sm:$0xff] %v5157_v5  ;;  %v5159_v17 = vadd.f32 %v457_v7, %v271_v6  ;;  %v4290_v22 = vpop.f32.mrf.mxu1 }
  0xf3   :  { %v4264_v18 = vpop.f32.mrf.mxu0 }
  0xf4   :  { %7256 = vst [vmem:[#allocation6_spill] sm:$0xff] %v5159_v17  ;;  %v476_v30 = vadd.f32 %v4290_v22, %v4264_v18  ;;  %v469_v32 = vpop.f32.mrf.mxu1 }
  0xf5   :  { %v291_v31 = vpop.f32.mrf.mxu0 }
  0xf6   :  { %v470_v36 = vadd.f32 %v469_v32, %v291_v31  ;;  %v4293_v41 = vpop.f32.mrf.mxu1  ;;  %v416_v31 = vadd.f32 %v5131_v21, %v5129_v20  ;;  %v5213_v20 = vld [vmem:[%s7217_s2 + $0x8] ss:$0 sm:$0xff] }
  0xf7   :  { %v4267_v38 = vpop.f32.mrf.mxu0 }
  0xf8   :  { %v488_v45 = vadd.f32 %v4293_v41, %v4267_v38  ;;  %v481_v48 = vpop.f32.mrf.mxu1 }
  0xf9   :  { %v311_v47 = vpop.f32.mrf.mxu0 }
  0xfa   :  { %v482_v52 = vadd.f32 %v481_v48, %v311_v47  ;;  %v4324_v54 = vpop.f32.mrf.mxu1 }
  0xfb   :  { %v4298_v53 = vpop.f32.mrf.mxu0 }
  0xfc   :  { %v740_v56 = vpop.f32.mrf.mxu1  ;;  %v569_v4 = vadd.f32 %v4298_v53, %v5123_v15 }
  0xfd   :  { %v561_v55 = vpop.f32.mrf.mxu0 }
  0xfe   :  { %v4327_v58 = vpop.f32.mrf.mxu1  ;;  %v562_v32 = vadd.f32 %v561_v55, %v398_v63  ;;  %v749_v48 = vadd.f32 %v4324_v54, %v569_v4 }
  0xff   :  { %v4301_v57 = vpop.f32.mrf.mxu0 }
 0x100   :  { %v5163_v62 = vpop.f32.mrf.mxu1  ;;  %v741_v53 = vadd.f32 %v740_v56, %v562_v32 }
 0x101   :  { %v5161_v61 = vpop.f32.mrf.mxu0 }
 0x102   :  { %v5167_v1 = vpop.f32.mrf.mxu1 }
 0x103   :  { %v5165_v0 = vpop.f32.mrf.mxu0 }
 0x104   :  { %v5171_v8 = vpop.f32.mrf.mxu1 }
 0x105   :  { %v5169_v2 = vpop.f32.mrf.mxu0 }
 0x106   :  { %v5175_v12 = vpop.f32.mrf.mxu1 }
 0x107   :  { %v5173_v11 = vpop.f32.mrf.mxu0 }
 0x108   :  { %v5179_v14 = vpop.f32.mrf.mxu1 }
 0x109   :  { %v5177_v13 = vpop.f32.mrf.mxu0 }
 0x10a   :  { %v5183_v42 = vpop.f32.mrf.mxu1 }
 0x10b   :  { %v5181_v37 = vpop.f32.mrf.mxu0  ;;  %7257 = vst [vmem:[#allocation7_spill] sm:$0xff] %v5183_v42 }
 0x10c   :  { %v5187_v44 = vpop.f32.mrf.mxu1 }
 0x10d   :  { %v5185_v43 = vpop.f32.mrf.mxu0  ;;  %7258 = vst [vmem:[#allocation8_spill] sm:$0xff] %v5187_v44 }
 0x10e   :  { %v5191_v51 = vpop.f32.mrf.mxu1 }
 0x10f   :  { %v5189_v49 = vpop.f32.mrf.mxu0  ;;  %7260 = vst [vmem:[#allocation10_spill] sm:$0xff] %v5191_v51 }
 0x110   :  { %7259 = vst [vmem:[#allocation9_spill] sm:$0xff] %v5189_v49  ;;  %v5195_v9 = vpop.f32.mrf.mxu1 }
 0x111   :  { %v5193_v3 = vpop.f32.mrf.mxu0  ;;  %7262 = vst [vmem:[#allocation12_spill] sm:$0xff] %v5195_v9 }
 0x112   :  { %7261 = vst [vmem:[#allocation11_spill] sm:$0xff] %v5193_v3  ;;  %v4342_v39 = vpop.f32.mrf.mxu1 }
 0x113   :  { %v4316_v10 = vpop.f32.mrf.mxu0 }
 0x114   :  { %v653_v40 = vadd.f32 %v4316_v10, %v476_v30  ;;  %v836_v59 = vpop.f32.mrf.mxu1  ;;  %v583_v10 = vadd.f32 %v4301_v57, %v416_v31 }
 0x115   :  { %v645_v50 = vpop.f32.mrf.mxu0 }
 0x116   :  { %v5200_v6 = vadd.f32 %v4342_v39, %v653_v40  ;;  %v646_v7 = vadd.f32 %v645_v50, %v470_v36  ;;  %v4345_v22 = vpop.f32.mrf.mxu1 }
 0x117   :  { %v4319_v18 = vpop.f32.mrf.mxu0 }
 0x118   :  { %7263 = vst [vmem:[#allocation13_spill] sm:$0xff] %v5200_v6  ;;  %v5204_v38 = vadd.f32 %v836_v59, %v646_v7  ;;  %v667_v41 = vadd.f32 %v4319_v18, %v488_v45  ;;  %v852_v47 = vpop.f32.mrf.mxu1  ;;  %v765_v45 = vadd.f32 %v4327_v58, %v583_v10 }
 0x119   :  { %v659_v30 = vpop.f32.mrf.mxu0 }
 0x11a   :  { %7264 = vst [vmem:[#allocation14_spill] sm:$0xff] %v5204_v38  ;;  %v5206_v9 = vadd.f32 %v4345_v22, %v667_v41  ;;  %v660_v16 = vadd.f32 %v659_v30, %v482_v52  ;;  %v4376_v19 = vpop.f32.mrf.mxu1 }
 0x11b   :  { %v4350_v15 = vpop.f32.mrf.mxu0 }
 0x11c   :  { %7265 = vst [vmem:[#allocation15_spill] sm:$0xff] %v5206_v9  ;;  %v5208_v36 = vadd.f32 %v852_v47, %v660_v16  ;;  %v941_v39 = vadd.f32 %v4350_v15, %v749_v48  ;;  %v1096_v57 = vpop.f32.mrf.mxu1 }
 0x11d   :  { %v934_v21 = vpop.f32.mrf.mxu0 }
 0x11e   :  { %7266 = vst [vmem:[#allocation16_spill] sm:$0xff] %v5208_v36  ;;  %v5215_v55 = vadd.f32 %v4376_v19, %v941_v39  ;;  %v935_v54 = vadd.f32 %v934_v21, %v741_v53  ;;  %v4379_v4 = vpop.f32.mrf.mxu1  ;;  %v410_v39 = vadd.f32 %v5135_v24, %v5133_v23  ;;  %v7224_v23 = vmov 2131351028  }
 0x11f   :  { %v4353_v40 = vpop.f32.mrf.mxu0 }
 0x120   :  { %v5219_v52 = vadd.f32 %v5213_v20, %v5215_v55  ;;  %v5221_v56 = vadd.f32 %v1096_v57, %v935_v54  ;;  %v953_v50 = vadd.f32 %v4353_v40, %v765_v45  ;;  %v5245_v40 = vadd.f32 %v5161_v61, %v410_v39 }
 0x122   :  { %7267 = vst [vmem:[#allocation17_spill] sm:$0xff] %v5221_v56  ;;  %v7221_v59 = vand.u32 2147483647, %v5219_v52  ;;  %v1338_v63 = vand.u32 2139095040, %v5219_v52  ;;  %v5227_v58 = vadd.f32 %v5213_v20, %v5221_v56  ;;  %v5229_v7 = vadd.f32 %v4379_v4, %v953_v50 }
 0x123   :  { %vm1337_vm14 = vcmp.lt.s32.totalorder %v5219_v52, 0 }
 0x124   :  { %7268 = vst [vmem:[#allocation18_spill] sm:$0xff] %v5227_v58  ;;  %7269 = vst [vmem:[#allocation19_spill] sm:$0xff] %v5229_v7  ;;  %v1339_v18 = vshrl.u32 %v1338_v63, 23  ;;  %v1342_v22 = vand.u32 8388607, %v7221_v59  ;;  %v1234_v32 = vand.u32 2139095040, %v5227_v58  ;;  %v5237_v30 = vadd.f32 %v5213_v20, %v5229_v7 }
 0x125   :  { %v7220_v31 = vand.u32 2147483647, %v5227_v58 }
 0x126   :  { %v3983_v41 = vadd.s32 4294967169, %v1339_v18  ;;  %v1235_v47 = vshrl.u32 %v1234_v32, 23  ;;  %v1343_v16 = vor.u32 8388608, %v1342_v22  ;;  %v1546_v53 = vand.u32 2139095040, %v5237_v30 }
 0x127   :  { %v1238_v48 = vand.u32 8388607, %v7220_v31  ;;  %v7229_v22 = vmov 683565275   ;;  %v7233_v31 = vmov 1326507024  }
 0x128   :  { %v1345_v10 = vadd.s32 1, %v3983_v41  ;;  %v3979_v15 = vadd.s32 4294967169, %v1235_v47  ;;  %v5247_v50 = vshll.u32 %v1343_v16, 8  ;;  %v1547_v4 = vshrl.u32 %v1546_v53, 23 }
 0x129   :  { %v1239_v19 = vor.u32 8388608, %v1238_v48  ;;  %v7222_v41 = vmov 2475754826   ;;  %v7226_v48 = vmov 2102212464  }
 0x12a   :  { %vm1346_vm1 = vcmp.gt.s32.totalorder %v1345_v10, 0  ;;  %v1241_v45 = vadd.s32 1, %v3979_v15 }
 0x12b   :  { %v1347_v21 = vsel %vm1346_vm1, %v1345_v10, 0  ;;  %v5249_v63 = vshll.u32 %v1239_v19, 8  ;;  %v7231_v10 = vmov 920167782  }
 0x12c   :  { %v1348_v54 = vshrl.u32 %v1347_v21, 5  ;;  %v1349_v57 = vand.u32 31, %v1347_v21  ;;  %vm1242_vm2 = vcmp.gt.s32.totalorder %v1241_v45, 0 }
 0x12e   :  { %v1350_v18 = vsub.s32 32, %v1349_v57  ;;  %v1352_v32 = vshll.u32 %v7229_v22, %v1349_v57  ;;  %v1355_v47 = vshll.u32 %v7222_v41, %v1349_v57  ;;  %v1358_v24 = vshll.u32 %v7224_v23, %v1349_v57 }
 0x12f   :  { %v1361_v61 = vshll.u32 %v7226_v48, %v1349_v57  ;;  %v1364_v16 = vshll.u32 %v7231_v10, %v1349_v57  ;;  %vm1367_vm3 = vcmp.lt.s32.totalorder %v1348_v54, 1  ;;  %vm1368_vm4 = vcmp.lt.s32.totalorder %v1348_v54, 2 }
 0x130   :  { %v1353_v15 = vshrl.u32 %v7222_v41, %v1350_v18  ;;  %v1356_v19 = vshrl.u32 %v7224_v23, %v1350_v18  ;;  %v1359_v53 = vshrl.u32 %v7226_v48, %v1350_v18  ;;  %v1351_v39 = vshrl.u32 %v7229_v22, %v1350_v18 }
 0x131   :  { %v1362_v21 = vshrl.u32 %v7231_v10, %v1350_v18  ;;  %v1365_v59 = vshrl.u32 %v7233_v31, %v1350_v18  ;;  %vm1369_vm5 = vcmp.lt.s32.totalorder %v1348_v54, 3  ;;  %v1243_v57 = vsel %vm1242_vm2, %v1241_v45, 0 }
 0x132   :  { %v1354_v36 = vor.u32 %v1353_v15, %v1352_v32  ;;  %v1357_v9 = vor.u32 %v1356_v19, %v1355_v47  ;;  %v1360_v38 = vor.u32 %v1359_v53, %v1358_v24  ;;  %vm1370_vm6 = vcmp.lt.s32.totalorder %v1348_v54, 4 }
 0x133   :  { %v1363_v6 = vor.u32 %v1362_v21, %v1361_v61  ;;  %v1366_v41 = vor.u32 %v1365_v59, %v1364_v16  ;;  %v1245_v23 = vand.u32 31, %v1243_v57  ;;  %v3991_v24 = vadd.s32 4294967169, %v1547_v4 }
 0x134   :  { %v1371_v48 = vsel %vm1367_vm3, %v1351_v39, %v1354_v36  ;;  %v1372_v56 = vsel %vm1370_vm6, %v1360_v38, 2102212464  ;;  %v1375_v22 = vsel %vm1367_vm3, %v1354_v36, %v1357_v9  ;;  %v1379_v10 = vsel %vm1367_vm3, %v1357_v9, %v1360_v38 }
 0x135   :  { %v1373_v51 = vsel %vm1369_vm5, %v1357_v9, %v1372_v56  ;;  %v1376_v18 = vsel %vm1370_vm6, %v1363_v6, 920167782  ;;  %v1380_v31 = vsel %vm1370_vm6, %v1366_v41, 1326507024  ;;  %v1246_v32 = vsub.s32 32, %v1245_v23 }
 0x136   :  { %v1374_v47 = vsel %vm1368_vm4, %v1371_v48, %v1373_v51  ;;  %v1377_v45 = vsel %vm1369_vm5, %v1360_v38, %v1376_v18  ;;  %v1381_v59 = vsel %vm1369_vm5, %v1363_v6, %v1380_v31  ;;  %v1244_v15 = vshrl.u32 %v1243_v57, 5 }
 0x137   :  { %v1378_v61 = vsel %vm1368_vm4, %v1375_v22, %v1377_v45  ;;  %v1382_v16 = vsel %vm1368_vm4, %v1379_v10, %v1381_v59  ;;  %v7270_v36 = vmov 683565275   ;;  %v1390_v51 = vmul.u32 %v5247_v50, %v1374_v47 }
 0x138   :  { %v1248_v19 = vshll.u32 %v7270_v36, %v1245_v23  ;;  %v5274_v53 = vmul.u32.u64.low %v5247_v50, %v1382_v16  ;;  %v5275_v9 = vmul.u32.u64.high %v5247_v50, %v1382_v16, %v5274_v53  ;;  %v7271_v6 = vmov 2475754826  }
 0x139   :  { %v5278_v56 = vmul.u32.u64.low %v5247_v50, %v1378_v61  ;;  %v5279_v41 = vmul.u32.u64.high %v5247_v50, %v1378_v61, %v5278_v56  ;;  %v1249_v38 = vshrl.u32 %v7271_v6, %v1246_v32  ;;  %v1251_v31 = vshll.u32 %v7271_v6, %v1245_v23 }
 0x13a   :  { %v7272_v54 = vmov 2131351028   ;;  %v7273_v48 = vmov 2102212464   ;;  %v7274_v21 = vmov 920167782   ;;  %v1247_v16 = vshrl.u32 %v7270_v36, %v1246_v32 }
 0x13b   :  { %v1252_v4 = vshrl.u32 %v7272_v54, %v1246_v32  ;;  %v1254_v22 = vshll.u32 %v7272_v54, %v1245_v23  ;;  %v1255_v10 = vshrl.u32 %v7273_v48, %v1246_v32  ;;  %v1257_v39 = vshll.u32 %v7273_v48, %v1245_v23 }
 0x13c   :  { %v1258_v57 = vshrl.u32 %v7274_v21, %v1246_v32  ;;  %v1250_v18 = vor.u32 %v1249_v38, %v1248_v19  ;;  %v1260_v59 = vshll.u32 %v7274_v21, %v1245_v23  ;;  %v7275_v61 = vmov 1326507024  }
 0x13d   :  { %v1253_v45 = vor.u32 %v1252_v4, %v1251_v31  ;;  %v1261_v50 = vshrl.u32 %v7275_v61, %v1246_v32  ;;  %vm1392_vm7 = vc.u32 %v5275_v9, %v5278_v56  ;;  %v1393_v47 = vadd.s32 1, %v5279_v41 }
 0x13e   :  { %v1256_v53 = vor.u32 %v1255_v10, %v1254_v22  ;;  %v1259_v44 = vor.u32 %v1258_v57, %v1257_v39  ;;  %vm1263_vm8 = vcmp.lt.s32.totalorder %v1244_v15, 1  ;;  %vm1264_vm9 = vcmp.lt.s32.totalorder %v1244_v15, 2  ;;  %v946_v39 = vpop.f32.mrf.mxu0 }
 0x13f   :  { %v1262_v42 = vor.u32 %v1261_v50, %v1260_v59  ;;  %v1394_v3 = vsel %vm1392_vm7, %v1393_v47, %v5279_v41  ;;  %vm1265_vm10 = vcmp.lt.s32.totalorder %v1244_v15, 3  ;;  %vm1266_vm11 = vcmp.lt.s32.totalorder %v1244_v15, 4 }
 0x140   :  { %v1271_v19 = vsel %vm1263_vm8, %v1250_v18, %v1253_v45  ;;  %v1395_v23 = vadd.s32 %v1394_v3, %v1390_v51  ;;  %v1268_v38 = vsel %vm1266_vm11, %v1256_v53, 2102212464  ;;  %v1272_v31 = vsel %vm1266_vm11, %v1259_v44, 920167782 }
 0x141   :  { %v1275_v4 = vsel %vm1263_vm8, %v1253_v45, %v1256_v53  ;;  %v1267_v17 = vsel %vm1263_vm8, %v1247_v16, %v1250_v18  ;;  %v1273_v7 = vsel %vm1265_vm10, %v1256_v53, %v1272_v31  ;;  %v1276_v58 = vsel %vm1266_vm11, %v1262_v42, 1326507024 }
 0x142   :  { %v1553_v49 = vadd.s32 1, %v3991_v24  ;;  %v1396_v5 = vadd.s32 536870912, %v1395_v23  ;;  %v1269_v32 = vsel %vm1265_vm10, %v1253_v45, %v1268_v38  ;;  %v1274_v22 = vsel %vm1264_vm9, %v1271_v19, %v1273_v7 }
 0x143   :  { %v1277_v10 = vsel %vm1265_vm10, %v1259_v44, %v1276_v58  ;;  %v757_v41 = vadd.f32 %v5163_v62, %v5245_v40  ;;  %v5302_v3 = vmul.u32.u64.low %v5249_v63, %v1274_v22  ;;  %v5303_v51 = vmul.u32.u64.high %v5249_v63, %v1274_v22, %v5302_v3 }
 0x144   :  { %v1278_v57 = vsel %vm1264_vm9, %v1275_v4, %v1277_v10  ;;  %v5306_v18 = vshrl.u32 %v1396_v5, 30  ;;  %vm1554_vm12 = vcmp.gt.s32.totalorder %v1553_v49, 0  ;;  %v1270_v44 = vsel %vm1264_vm9, %v1267_v17, %v1269_v32  ;;  %v1108_v17 = vpop.f32.mrf.mxu1 }
 0x145   :  { %v5309_v42 = vmul.u32.u64.low %v5249_v63, %v1278_v57  ;;  %v5310_v24 = vmul.u32.u64.high %v5249_v63, %v1278_v57, %v5309_v42  ;;  %v7238_v58 = vand.u32 2147483647, %v5237_v30  ;;  %v1555_v7 = vsel %vm1554_vm12, %v1553_v49, 0 }
 0x146   :  { %v947_v62 = vadd.f32 %v946_v39, %v757_v41  ;;  %v428_v40 = vadd.f32 %v5139_v26, %v5137_v25  ;;  %v1398_v45 = vshll.u32 %v5306_v18, 30  ;;  %v1557_v59 = vand.u32 31, %v1555_v7 }
 0x147   :  { %v1289_v5 = vadd.s32 1, %v5303_v51  ;;  %v1286_v16 = vmul.u32 %v5249_v63, %v1270_v44  ;;  %vm1288_vm13 = vc.u32 %v5310_v24, %v5302_v3  ;;  %v1550_v15 = vand.u32 8388607, %v7238_v58 }
 0x148   :  { %v597_v50 = vadd.f32 %v5165_v0, %v428_v40  ;;  %v1399_v47 = vsub.s32 %v1395_v23, %v1398_v45  ;;  %v5325_v25 = vadd.f32 %v1108_v17, %v947_v62  ;;  %v1558_v19 = vsub.s32 32, %v1557_v59 }
 0x149   :  { %v1290_v49 = vsel %vm1288_vm13, %v1289_v5, %v5303_v51  ;;  %v1391_v63 = vadd.s32 %v5278_v56, %v5275_v9  ;;  %v1421_v4 = vsub.s32 4, %v5306_v18  ;;  %v1551_v32 = vor.u32 8388608, %v1550_v15 }
 0x14a   :  { %7276 = vst [vmem:[#allocation20_spill] sm:$0xff] %v5325_v25  ;;  %v1401_v26 = vsub.s32 0, %v1399_v47  ;;  %v1291_v53 = vadd.s32 %v1290_v49, %v1286_v16  ;;  %v781_v38 = vadd.f32 %v5167_v1, %v597_v50  ;;  %v5333_v22 = vadd.f32 %v5213_v20, %v5325_v25 }
 0x14b   :  { %v1561_v39 = vshrl.u32 %v7271_v6, %v1558_v19  ;;  %v1564_v41 = vshrl.u32 %v7272_v54, %v1558_v19  ;;  %v1570_v1 = vshrl.u32 %v7274_v21, %v1558_v19  ;;  %v5340_v51 = vshrl.u32 %v1555_v7, 5 }
 0x14c   :  { %v3984_v23 = vmin.u32 %v1401_v26, %v1399_v47  ;;  %v1292_v31 = vadd.s32 536870912, %v1291_v53  ;;  %v1560_v9 = vshll.u32 %v7270_v36, %v1557_v59  ;;  %v1567_v56 = vshrl.u32 %v7273_v48, %v1558_v19 }
 0x14d   :  { %v1563_v44 = vshll.u32 %v7271_v6, %v1557_v59  ;;  %v1569_v62 = vshll.u32 %v7273_v48, %v1557_v59  ;;  %v1573_v40 = vshrl.u32 %v7275_v61, %v1558_v19  ;;  %v1566_v5 = vshll.u32 %v7272_v54, %v1557_v59 }
 0x14e   :  { %v1403_v10 = vclz %v3984_v23  ;;  %v5338_v57 = vshrl.u32 %v1292_v31, 30  ;;  %v1572_v7 = vshll.u32 %v7274_v21, %v1557_v59  ;;  %v1442_v50 = vand.u32 2139095040, %v5333_v22 }
 0x14f   :  { %v1562_v16 = vor.u32 %v1561_v39, %v1560_v9  ;;  %v1565_v17 = vor.u32 %v1564_v41, %v1563_v44  ;;  %v1571_v49 = vor.u32 %v1570_v1, %v1569_v62  ;;  %v1568_v23 = vor.u32 %v1567_v56, %v1566_v5  ;;  %v4356_v9 = vpop.f32.mrf.mxu0 }
 0x150   :  { %7277 = vst [vmem:[#allocation21_spill] sm:$0xff] %v5338_v57  ;;  %v3985_v42 = vadd.s32 4294967294, %v1403_v10  ;;  %v1294_v45 = vshll.u32 %v5338_v57, 30  ;;  %v1574_v31 = vor.u32 %v1573_v40, %v1572_v7  ;;  %v1559_v0 = vshrl.u32 %v7270_v36, %v1558_v19 }
 0x151   :  { %vm1575_vm0 = vcmp.lt.s32.totalorder %v5340_v51, 1  ;;  %vm1577_vm1 = vcmp.lt.s32.totalorder %v5340_v51, 3  ;;  %vm1578_vm2 = vcmp.lt.s32.totalorder %v5340_v51, 4  ;;  %vm1576_vm3 = vcmp.lt.s32.totalorder %v5340_v51, 2 }
 0x152   :  { %vm3986_vm15 = vcmp.lt.s32.totalorder %v3985_v42, 0  ;;  %v5352_v26 = vsub.s32 %v1291_v53, %v1294_v45  ;;  %v1583_v53 = vsel %vm1575_vm0, %v1562_v16, %v1565_v17  ;;  %v1584_v1 = vsel %vm1578_vm2, %v1571_v49, 920167782 }
 0x153   :  { %v1406_v15 = vsel %vm3986_vm15, 0, %v3985_v42  ;;  %v1585_v19 = vsel %vm1577_vm1, %v1568_v23, %v1584_v1  ;;  %v1588_v56 = vsel %vm1578_vm2, %v1574_v31, 1326507024  ;;  %v1580_v62 = vsel %vm1578_vm2, %v1568_v23, 2102212464 }
 0x154   :  { %v1407_v10 = vsub.s32 32, %v1406_v15  ;;  %v1411_v58 = vsub.s32 4294967266, %v1406_v15  ;;  %v1408_v25 = vshll.u32 %v1399_v47, %v1406_v15  ;;  %v1297_v59 = vsub.s32 0, %v5352_v26 }
 0x155   :  { %v1587_v47 = vsel %vm1575_vm0, %v1565_v17, %v1568_v23  ;;  %v1586_v40 = vsel %vm1576_vm3, %v1583_v53, %v1585_v19  ;;  %v1591_v45 = vshll.u32 %v1551_v32, 8  ;;  %v965_v5 = vadd.f32 %v4356_v9, %v781_v38  ;;  %v4382_v9 = vpop.f32.mrf.mxu1 }
 0x156   :  { %v1409_v39 = vshrl.u32 %v1391_v63, %v1407_v10  ;;  %v1412_v41 = vadd.s32 127, %v1411_v58  ;;  %v1589_v58 = vsel %vm1577_vm1, %v1571_v49, %v1588_v56  ;;  %v1422_v63 = vsel %vm1337_vm14, %v1421_v4, %v5306_v18 }
 0x157   :  { %v3980_v15 = vmin.u32 %v1297_v59, %v5352_v26  ;;  %v1590_v23 = vsel %vm1576_vm3, %v1587_v47, %v1589_v58  ;;  %v1581_v49 = vsel %vm1577_vm1, %v1565_v17, %v1580_v62  ;;  %v1443_v18 = vshrl.u32 %v1442_v50, 23 }
 0x158   :  { %v1410_v42 = vor.u32 %v1409_v39, %v1408_v25  ;;  %v1413_v44 = vshll.u32 %v1412_v41, 23  ;;  %v1579_v25 = vsel %vm1575_vm0, %v1559_v0, %v1562_v16  ;;  %v7278_v59 = vlaneseq }
 0x159   :  { %v5380_v31 = vmul.u32.u64.low %v1591_v45, %v1590_v23  ;;  %v5381_v10 = vmul.u32.u64.high %v1591_v45, %v1590_v23, %v5380_v31  ;;  %v5383_v32 = vmul.u32.u64.low %v1591_v45, %v1586_v40  ;;  %v5384_v38 = vmul.u32.u64.high %v1591_v45, %v1586_v40, %v5383_v32 }
 0x15a   :  { %v1414_v7 = vor.u32 4788187, %v1413_v44  ;;  %v1417_v39 = vcvt.s32.f32 %v1410_v42  ;;  %v1191_v41 = vshrl.u32 %v7278_v59, 7  ;;  %v3987_v53 = vadd.s32 4294967169, %v1443_v18 }
 0x15b   :  { %v7279_v0 = vand.u32 2147483647, %v5219_v52  ;;  %v1299_v1 = vclz %v3980_v15  ;;  %v1582_v50 = vsel %vm1576_vm3, %v1579_v25, %v1581_v49  ;;  %v7240_v47 = vand.u32 2147483647, %v5333_v22 }
 0x15c   :  { %v1415_v4 = vand.u32 2147483647, %v1414_v7  ;;  %v5399_v56 = vadd.f32 %v4382_v9, %v965_v5  ;;  %vm1600_vm5 = vc.u32 %v5381_v10, %v5383_v32  ;;  %v1601_v44 = vadd.s32 1, %v5384_v38  ;;  %v47_v5 = vld [vmem:[%s7217_s2 + $0x9] sm:$0x1] }
 0x15d   :  { %vm5390_vm4 = vcmp.le.f32.partialorder %v7279_v0, 0.7853982  ;;  %v1449_v62 = vadd.s32 1, %v3987_v53  ;;  %v5404_v58 = vsub.s32 0, %v1191_v41  ;;  %v1598_v40 = vmul.u32 %v1591_v45, %v1582_v50 }
 0x15e   :  { %v1418_v17 = vmul.f32 %v1417_v39, %v1415_v4  ;;  %v1424_v19 = vsel %vm5390_vm4, 0, %v1422_v63  ;;  %7282 = vst [vmem:[#allocation22_spill] sm:$0xff] %v5399_v56  ;;  %v3981_v7 = vadd.s32 4294967294, %v1299_v1  ;;  %v1602_v63 = vsel %vm1600_vm5, %v1601_v44, %v5384_v38 }
 0x15f   :  { %7283 = vst [vmem:[#allocation23_spill] sm:$0xff] %v5404_v58  ;;  %vm1450_vm6 = vcmp.gt.s32.totalorder %v1449_v62, 0  ;;  %v1428_v25 = vadd.s32 3, %v1424_v19  ;;  %v1603_v23 = vadd.s32 %v1602_v63, %v1598_v40  ;;  %v1446_v45 = vand.u32 8388607, %v7240_v47 }
 0x160   :  { %v1419_v42 = vxor.u32 2147483648, %v1418_v17  ;;  %v1451_v49 = vsel %vm1450_vm6, %v1449_v62, 0  ;;  %v5419_v31 = vadd.f32 %v5213_v20, %v5399_v56  ;;  %v1210_v18 = vsub.f32 1.0, %v47_v5 }
 0x161   :  { %v1604_v4 = vadd.s32 536870912, %v1603_v23  ;;  %v5422_v39 = vrot.slane %v47_v5, %v5404_v58  ;;  %vm3982_vm7 = vcmp.lt.s32.totalorder %v3981_v7, 0  ;;  %v1453_v38 = vand.u32 31, %v1451_v49 }
 0x162   :  { %v1420_v51 = vsel %vm1337_vm14, %v1419_v42, %v1418_v17  ;;  %v422_v59 = vadd.f32 %v5143_v28, %v5141_v27  ;;  %v5426_v41 = vand.u32 3, %v1428_v25  ;;  %v1447_v0 = vor.u32 8388608, %v1446_v45 }
 0x163   :  { %v1423_v15 = vsel %vm5390_vm4, %v5219_v52, %v1420_v51  ;;  %v5428_v53 = vshrl.u32 %v1604_v4, 30  ;;  %v5432_v16 = vadd.f32 %v5147_v33, %v5145_v29  ;;  %v1454_v17 = vsub.s32 32, %v1453_v38 }
 0x164   :  { %4631 = vcosq.f32 %v1423_v15  ;;  %v1754_v1 = vand.u32 2139095040, %v5419_v31  ;;  %v5436_v50 = vadd.f32 %v5169_v2, %v422_v59  ;;  %v5439_v9 = vrot.slane %v1210_v18, %v5404_v58 }
 0x165   :  { %4633 = vsinq.f32 %v1423_v15  ;;  %v5441_v19 = vsel %vm3982_vm7, 0, %v3981_v7  ;;  %v1606_v27 = vshll.u32 %v5428_v53, 30  ;;  %v5446_v28 = vmul.f32 %v5422_v39, %v5215_v55 }
 0x166   :  { %v5450_v29 = vadd.s32 %v5302_v3, %v5310_v24  ;;  %v1457_v33 = vshrl.u32 %v7271_v6, %v1454_v17  ;;  %v1460_v2 = vshrl.u32 %v7272_v54, %v1454_v17  ;;  %vm1434_vm8 = vcmp.eq.s32.totalorder %v5426_v41, 2 }
 0x167   :  { %v5455_v42 = vsub.s32 %v1603_v23, %v1606_v27  ;;  %v1463_v44 = vshrl.u32 %v7273_v48, %v1454_v17  ;;  %v1466_v62 = vshrl.u32 %v7274_v21, %v1454_v17  ;;  %v5459_v40 = vshll.u32 %v1447_v0, 8 }
 0x168   :  { %vm1431_vm9 = vcmp.eq.s32.totalorder %v5426_v41, 0  ;;  %v1307_v55 = vsub.s32 4294967266, %v5441_v19  ;;  %v1456_v3 = vshll.u32 %v7270_v36, %v1453_v38  ;;  %v1459_v24 = vshll.u32 %v7271_v6, %v1453_v38 }
 0x169   :  { %v1755_v51 = vshrl.u32 %v1754_v1, 23  ;;  %vm1430_vm10 = vcmp.lt.s32.totalorder %v5426_v41, 2  ;;  %v1609_v7 = vsub.s32 0, %v5455_v42  ;;  %v1452_v63 = vshrl.u32 %v1451_v49, 5 }
 0x16a   :  { %v1462_v5 = vshll.u32 %v7272_v54, %v1453_v38  ;;  %v1465_v15 = vshll.u32 %v7273_v48, %v1453_v38  ;;  %vm1427_vm11 = vweird.f32 %v5219_v52  ;;  %v1303_v25 = vsub.s32 32, %v5441_v19 }
 0x16b   :  { %v1458_v23 = vor.u32 %v1457_v33, %v1456_v3  ;;  %v1461_v45 = vor.u32 %v1460_v2, %v1459_v24  ;;  %v1469_v18 = vshrl.u32 %v7275_v61, %v1454_v17  ;;  %v3992_v4 = vmin.u32 %v1609_v7, %v5455_v42 }
 0x16c   :  { %v1464_v59 = vor.u32 %v1463_v44, %v1462_v5  ;;  %v1467_v0 = vor.u32 %v1466_v62, %v1465_v15  ;;  %v1468_v1 = vshll.u32 %v7274_v21, %v1453_v38  ;;  %v5474_v27 = vadd.s32 127, %v1307_v55 }
 0x16d   :  { %v1599_v49 = vadd.s32 %v5383_v32, %v5381_v10  ;;  %v1455_v47 = vshrl.u32 %v7270_v36, %v1454_v17  ;;  %v3999_v58 = vadd.s32 4294967169, %v1755_v51  ;;  %v1611_v57 = vclz %v3992_v4 }
 0x16e   :  { %v1470_v33 = vor.u32 %v1469_v18, %v1468_v1  ;;  %vm1471_vm12 = vcmp.lt.s32.totalorder %v1452_v63, 1  ;;  %vm1472_vm13 = vcmp.lt.s32.totalorder %v1452_v63, 2  ;;  %vm1473_vm14 = vcmp.lt.s32.totalorder %v1452_v63, 3 }
 0x16f   :  { %vm1474_vm15 = vcmp.lt.s32.totalorder %v1452_v63, 4  ;;  %v1479_v44 = vsel %vm1471_vm12, %v1458_v23, %v1461_v45  ;;  %v3993_v38 = vadd.s32 4294967294, %v1611_v57  ;;  %v1475_v32 = vsel %vm1471_vm12, %v1455_v47, %v1458_v23 }
 0x170   :  { %v1476_v55 = vsel %vm1474_vm15, %v1464_v59, 2102212464  ;;  %v1480_v24 = vsel %vm1474_vm15, %v1467_v0, 920167782  ;;  %v1483_v51 = vsel %vm1471_vm12, %v1461_v45, %v1464_v59  ;;  %v1484_v15 = vsel %vm1474_vm15, %v1470_v33, 1326507024 }
 0x171   :  { %v4632_v56 = vpop.eup %4631  ;;  %v1481_v17 = vsel %vm1473_vm14, %v1464_v59, %v1480_v24  ;;  %vm3994_vm0 = vcmp.lt.s32.totalorder %v3993_v38, 0  ;;  %v1477_v4 = vsel %vm1473_vm14, %v1461_v45, %v1476_v55  ;;  %v1485_v1 = vsel %vm1473_vm14, %v1467_v0, %v1484_v15 }
 0x172   :  { %v4634_v2 = vpop.eup %4633  ;;  %v1435_v3 = vxor.u32 2147483648, %v4632_v56  ;;  %v1482_v5 = vsel %vm1472_vm13, %v1479_v44, %v1481_v17  ;;  %v1614_v57 = vsel %vm3994_vm0, 0, %v3993_v38  ;;  %v434_v52 = vadd.f32 %v5151_v35, %v5149_v34 }
 0x173   :  { %v1432_v62 = vxor.u32 2147483648, %v4634_v2  ;;  %v1615_v23 = vsub.s32 32, %v1614_v57  ;;  %v1616_v59 = vshll.u32 %v5455_v42, %v1614_v57  ;;  %v1305_v38 = vshrl.u32 %v5450_v29, %v1303_v25  ;;  %v958_v25 = vpop.f32.mrf.mxu0 }
 0x174   :  { %v1436_v10 = vsel %vm1434_vm8, %v1435_v3, %v4634_v2  ;;  %v1619_v2 = vsub.s32 4294967266, %v1614_v57  ;;  %v1486_v3 = vsel %vm1472_vm13, %v1483_v51, %v1485_v1  ;;  %v1761_v55 = vadd.s32 1, %v3999_v58 }
 0x175   :  { %v1433_v7 = vsel %vm1431_vm9, %v4632_v56, %v1432_v62  ;;  %v5495_v33 = vmul.u32.u64.low %v5459_v40, %v1482_v5  ;;  %v5496_v41 = vmul.u32.u64.high %v5459_v40, %v1482_v5, %v5495_v33  ;;  %v1617_v44 = vshrl.u32 %v1599_v49, %v1615_v23 }
 0x176   :  { %v1437_v18 = vsel %vm1430_vm10, %v1433_v7, %v1436_v10  ;;  %v1620_v45 = vadd.s32 127, %v1619_v2  ;;  %v5500_v0 = vmul.u32.u64.low %v5459_v40, %v1486_v3  ;;  %v5501_v62 = vmul.u32.u64.high %v5459_v40, %v1486_v3, %v5500_v0 }
 0x177   :  { %v1438_v47 = vsel %vm1427_vm11, nan, %v1437_v18  ;;  %v1309_v24 = vshll.u32 %v5474_v27, 23  ;;  %v1618_v10 = vor.u32 %v1617_v44, %v1616_v59  ;;  %v1478_v49 = vsel %vm1472_vm13, %v1475_v32, %v1477_v4  ;;  %v1120_v59 = vpop.f32.mrf.mxu1 }
 0x178   :  { %v2900_v56 = vmul.f32 %v5439_v9, %v1438_v47  ;;  %v1621_v17 = vshll.u32 %v1620_v45, 23  ;;  %v773_v51 = vadd.f32 %v5171_v8, %v5436_v50  ;;  %v1304_v7 = vshll.u32 %v5352_v26, %v5441_v19 }
 0x179   :  { %v1497_v34 = vadd.s32 1, %v5496_v41  ;;  %vm1762_vm1 = vcmp.gt.s32.totalorder %v1761_v55, 0  ;;  %v611_v35 = vadd.f32 %v5173_v11, %v5432_v16  ;;  %v604_v58 = vadd.f32 %v5177_v13, %v434_v52 }
 0x17a   :  { %v5506_v42 = vadd.f32 %v2900_v56, %v5446_v28  ;;  %v1622_v28 = vor.u32 4788187, %v1621_v17  ;;  %v1751_v29 = vand.u32 2147483647, %v5419_v31  ;;  %v5520_v63 = vor.u32 %v1305_v38, %v1304_v7 }
 0x17b   :  { %v1494_v27 = vmul.u32 %v5459_v40, %v1478_v49  ;;  %vm1496_vm2 = vc.u32 %v5501_v62, %v5495_v33  ;;  %v1763_v8 = vsel %vm1762_vm1, %v1761_v55, 0  ;;  %v5525_v26 = vor.u32 4788187, %v1309_v24 }
 0x17c   :  { %v1623_v50 = vand.u32 2147483647, %v1622_v28  ;;  %v1625_v19 = vcvt.s32.f32 %v1618_v10  ;;  %v1498_v11 = vsel %vm1496_vm2, %v1497_v34, %v5496_v41  ;;  %v1765_v13 = vand.u32 31, %v1763_v8 }
 0x17d   :  { %v1499_v16 = vadd.s32 %v1498_v11, %v1494_v27  ;;  %v959_v32 = vadd.f32 %v958_v25, %v773_v51  ;;  %v5529_v5 = vadd.f32 %v5175_v12, %v611_v35  ;;  %v5532_v15 = vadd.f32 %v5179_v14, %v604_v58 }
 0x17e   :  { %v1626_v40 = vmul.f32 %v1625_v19, %v1623_v50  ;;  %v7284_v18 = vand.u32 2147483647, %v5237_v30  ;;  %vm1545_vm4 = vcmp.lt.s32.totalorder %v5237_v30, 0  ;;  %v1766_v1 = vsub.s32 32, %v1765_v13 }
 0x17f   :  { %v1500_v4 = vadd.s32 536870912, %v1499_v16  ;;  %v1311_v47 = vand.u32 2147483647, %v5525_v26  ;;  %v1313_v23 = vcvt.s32.f32 %v5520_v63  ;;  %v1758_v14 = vand.u32 8388607, %v1751_v29 }
 0x180   :  { %vm5536_vm3 = vcmp.le.f32.partialorder %v7284_v18, 0.7853982  ;;  %v1627_v12 = vxor.u32 2147483648, %v1626_v40  ;;  %v1769_v56 = vshrl.u32 %v7271_v6, %v1766_v1  ;;  %v1772_v3 = vshrl.u32 %v7272_v54, %v1766_v1 }
 0x181   :  { %v5545_v2 = vshrl.u32 %v1500_v4, 30  ;;  %v5549_v41 = vadd.f32 %v1120_v59, %v959_v32  ;;  %v1764_v44 = vshrl.u32 %v1763_v8, 5  ;;  %v1768_v45 = vshll.u32 %v7270_v36, %v1765_v13 }
 0x182   :  { %v1771_v0 = vshll.u32 %v7271_v6, %v1765_v13  ;;  %v1775_v52 = vshrl.u32 %v7273_v48, %v1766_v1  ;;  %v1628_v38 = vsel %vm1545_vm4, %v1627_v12, %v1626_v40  ;;  %v1629_v55 = vsub.s32 4, %v5428_v53 }
 0x183   :  { %v1502_v24 = vshll.u32 %v5545_v2, 30  ;;  %v1774_v10 = vshll.u32 %v7272_v54, %v1765_v13  ;;  %v1770_v17 = vor.u32 %v1769_v56, %v1768_v45  ;;  %v1777_v51 = vshll.u32 %v7273_v48, %v1765_v13 }
 0x184   :  { %v1773_v49 = vor.u32 %v1772_v3, %v1771_v0  ;;  %v1778_v7 = vshrl.u32 %v7274_v21, %v1766_v1  ;;  %v1759_v35 = vor.u32 8388608, %v1758_v14  ;;  %v5565_v28 = vadd.f32 %v5213_v20, %v5549_v41 }
 0x185   :  { %v5561_v34 = vsub.s32 %v1499_v16, %v1502_v24  ;;  %v1776_v58 = vor.u32 %v1775_v52, %v1774_v10  ;;  %v1780_v63 = vshll.u32 %v7274_v21, %v1765_v13  ;;  %v1781_v27 = vshrl.u32 %v7275_v61, %v1766_v1 }
 0x186   :  { %v1779_v25 = vor.u32 %v1778_v7, %v1777_v51  ;;  %vm1783_vm5 = vcmp.lt.s32.totalorder %v1764_v44, 1  ;;  %v1631_v8 = vsel %vm5536_vm3, %v5237_v30, %v1628_v38  ;;  %vm1784_vm6 = vcmp.lt.s32.totalorder %v1764_v44, 2 }
 0x187   :  { %v1505_v26 = vsub.s32 0, %v5561_v34  ;;  %vm1786_vm7 = vcmp.lt.s32.totalorder %v1764_v44, 4  ;;  %v1782_v50 = vor.u32 %v1781_v27, %v1780_v63  ;;  %vm1785_vm8 = vcmp.lt.s32.totalorder %v1764_v44, 3 }
 0x188   :  { %v1791_v19 = vsel %vm1783_vm5, %v1770_v17, %v1773_v49  ;;  %v1792_v11 = vsel %vm1786_vm7, %v1779_v25, 920167782  ;;  %v1767_v13 = vshrl.u32 %v7270_v36, %v1766_v1  ;;  %v1788_v32 = vsel %vm1786_vm7, %v1776_v58, 2102212464 }
 0x189   :  { %v3988_v16 = vmin.u32 %v1505_v26, %v5561_v34  ;;  %v1793_v40 = vsel %vm1785_vm8, %v1776_v58, %v1792_v11  ;;  %v1795_v4 = vsel %vm1783_vm5, %v1773_v49, %v1776_v58  ;;  %v1796_v12 = vsel %vm1786_vm7, %v1782_v50, 1326507024 }
 0x18a   :  { %v1794_v18 = vsel %vm1784_vm6, %v1791_v19, %v1793_v40  ;;  %v1799_v14 = vshll.u32 %v1759_v35, 8  ;;  %v1630_v59 = vsel %vm1545_vm4, %v1629_v55, %v5428_v53  ;;  %4635 = vcosq.f32 %v1631_v8 }
 0x18b   :  { %v1507_v56 = vclz %v3988_v16  ;;  %v1787_v3 = vsel %vm1783_vm5, %v1767_v13, %v1770_v17  ;;  %v1789_v45 = vsel %vm1785_vm8, %v1773_v49, %v1788_v32  ;;  %v1797_v1 = vsel %vm1785_vm8, %v1779_v25, %v1796_v12 }
 0x18c   :  { %v5585_v0 = vmul.u32.u64.low %v1799_v14, %v1794_v18  ;;  %v5586_v52 = vmul.u32.u64.high %v1799_v14, %v1794_v18, %v5585_v0  ;;  %v1525_v24 = vsub.s32 4, %v5545_v2  ;;  %v1798_v10 = vsel %vm1784_vm6, %v1795_v4, %v1797_v1 }
 0x18d   :  { %v3989_v38 = vadd.s32 4294967294, %v1507_v56  ;;  %v1650_v51 = vand.u32 2139095040, %v5565_v28  ;;  %v7287_v53 = vand.u32 2147483647, %v5333_v22  ;;  %vm1441_vm10 = vcmp.lt.s32.totalorder %v5333_v22, 0 }
 0x18e   :  { %v5599_v17 = vmul.u32.u64.low %v1799_v14, %v1798_v10  ;;  %v5600_v49 = vmul.u32.u64.high %v1799_v14, %v1798_v10, %v5599_v17  ;;  %v1314_v7 = vmul.f32 %v1313_v23, %v1311_v47  ;;  %v1790_v35 = vsel %vm1784_vm6, %v1787_v3, %v1789_v45  ;;  %v4359_v23 = vpop.f32.mrf.mxu0 }
 0x18f   :  { %vm5594_vm9 = vcmp.le.f32.partialorder %v7287_v53, 0.7853982  ;;  %vm3990_vm11 = vcmp.lt.s32.totalorder %v3989_v38, 0  ;;  %v1651_v58 = vshrl.u32 %v1650_v51, 23  ;;  %v1632_v25 = vsel %vm5536_vm3, 0, %v1630_v59  ;;  %v7292_v51 = vld [vmem:[#allocation18_spill] sm:$0xff] }
 0x190   :  { %v1495_v63 = vadd.s32 %v5495_v33, %v5501_v62  ;;  %v1510_v27 = vsel %vm3990_vm11, 0, %v3989_v38  ;;  %v1809_v26 = vadd.s32 1, %v5586_v52  ;;  %v1526_v11 = vsel %vm1441_vm10, %v1525_v24, %v5545_v2  ;;  %v7293_v53 = vld [vmem:[#allocation19_spill] sm:$0xff] }
 0x191   :  { %v1511_v50 = vsub.s32 32, %v1510_v27  ;;  %v1515_v19 = vsub.s32 4294967266, %v1510_v27  ;;  %v3995_v47 = vadd.s32 4294967169, %v1651_v58  ;;  %4637 = vsinq.f32 %v1631_v8 }
 0x192   :  { %v1806_v44 = vmul.u32 %v1799_v14, %v1790_v35  ;;  %vm1808_vm12 = vc.u32 %v5600_v49, %v5585_v0  ;;  %v1647_v57 = vand.u32 2147483647, %v5565_v28  ;;  %v1512_v33 = vshll.u32 %v5561_v34, %v1510_v27 }
 0x193   :  { %v1513_v62 = vshrl.u32 %v1495_v63, %v1511_v50  ;;  %v1516_v16 = vadd.s32 127, %v1515_v19  ;;  %v1810_v13 = vsel %vm1808_vm12, %v1809_v26, %v5586_v52  ;;  %v1528_v32 = vsel %vm5594_vm9, 0, %v1526_v11  ;;  %v4385_v52 = vpop.f32.mrf.mxu1 }
 0x194   :  { %v1811_v40 = vadd.s32 %v1810_v13, %v1806_v44  ;;  %v1657_v2 = vadd.s32 1, %v3995_v47  ;;  %v977_v18 = vadd.f32 %v4359_v23, %v5529_v5  ;;  %v5621_v8 = vadd.f32 %v5181_v37, %v5153_v46  ;;  %v7290_v46 = vld [vmem:[#allocation5_spill] sm:$0xff] }
 0x195   :  { %v5625_v4 = vadd.f32 %v5185_v43, %v5155_v60  ;;  %v1514_v34 = vor.u32 %v1513_v62, %v1512_v33  ;;  %v1517_v12 = vshll.u32 %v1516_v16, 23  ;;  %v1315_v14 = vxor.u32 2147483648, %v1314_v7  ;;  %v7291_v37 = vld [vmem:[#allocation9_spill] sm:$0xff] }
 0x196   :  { %v1636_v59 = vadd.s32 3, %v1632_v25  ;;  %v1812_v56 = vadd.s32 536870912, %v1811_v40  ;;  %vm1658_vm13 = vcmp.gt.s32.totalorder %v1657_v2, 0  ;;  %v1532_v45 = vadd.s32 3, %v1528_v32  ;;  %v7294_v25 = vld [vmem:[#allocation21_spill] sm:$0xff] }
 0x197   :  { %v1518_v3 = vor.u32 4788187, %v1517_v12  ;;  %v1654_v1 = vand.u32 8388607, %v1647_v57  ;;  %v1659_v5 = vsel %vm1658_vm13, %v1657_v2, 0  ;;  %v5629_v38 = vpop.eup %4635  ;;  %v5633_v24 = vadd.f32 %v7291_v37, %v7290_v46 }
 0x198   :  { %v5635_v60 = vshrl.u32 %v1812_v56, 30  ;;  %v1661_v43 = vand.u32 31, %v1659_v5  ;;  %v5637_v10 = vadd.f32 %v4385_v52, %v977_v18  ;;  %vm1233_vm14 = vcmp.lt.s32.totalorder %v7292_v51, 0 }
 0x199   :  { %v5642_v17 = vmul.f32 %v5422_v39, %v7293_v53  ;;  %v1519_v35 = vand.u32 2147483647, %v1518_v3  ;;  %v1521_v58 = vcvt.s32.f32 %v1514_v34  ;;  %v1317_v63 = vsub.s32 4, %v7294_v25 }
 0x19a   :  { %v5645_v27 = vand.u32 3, %v1636_v59  ;;  %v1814_v26 = vshll.u32 %v5635_v60, 30  ;;  %v1662_v50 = vsub.s32 32, %v1661_v43  ;;  %v5650_v19 = vsel %vm1233_vm14, %v1315_v14, %v1314_v7 }
 0x19b   :  { %v1522_v11 = vmul.f32 %v1521_v58, %v1519_v35  ;;  %v5652_v47 = vand.u32 3, %v1532_v45  ;;  %v1655_v23 = vor.u32 8388608, %v1654_v1  ;;  %v1643_v44 = vxor.u32 2147483648, %v5629_v38 }
 0x19c   :  { %v5655_v33 = vsub.s32 %v1811_v40, %v1814_v26  ;;  %v1665_v62 = vshrl.u32 %v7271_v6, %v1662_v50  ;;  %v5660_v16 = vadd.f32 %v5213_v20, %v5637_v10  ;;  %v1664_v32 = vshll.u32 %v7270_v36, %v1661_v43 }
 0x19d   :  { %v1523_v13 = vxor.u32 2147483648, %v1522_v11  ;;  %v1668_v7 = vshrl.u32 %v7272_v54, %v1662_v50  ;;  %v1671_v2 = vshrl.u32 %v7273_v48, %v1662_v50  ;;  %vm1642_vm15 = vcmp.eq.s32.totalorder %v5645_v27, 2 }
 0x19e   :  { %v1817_v18 = vsub.s32 0, %v5655_v33  ;;  %v1660_v34 = vshrl.u32 %v1659_v5, 5  ;;  %v1667_v40 = vshll.u32 %v7271_v6, %v1661_v43  ;;  %v1670_v12 = vshll.u32 %v7272_v54, %v1661_v43  ;;  %v4638_v14 = vpop.eup %4637 }
 0x19f   :  { %vm1639_vm0 = vcmp.eq.s32.totalorder %v5645_v27, 0  ;;  %v1524_v20 = vsel %vm1441_vm10, %v1523_v13, %v1522_v11  ;;  %v1666_v59 = vor.u32 %v1665_v62, %v1664_v32  ;;  %v1673_v56 = vshll.u32 %v7273_v48, %v1661_v43 }
 0x1a0   :  { %v1674_v3 = vshrl.u32 %v7274_v21, %v1662_v50  ;;  %v1527_v45 = vsel %vm5594_vm9, %v5333_v22, %v1524_v20  ;;  %v4000_v1 = vmin.u32 %v1817_v18, %v5655_v33  ;;  %v1669_v5 = vor.u32 %v1668_v7, %v1667_v40 }
 0x1a1   :  { %v1672_v52 = vor.u32 %v1671_v2, %v1670_v12  ;;  %4639 = vcosq.f32 %v1527_v45  ;;  %v1676_v37 = vshll.u32 %v7274_v21, %v1661_v43  ;;  %v1677_v53 = vshrl.u32 %v7275_v61, %v1662_v50 }
 0x1a2   :  { %v1675_v46 = vor.u32 %v1674_v3, %v1673_v56  ;;  %v7295_v35 = vand.u32 2147483647, %v7292_v51  ;;  %v1640_v26 = vxor.u32 2147483648, %v4638_v14  ;;  %4641 = vsinq.f32 %v1527_v45 }
 0x1a3   :  { %v1819_v55 = vclz %v4000_v1  ;;  %v1695_v11 = vshll.u32 %v1655_v23, 8  ;;  %v1663_v62 = vshrl.u32 %v7270_v36, %v1662_v50  ;;  %v1678_v13 = vor.u32 %v1677_v53, %v1676_v37  ;;  %v970_v1 = vpop.f32.mrf.mxu0 }
 0x1a4   :  { %vm5682_vm1 = vcmp.le.f32.partialorder %v7295_v35, 0.7853982  ;;  %vm1679_vm2 = vcmp.lt.s32.totalorder %v1660_v34, 1  ;;  %v1962_v32 = vand.u32 2139095040, %v5660_v16  ;;  %vm1681_vm3 = vcmp.lt.s32.totalorder %v1660_v34, 3 }
 0x1a5   :  { %v4001_v7 = vadd.s32 4294967294, %v1819_v55  ;;  %vm1682_vm4 = vcmp.lt.s32.totalorder %v1660_v34, 4  ;;  %v1687_v43 = vsel %vm1679_vm2, %v1666_v59, %v1669_v5  ;;  %v1691_v40 = vsel %vm1679_vm2, %v1669_v5, %v1672_v52 }
 0x1a6   :  { %v1684_v2 = vsel %vm1682_vm4, %v1672_v52, 2102212464  ;;  %v1688_v18 = vsel %vm1682_vm4, %v1675_v46, 920167782  ;;  %v1692_v12 = vsel %vm1682_vm4, %v1678_v13, 1326507024  ;;  %vm1635_vm5 = vweird.f32 %v5237_v30 }
 0x1a7   :  { %vm4002_vm6 = vcmp.lt.s32.totalorder %v4001_v7, 0  ;;  %vm1680_vm7 = vcmp.lt.s32.totalorder %v1660_v34, 2  ;;  %v1689_v50 = vsel %vm1681_vm3, %v1672_v52, %v1688_v18  ;;  %v1693_v23 = vsel %vm1681_vm3, %v1675_v46, %v1692_v12 }
 0x1a8   :  { %v1644_v20 = vsel %vm1642_vm15, %v1643_v44, %v4638_v14  ;;  %v1822_v56 = vsel %vm4002_vm6, 0, %v4001_v7  ;;  %v1690_v3 = vsel %vm1680_vm7, %v1687_v43, %v1689_v50  ;;  %v1694_v45 = vsel %vm1680_vm7, %v1691_v40, %v1693_v23 }
 0x1a9   :  { %v1641_v37 = vsel %vm1639_vm0, %v5629_v38, %v1640_v26  ;;  %v1827_v53 = vsub.s32 4294967266, %v1822_v56  ;;  %v1683_v35 = vsel %vm1679_vm2, %v1663_v62, %v1666_v59  ;;  %v1685_v52 = vsel %vm1681_vm3, %v1669_v5, %v1684_v2 }
 0x1aa   :  { %v5702_v55 = vmul.u32.u64.low %v1695_v11, %v1694_v45  ;;  %v5703_v46 = vmul.u32.u64.high %v1695_v11, %v1694_v45, %v5702_v55  ;;  %v5705_v13 = vmul.u32.u64.low %v1695_v11, %v1690_v3  ;;  %v5706_v44 = vmul.u32.u64.high %v1695_v11, %v1690_v3, %v5705_v13 }
 0x1ab   :  { %v5714_v14 = vsel %vm1233_vm14, %v1317_v63, %v7294_v25  ;;  %v1828_v38 = vadd.s32 127, %v1827_v53  ;;  %v1963_v26 = vshrl.u32 %v1962_v32, 23  ;;  %v971_v59 = vadd.f32 %v970_v1, %v5532_v15 }
 0x1ac   :  { %v1319_v5 = vsel %vm5682_vm1, %v7292_v51, %v5650_v19  ;;  %vm1638_vm8 = vcmp.lt.s32.totalorder %v5645_v27, 2  ;;  %vm1531_vm9 = vweird.f32 %v5333_v22  ;;  %v1823_v62 = vsub.s32 32, %v1822_v56  ;;  %v1132_v19 = vpop.f32.mrf.mxu1 }
 0x1ad   :  { %v1686_v7 = vsel %vm1680_vm7, %v1683_v35, %v1685_v52  ;;  %v1645_v43 = vsel %vm1638_vm8, %v1641_v37, %v1644_v20  ;;  %vm1534_vm10 = vcmp.lt.s32.totalorder %v5652_v47, 2  ;;  %vm1535_vm11 = vcmp.eq.s32.totalorder %v5652_v47, 0 }
 0x1ae   :  { %v4007_v25 = vadd.s32 4294967169, %v1963_v26  ;;  %v1807_v15 = vadd.s32 %v5585_v0, %v5600_v49  ;;  %v1829_v63 = vshll.u32 %v1828_v38, 23  ;;  %vm1704_vm12 = vc.u32 %v5703_v46, %v5705_v13  ;;  %v4640_v32 = vpop.eup %4639 }
 0x1af   :  { %v1705_v27 = vadd.s32 1, %v5706_v44  ;;  %v1702_v2 = vmul.u32 %v1695_v11, %v1686_v7  ;;  %v7247_v34 = vand.u32 2147483647, %v5660_v16  ;;  %v5732_v40 = vadd.f32 %v1132_v19, %v971_v59  ;;  %v4642_v12 = vpop.eup %4641  ;;  %v7298_v59 = vld [vmem:[#allocation20_spill] sm:$0xff] }
 0x1b0   :  { %v1969_v18 = vadd.s32 1, %v4007_v25  ;;  %v1646_v50 = vsel %vm1635_vm5, nan, %v1645_v43  ;;  %v1539_v23 = vxor.u32 2147483648, %v4640_v32  ;;  %v1825_v0 = vshrl.u32 %v1807_v15, %v1823_v62 }
 0x1b1   :  { %v1706_v49 = vsel %vm1704_vm12, %v1705_v27, %v5706_v44  ;;  %v1536_v20 = vxor.u32 2147483648, %v4642_v12  ;;  %vm1538_vm13 = vcmp.eq.s32.totalorder %v5652_v47, 2  ;;  %v1824_v11 = vshll.u32 %v5655_v33, %v1822_v56  ;;  %v5749_v33 = vld [vmem:[%s7217_s2 + $0x8] ss:$0 sm:$0xff] }
 0x1b2   :  { %v1707_v3 = vadd.s32 %v1706_v49, %v1702_v2  ;;  %vm1970_vm14 = vcmp.gt.s32.totalorder %v1969_v18, 0  ;;  %v1540_v45 = vsel %vm1538_vm13, %v1539_v23, %v4642_v12  ;;  %v1830_v1 = vor.u32 4788187, %v1829_v63 }
 0x1b3   :  { %v1971_v37 = vsel %vm1970_vm14, %v1969_v18, 0  ;;  %v2902_v53 = vmul.f32 %v5439_v9, %v1646_v50  ;;  %v1537_v30 = vsel %vm1535_vm11, %v4640_v32, %v1536_v20  ;;  %v1966_v52 = vand.u32 8388607, %v7247_v34 }
 0x1b4   :  { %v1708_v35 = vadd.s32 536870912, %v1707_v3  ;;  %v1541_v55 = vsel %vm1534_vm10, %v1537_v30, %v1540_v45  ;;  %v1826_v44 = vor.u32 %v1825_v0, %v1824_v11  ;;  %v1973_v38 = vand.u32 31, %v1971_v37 }
 0x1b5   :  { %v5753_v56 = vadd.f32 %v5749_v33, %v5732_v40  ;;  %v1320_v26 = vsel %vm5682_vm1, 0, %v5714_v14  ;;  %v1196_v62 = vmul.f32 %v5422_v39, %v7298_v59  ;;  %v1542_v47 = vsel %vm1531_vm9, nan, %v1541_v55 }
 0x1b6   :  { %v5762_v7 = vshrl.u32 %v1708_v35, 30  ;;  %4643 = vcosq.f32 %v1319_v5  ;;  %v2901_v43 = vmul.f32 %v5439_v9, %v1542_v47  ;;  %v1831_v25 = vand.u32 2147483647, %v1830_v1  ;;  %v7299_v35 = vld [vmem:[#allocation6_spill] sm:$0xff] }
 0x1b7   :  { %v1974_v15 = vsub.s32 32, %v1973_v38  ;;  %4645 = vsinq.f32 %v1319_v5  ;;  %v5766_v63 = vadd.f32 %v2902_v53, %v5642_v17  ;;  %v1967_v14 = vor.u32 8388608, %v1966_v52  ;;  %v7300_v52 = vld [vmem:[#allocation11_spill] sm:$0xff] }
 0x1b8   :  { %v1710_v58 = vshll.u32 %v5762_v7, 30  ;;  %v5769_v27 = vadd.f32 %v2901_v43, %v1196_v62  ;;  %v1833_v19 = vcvt.s32.f32 %v1826_v44  ;;  %v1858_v32 = vand.u32 2139095040, %v5753_v56 }
 0x1b9   :  { %v1977_v22 = vshrl.u32 %v7271_v6, %v1974_v15  ;;  %v1976_v18 = vshll.u32 %v7270_v36, %v1973_v38  ;;  %v1979_v12 = vshll.u32 %v7271_v6, %v1973_v38  ;;  %v1980_v5 = vshrl.u32 %v7272_v54, %v1974_v15 }
 0x1ba   :  { %v5773_v2 = vsub.s32 %v1707_v3, %v1710_v58  ;;  %v1834_v50 = vmul.f32 %v1833_v19, %v1831_v25  ;;  %v1972_v23 = vshrl.u32 %v1971_v37, 5  ;;  %v1982_v0 = vshll.u32 %v7272_v54, %v1973_v38 }
 0x1bb   :  { %v1978_v20 = vor.u32 %v1977_v22, %v1976_v18  ;;  %v1981_v45 = vor.u32 %v1980_v5, %v1979_v12  ;;  %v1983_v3 = vshrl.u32 %v7273_v48, %v1974_v15  ;;  %v1985_v11 = vshll.u32 %v7273_v48, %v1973_v38 }
 0x1bc   :  { %v1713_v49 = vsub.s32 0, %v5773_v2  ;;  %v1986_v1 = vshrl.u32 %v7274_v21, %v1974_v15  ;;  %v1988_v53 = vshll.u32 %v7274_v21, %v1973_v38  ;;  %v1989_v30 = vshrl.u32 %v7275_v61, %v1974_v15 }
 0x1bd   :  { %v632_v55 = vadd.f32 %v7300_v52, %v7299_v35  ;;  %v1324_v37 = vadd.s32 3, %v1320_v26  ;;  %v1984_v59 = vor.u32 %v1983_v3, %v1982_v0  ;;  %v2007_v43 = vshll.u32 %v1967_v14, 8 }
 0x1be   :  { %v3996_v44 = vmin.u32 %v1713_v49, %v5773_v2  ;;  %v1987_v62 = vor.u32 %v1986_v1, %v1985_v11  ;;  %v1990_v47 = vor.u32 %v1989_v30, %v1988_v53  ;;  %v1859_v25 = vshrl.u32 %v1858_v32, 23 }
 0x1bf   :  { %v1835_v58 = vxor.u32 2147483648, %v1834_v50  ;;  %vm1991_vm15 = vcmp.lt.s32.totalorder %v1972_v23, 1  ;;  %vm1994_vm0 = vcmp.lt.s32.totalorder %v1972_v23, 4  ;;  %vm1992_vm1 = vcmp.lt.s32.totalorder %v1972_v23, 2 }
 0x1c0   :  { %v1715_v19 = vclz %v3996_v44  ;;  %vm1993_vm2 = vcmp.lt.s32.totalorder %v1972_v23, 3  ;;  %v1999_v38 = vsel %vm1991_vm15, %v1978_v20, %v1981_v45  ;;  %v2000_v22 = vsel %vm1994_vm0, %v1987_v62, 920167782 }
 0x1c1   :  { %v1996_v12 = vsel %vm1994_vm0, %v1984_v59, 2102212464  ;;  %v2001_v26 = vsel %vm1993_vm2, %v1984_v59, %v2000_v22  ;;  %v2003_v5 = vsel %vm1991_vm15, %v1981_v45, %v1984_v59  ;;  %v1975_v0 = vshrl.u32 %v7270_v36, %v1974_v15  ;;  %v7301_v59 = vld [vmem:[#allocation7_spill] sm:$0xff] }
 0x1c2   :  { %v3997_v18 = vadd.s32 4294967294, %v1715_v19  ;;  %v2002_v14 = vsel %vm1992_vm1, %v1999_v38, %v2001_v26  ;;  %v2004_v32 = vsel %vm1994_vm0, %v1990_v47, 1326507024  ;;  %v4003_v49 = vadd.s32 4294967169, %v1859_v25  ;;  %v7302_v25 = vld [vmem:[#allocation8_spill] sm:$0xff]  ;;  %v7303_v19 = vld [vmem:[#allocation10_spill] sm:$0xff] }
 0x1c3   :  { %v5795_v3 = vpop.eup %4643  ;;  %v2005_v11 = vsel %vm1993_vm2, %v1987_v62, %v2004_v32  ;;  %v5798_v1 = vmul.u32.u64.low %v2007_v43, %v2002_v14  ;;  %v5799_v53 = vmul.u32.u64.high %v2007_v43, %v2002_v14, %v5798_v1  ;;  %v1995_v52 = vsel %vm1991_vm15, %v1975_v0, %v1978_v20 }
 0x1c4   :  { %vm3998_vm3 = vcmp.lt.s32.totalorder %v3997_v18, 0  ;;  %v5802_v30 = vpop.eup %4645  ;;  %v1997_v15 = vsel %vm1993_vm2, %v1981_v45, %v1996_v12  ;;  %v2006_v44 = vsel %vm1992_vm1, %v2003_v5, %v2005_v11  ;;  %v813_v47 = vadd.f32 %v7301_v59, %v5621_v8  ;;  %v4362_v5 = vpop.f32.mrf.mxu0 }
 0x1c5   :  { %v5804_v35 = vsel %vm3998_vm3, 0, %v3997_v18  ;;  %v5813_v62 = vadd.f32 %v7302_v25, %v5625_v4  ;;  %v5817_v38 = vadd.f32 %v7303_v19, %v5633_v24  ;;  %v1865_v22 = vadd.s32 1, %v4003_v49  ;;  %v7304_v18 = vld [vmem:[#allocation12_spill] sm:$0xff]  ;;  %v7305_v24 = vld [vmem:[#allocation17_spill] sm:$0xff]  ;;  %v4388_v19 = vpop.f32.mrf.mxu1 }
 0x1c6   :  { %v5820_v26 = vadd.f32 %v7304_v18, %v632_v55  ;;  %v1723_v20 = vsub.s32 4294967266, %v5804_v35  ;;  %v5823_v45 = vmul.u32.u64.low %v2007_v43, %v2006_v44  ;;  %v5824_v12 = vmul.u32.u64.high %v2007_v43, %v2006_v44, %v5823_v45 }
 0x1c7   :  { %v5826_v0 = vand.u32 3, %v1324_v37  ;;  %vm1753_vm4 = vcmp.lt.s32.totalorder %v5419_v31, 0  ;;  %v1998_v8 = vsel %vm1992_vm1, %v1995_v52, %v1997_v15  ;;  %v2017_v4 = vadd.s32 1, %v5799_v53 }
 0x1c8   :  { %v5833_v14 = vmul.f32 %v5422_v39, %v7305_v24  ;;  %v1331_v55 = vxor.u32 2147483648, %v5795_v3  ;;  %v1836_v32 = vsel %vm1753_vm4, %v1835_v58, %v1834_v50  ;;  %vm1866_vm5 = vcmp.gt.s32.totalorder %v1865_v22, 0 }
 0x1c9   :  { %v1837_v49 = vsub.s32 4, %v5635_v60  ;;  %v7246_v37 = vand.u32 2147483647, %v5753_v56  ;;  %v1867_v11 = vsel %vm1866_vm5, %v1865_v22, 0  ;;  %v989_v44 = vadd.f32 %v4362_v5, %v813_v47 }
 0x1ca   :  { %vm5842_vm6 = vcmp.le.f32.partialorder %v1751_v29, 0.7853982  ;;  %v1724_v52 = vadd.s32 127, %v1723_v20  ;;  %v2014_v15 = vmul.u32 %v2007_v43, %v1998_v8  ;;  %vm2016_vm7 = vc.u32 %v5824_v12, %v5798_v1 }
 0x1cb   :  { %vm1327_vm8 = vcmp.eq.s32.totalorder %v5826_v0, 0  ;;  %vm1330_vm9 = vcmp.eq.s32.totalorder %v5826_v0, 2  ;;  %v1839_v50 = vsel %vm5842_vm6, %v5419_v31, %v1836_v32  ;;  %v1719_v58 = vsub.s32 32, %v5804_v35 }
 0x1cc   :  { %v2018_v29 = vsel %vm2016_vm7, %v2017_v4, %v5799_v53  ;;  %v1328_v59 = vxor.u32 2147483648, %v5802_v30  ;;  %v5857_v47 = vsel %vm1330_vm9, %v1331_v55, %v5802_v30  ;;  %v1869_v25 = vand.u32 31, %v1867_v11 }
 0x1cd   :  { %v2019_v43 = vadd.s32 %v2018_v29, %v2014_v15  ;;  %v1838_v22 = vsel %vm1753_vm4, %v1837_v49, %v5635_v60  ;;  %v1703_v18 = vadd.s32 %v5705_v13, %v5703_v46  ;;  %v1862_v20 = vand.u32 8388607, %v7246_v37 }
 0x1ce   :  { %v5866_v45 = vadd.f32 %v4388_v19, %v989_v44  ;;  %4647 = vcosq.f32 %v1839_v50  ;;  %v1725_v53 = vshll.u32 %v1724_v52, 23  ;;  %v1870_v30 = vsub.s32 32, %v1869_v25 }
 0x1cf   :  { %v2020_v5 = vadd.s32 536870912, %v2019_v43  ;;  %4649 = vsinq.f32 %v1839_v50  ;;  %v1720_v8 = vshll.u32 %v5773_v2, %v5804_v35  ;;  %v1721_v4 = vshrl.u32 %v1703_v18, %v1719_v58 }
 0x1d0   :  { %v5870_v24 = vshrl.u32 %v1867_v11, 5  ;;  %v1872_v46 = vshll.u32 %v7270_v36, %v1869_v25  ;;  %v1873_v13 = vshrl.u32 %v7271_v6, %v1870_v30  ;;  %v1876_v55 = vshrl.u32 %v7272_v54, %v1870_v30 }
 0x1d1   :  { %v5872_v60 = vshrl.u32 %v2020_v5, 30  ;;  %v1875_v32 = vshll.u32 %v7271_v6, %v1869_v25  ;;  %v1879_v49 = vshrl.u32 %v7273_v48, %v1870_v30  ;;  %v1881_v44 = vshll.u32 %v7273_v48, %v1869_v25 }
 0x1d2   :  { %v1882_v52 = vshrl.u32 %v7274_v21, %v1870_v30  ;;  %v1726_v2 = vor.u32 4788187, %v1725_v53  ;;  %v1878_v11 = vshll.u32 %v7272_v54, %v1869_v25  ;;  %v1884_v15 = vshll.u32 %v7274_v21, %v1869_v25 }
 0x1d3   :  { %v2022_v35 = vshll.u32 %v5872_v60, 30  ;;  %v1874_v50 = vor.u32 %v1873_v13, %v1872_v46  ;;  %v1877_v58 = vor.u32 %v1876_v55, %v1875_v32  ;;  %v1885_v19 = vshrl.u32 %v7275_v61, %v1870_v30 }
 0x1d4   :  { %v1883_v29 = vor.u32 %v1882_v52, %v1881_v44  ;;  %vm1326_vm10 = vcmp.lt.s32.totalorder %v5826_v0, 2  ;;  %v1329_v18 = vsel %vm1327_vm8, %v5795_v3, %v1328_v59  ;;  %v1840_v53 = vsel %vm5842_vm6, 0, %v1838_v22 }
 0x1d5   :  { %v5891_v5 = vsub.s32 %v2019_v43, %v2022_v35  ;;  %v1880_v17 = vor.u32 %v1879_v49, %v1878_v11  ;;  %v1722_v37 = vor.u32 %v1721_v4, %v1720_v8  ;;  %v1863_v34 = vor.u32 8388608, %v1862_v20 }
 0x1d6   :  { %v1886_v25 = vor.u32 %v1885_v19, %v1884_v15  ;;  %v5895_v46 = vadd.f32 %v5749_v33, %v5866_v45  ;;  %v1727_v13 = vand.u32 2147483647, %v1726_v2  ;;  %vm1887_vm11 = vcmp.lt.s32.totalorder %v5870_v24, 1 }
 0x1d7   :  { %v2025_v55 = vsub.s32 0, %v5891_v5  ;;  %vm1890_vm12 = vcmp.lt.s32.totalorder %v5870_v24, 4  ;;  %vm1323_vm13 = vweird.f32 %v7292_v51  ;;  %vm1888_vm14 = vcmp.lt.s32.totalorder %v5870_v24, 2 }
 0x1d8   :  { %vm1889_vm15 = vcmp.lt.s32.totalorder %v5870_v24, 3  ;;  %v1895_v3 = vsel %vm1887_vm11, %v1874_v50, %v1877_v58  ;;  %v1896_v23 = vsel %vm1890_vm12, %v1883_v29, 920167782  ;;  %v1871_v43 = vshrl.u32 %v7270_v36, %v1870_v30 }
 0x1d9   :  { %v4008_v59 = vmin.u32 %v2025_v55, %v5891_v5  ;;  %v1892_v22 = vsel %vm1890_vm12, %v1880_v17, 2102212464  ;;  %v1897_v20 = vsel %vm1889_vm15, %v1880_v17, %v1896_v23  ;;  %v1899_v4 = vsel %vm1887_vm11, %v1877_v58, %v1880_v17 }
 0x1da   :  { %v1898_v8 = vsel %vm1888_vm14, %v1895_v3, %v1897_v20  ;;  %v1900_v32 = vsel %vm1890_vm12, %v1886_v25, 1326507024  ;;  %v1903_v49 = vshll.u32 %v1863_v34, 8  ;;  %v1844_v44 = vadd.s32 3, %v1840_v53 }
 0x1db   :  { %v1729_v52 = vcvt.s32.f32 %v1722_v37  ;;  %v2027_v2 = vclz %v4008_v59  ;;  %v1891_v35 = vsel %vm1887_vm11, %v1871_v43, %v1874_v50  ;;  %v4648_v11 = vpop.eup %4647  ;;  %v1893_v30 = vsel %vm1889_vm15, %v1877_v58, %v1892_v22  ;;  %v7308_v58 = vld [vmem:[#allocation22_spill] sm:$0xff] }
 0x1dc   :  { %v1901_v15 = vsel %vm1889_vm15, %v1883_v29, %v1900_v32  ;;  %v5919_v19 = vmul.u32.u64.low %v1903_v49, %v1898_v8  ;;  %v5920_v55 = vmul.u32.u64.high %v1903_v49, %v1898_v8, %v5919_v19  ;;  %v4650_v17 = vpop.eup %4649  ;;  %v2170_v53 = vand.u32 2139095040, %v5895_v46 }
 0x1dd   :  { %v1730_v25 = vmul.f32 %v1729_v52, %v1727_v13  ;;  %v4009_v34 = vadd.s32 4294967294, %v2027_v2  ;;  %v1902_v37 = vsel %vm1888_vm14, %v1899_v4, %v1901_v15  ;;  %v1333_v50 = vsel %vm1326_vm10, %v1329_v18, %v5857_v47 }
 0x1de   :  { %v5931_v3 = vmul.f32 %v5422_v39, %v7308_v58  ;;  %v5933_v29 = vmul.u32.u64.low %v1903_v49, %v1902_v37  ;;  %v5934_v23 = vmul.u32.u64.high %v1903_v49, %v1902_v37, %v5933_v29  ;;  %v5938_v13 = vmul.f32 %v5422_v39, %v5549_v41  ;;  %v1144_v41 = vpop.f32.mrf.mxu1 }
 0x1df   :  { %vm4010_vm0 = vcmp.lt.s32.totalorder %v4009_v34, 0  ;;  %v1894_v59 = vsel %vm1888_vm14, %v1891_v35, %v1893_v30  ;;  %v2171_v43 = vshrl.u32 %v2170_v53, 23  ;;  %v1845_v22 = vand.u32 3, %v1844_v44  ;;  %v982_v35 = vpop.f32.mrf.mxu0 }
 0x1e0   :  { %v1733_v0 = vsub.s32 4, %v5762_v7  ;;  %v2030_v47 = vsel %vm4010_vm0, 0, %v4009_v34  ;;  %v1913_v18 = vadd.s32 1, %v5920_v55  ;;  %v1334_v20 = vsel %vm1323_vm13, nan, %v1333_v50 }
 0x1e1   :  { %v1731_v8 = vxor.u32 2147483648, %v1730_v25  ;;  %v2035_v4 = vsub.s32 4294967266, %v2030_v47  ;;  %v4015_v32 = vadd.s32 4294967169, %v2171_v43  ;;  %vm5948_vm1 = vcmp.le.f32.partialorder %v1647_v57, 0.7853982 }
 0x1e2   :  { %vm1649_vm2 = vcmp.lt.s32.totalorder %v5565_v28, 0  ;;  %v1910_v24 = vmul.u32 %v1903_v49, %v1894_v59  ;;  %vm1912_vm3 = vc.u32 %v5934_v23, %v5919_v19  ;;  %v1848_v44 = vxor.u32 2147483648, %v4650_v17 }
 0x1e3   :  { %v1851_v52 = vxor.u32 2147483648, %v4648_v11  ;;  %v1914_v51 = vsel %vm1912_vm3, %v1913_v18, %v5920_v55  ;;  %v2177_v2 = vadd.s32 1, %v4015_v32  ;;  %v2899_v30 = vmul.f32 %v5439_v9, %v1334_v20 }
 0x1e4   :  { %vm1847_vm4 = vcmp.eq.s32.totalorder %v1845_v22, 0  ;;  %v1734_v57 = vsel %vm1649_vm2, %v1733_v0, %v5762_v7  ;;  %v1915_v15 = vadd.s32 %v1914_v51, %v1910_v24  ;;  %v1732_v34 = vsel %vm1649_vm2, %v1731_v8, %v1730_v25 }
 0x1e5   :  { %v2031_v37 = vsub.s32 32, %v2030_v47  ;;  %v2036_v53 = vadd.s32 127, %v2035_v4  ;;  %vm2178_vm5 = vcmp.gt.s32.totalorder %v2177_v2, 0  ;;  %vm1850_vm6 = vcmp.eq.s32.totalorder %v1845_v22, 2 }
 0x1e6   :  { %v1916_v49 = vadd.s32 536870912, %v1915_v15  ;;  %v2179_v50 = vsel %vm2178_vm5, %v2177_v2, 0  ;;  %v983_v58 = vadd.f32 %v982_v35, %v5813_v62  ;;  %v1849_v29 = vsel %vm1847_vm4, %v4648_v11, %v1848_v44  ;;  %v4365_v35 = vpop.f32.mrf.mxu0 }
 0x1e7   :  { %v1852_v59 = vsel %vm1850_vm6, %v1851_v52, %v4650_v17  ;;  %v1736_v55 = vsel %vm5948_vm1, 0, %v1734_v57  ;;  %v2015_v43 = vadd.s32 %v5798_v1, %v5824_v12  ;;  %v1735_v7 = vsel %vm5948_vm1, %v5565_v28, %v1732_v34 }
 0x1e8   :  { %v5966_v25 = vshrl.u32 %v1916_v49, 30  ;;  %v7248_v0 = vand.u32 2147483647, %v5895_v46  ;;  %v2181_v18 = vand.u32 31, %v2179_v50  ;;  %v5970_v20 = vadd.f32 %v2899_v30, %v5833_v14 }
 0x1e9   :  { %v5974_v62 = vmul.f32 %v5422_v39, %v5637_v10  ;;  %v2033_v11 = vshrl.u32 %v2015_v43, %v2031_v37  ;;  %v2037_v17 = vshll.u32 %v2036_v53, 23  ;;  %vm1846_vm7 = vcmp.lt.s32.totalorder %v1845_v22, 2 }
 0x1ea   :  { %v5976_v1 = vadd.s32 3, %v1736_v55  ;;  %v1918_v12 = vshll.u32 %v5966_v25, 30  ;;  %v2182_v8 = vsub.s32 32, %v2181_v18  ;;  %v5979_v4 = vsel %vm1846_vm7, %v1849_v29, %v1852_v59 }
 0x1eb   :  { %4651 = vcosq.f32 %v1735_v7  ;;  %v2032_v32 = vshll.u32 %v5891_v5, %v2030_v47  ;;  %v2045_v14 = vsub.s32 4, %v5872_v60  ;;  %v2174_v10 = vand.u32 8388607, %v7248_v0 }
 0x1ec   :  { %4653 = vsinq.f32 %v1735_v7  ;;  %v5983_v24 = vsub.s32 %v1915_v15, %v1918_v12  ;;  %v5987_v22 = vadd.f32 %v1144_v41, %v983_v58  ;;  %v2038_v52 = vor.u32 4788187, %v2037_v17 }
 0x1ed   :  { %v2034_v44 = vor.u32 %v2033_v11, %v2032_v32  ;;  %v2185_v51 = vshrl.u32 %v7271_v6, %v2182_v8  ;;  %v2188_v2 = vshrl.u32 %v7272_v54, %v2182_v8  ;;  %v2184_v47 = vshll.u32 %v7270_v36, %v2181_v18 }
 0x1ee   :  { %v1921_v5 = vsub.s32 0, %v5983_v24  ;;  %v2187_v30 = vshll.u32 %v7271_v6, %v2181_v18  ;;  %v2191_v57 = vshrl.u32 %v7273_v48, %v2182_v8  ;;  %v2180_v15 = vshrl.u32 %v2179_v50, 5 }
 0x1ef   :  { %v2190_v34 = vshll.u32 %v7272_v54, %v2181_v18  ;;  %v2193_v37 = vshll.u32 %v7273_v48, %v2181_v18  ;;  %v2194_v53 = vshrl.u32 %v7274_v21, %v2182_v8  ;;  %v2186_v58 = vor.u32 %v2185_v51, %v2184_v47 }
 0x1f0   :  { %v4004_v49 = vmin.u32 %v1921_v5, %v5983_v24  ;;  %v2189_v29 = vor.u32 %v2188_v2, %v2187_v30  ;;  %v1001_v59 = vadd.f32 %v4365_v35, %v5817_v38  ;;  %v2196_v7 = vshll.u32 %v7274_v21, %v2181_v18 }
 0x1f1   :  { %v2192_v55 = vor.u32 %v2191_v57, %v2190_v34  ;;  %v2195_v43 = vor.u32 %v2194_v53, %v2193_v37  ;;  %v2197_v11 = vshrl.u32 %v7275_v61, %v2182_v8  ;;  %vm1843_vm8 = vweird.f32 %v5419_v31 }
 0x1f2   :  { %v2041_v50 = vcvt.s32.f32 %v2034_v44  ;;  %v1923_v17 = vclz %v4004_v49  ;;  %v2175_v12 = vor.u32 8388608, %v2174_v10  ;;  %v6005_v32 = vadd.f32 %v5749_v33, %v5987_v22 }
 0x1f3   :  { %v2039_v41 = vand.u32 2147483647, %v2038_v52  ;;  %v2198_v51 = vor.u32 %v2197_v11, %v2196_v7  ;;  %vm2199_vm9 = vcmp.lt.s32.totalorder %v2180_v15, 1  ;;  %vm2200_vm10 = vcmp.lt.s32.totalorder %v2180_v15, 2 }
 0x1f4   :  { %v4005_v38 = vadd.s32 4294967294, %v1923_v17  ;;  %vm2201_vm11 = vcmp.lt.s32.totalorder %v2180_v15, 3  ;;  %vm2202_vm12 = vcmp.lt.s32.totalorder %v2180_v15, 4  ;;  %v2207_v18 = vsel %vm2199_vm9, %v2186_v58, %v2189_v29 }
 0x1f5   :  { %v2204_v2 = vsel %vm2202_vm12, %v2192_v55, 2102212464  ;;  %v2208_v35 = vsel %vm2202_vm12, %v2195_v43, 920167782  ;;  %v2211_v5 = vsel %vm2199_vm9, %v2189_v29, %v2192_v55  ;;  %v2212_v44 = vsel %vm2202_vm12, %v2198_v51, 1326507024 }
 0x1f6   :  { %vm4006_vm13 = vcmp.lt.s32.totalorder %v4005_v38, 0  ;;  %v2183_v10 = vshrl.u32 %v7270_v36, %v2182_v8  ;;  %v2209_v47 = vsel %vm2201_vm11, %v2192_v55, %v2208_v35  ;;  %v2213_v52 = vsel %vm2201_vm11, %v2195_v43, %v2212_v44  ;;  %v4391_v35 = vpop.f32.mrf.mxu1 }
 0x1f7   :  { %v1926_v30 = vsel %vm4006_vm13, 0, %v4005_v38  ;;  %v2210_v57 = vsel %vm2200_vm10, %v2207_v18, %v2209_v47  ;;  %v2214_v34 = vsel %vm2200_vm10, %v2211_v5, %v2213_v52  ;;  %v2215_v37 = vshll.u32 %v2175_v12, 8 }
 0x1f8   :  { %v6014_v53 = vpop.eup %4651  ;;  %v2042_v49 = vmul.f32 %v2041_v50, %v2039_v41  ;;  %v1931_v7 = vsub.s32 4294967266, %v1926_v30  ;;  %v2203_v11 = vsel %vm2199_vm9, %v2183_v10, %v2186_v58  ;;  %v2205_v17 = vsel %vm2201_vm11, %v2189_v29, %v2204_v2 }
 0x1f9   :  { %v4654_v51 = vpop.eup %4653  ;;  %v6018_v8 = vmul.u32.u64.low %v2215_v37, %v2214_v34  ;;  %v6019_v0 = vmul.u32.u64.high %v2215_v37, %v2214_v34, %v6018_v8  ;;  %v6021_v55 = vmul.u32.u64.low %v2215_v37, %v2210_v57  ;;  %v6022_v43 = vmul.u32.u64.high %v2215_v37, %v2210_v57, %v6021_v55 }
 0x1fa   :  { %v7311_v38 = vand.u32 2147483647, %v5660_v16  ;;  %vm1961_vm15 = vcmp.lt.s32.totalorder %v5660_v16, 0  ;;  %v6034_v58 = vmul.f32 %v5422_v39, %v5732_v40  ;;  %v2066_v29 = vand.u32 2139095040, %v6005_v32 }
 0x1fb   :  { %v1854_v50 = vsel %vm1843_vm8, nan, %v5979_v4  ;;  %v6041_v41 = vand.u32 3, %v5976_v1  ;;  %v2046_v18 = vsel %vm1961_vm15, %v2045_v14, %v5872_v60  ;;  %v2206_v2 = vsel %vm2200_vm10, %v2203_v11, %v2205_v17 }
 0x1fc   :  { %vm6027_vm14 = vcmp.le.f32.partialorder %v7311_v38, 0.7853982  ;;  %v1927_v40 = vsub.s32 32, %v1926_v30  ;;  %v1932_v5 = vadd.s32 127, %v1931_v7  ;;  %v2067_v44 = vshrl.u32 %v2066_v29, 23 }
 0x1fd   :  { %v6049_v10 = vadd.f32 %v4391_v35, %v1001_v59  ;;  %v2043_v47 = vxor.u32 2147483648, %v2042_v49  ;;  %vm2224_vm0 = vc.u32 %v6019_v0, %v6021_v55  ;;  %v2225_v31 = vadd.s32 1, %v6022_v43 }
 0x1fe   :  { %v7249_v1 = vand.u32 2147483647, %v6005_v32  ;;  %v2048_v4 = vsel %vm6027_vm14, 0, %v2046_v18  ;;  %v1911_v60 = vadd.s32 %v5919_v19, %v5934_v23  ;;  %v2222_v14 = vmul.u32 %v2215_v37, %v2206_v2 }
 0x1ff   :  { %v4011_v15 = vadd.s32 4294967169, %v2067_v44  ;;  %v2904_v52 = vmul.f32 %v5439_v9, %v1854_v50  ;;  %vm1743_vm1 = vcmp.eq.s32.totalorder %v6041_v41, 0  ;;  %vm1857_vm2 = vcmp.lt.s32.totalorder %v5753_v56, 0 }
 0x200   :  { %v2226_v59 = vsel %vm2224_vm0, %v2225_v31, %v6022_v43  ;;  %v1929_v57 = vshrl.u32 %v1911_v60, %v1927_v40  ;;  %v1933_v34 = vshll.u32 %v1932_v5, 23  ;;  %v2044_v17 = vsel %vm1961_vm15, %v2043_v47, %v2042_v49 }
 0x201   :  { %v2227_v7 = vadd.s32 %v2226_v59, %v2222_v14  ;;  %v2073_v11 = vadd.s32 1, %v4011_v15  ;;  %v2052_v8 = vadd.s32 3, %v2048_v4  ;;  %v2070_v19 = vand.u32 8388607, %v7249_v1 }
 0x202   :  { %v6069_v23 = vadd.f32 %v5749_v33, %v6049_v10  ;;  %v1747_v37 = vxor.u32 2147483648, %v6014_v53  ;;  %v1928_v38 = vshll.u32 %v5983_v24, %v1926_v30  ;;  %v1744_v29 = vxor.u32 2147483648, %v4654_v51 }
 0x203   :  { %v2228_v43 = vadd.s32 536870912, %v2227_v7  ;;  %vm2074_vm3 = vcmp.gt.s32.totalorder %v2073_v11, 0  ;;  %vm1746_vm4 = vcmp.eq.s32.totalorder %v6041_v41, 2  ;;  %v1941_v50 = vsub.s32 4, %v5966_v25 }
 0x204   :  { %v2075_v49 = vsel %vm2074_vm3, %v2073_v11, 0  ;;  %v2047_v18 = vsel %vm6027_vm14, %v5660_v16, %v2044_v17  ;;  %v1930_v2 = vor.u32 %v1929_v57, %v1928_v38  ;;  %v1934_v35 = vor.u32 4788187, %v1933_v34 }
 0x205   :  { %v6078_v40 = vshrl.u32 %v2228_v43, 30  ;;  %v6082_v5 = vmul.f32 %v5422_v39, %v5866_v45  ;;  %v2071_v24 = vor.u32 8388608, %v2070_v19  ;;  %v2077_v30 = vand.u32 31, %v2075_v49 }
 0x206   :  { %v2378_v44 = vand.u32 2139095040, %v6069_v23  ;;  %v6086_v47 = vadd.f32 %v2904_v52, %v5931_v3  ;;  %v6088_v31 = vsel %vm1746_vm4, %v1747_v37, %v4654_v51  ;;  %v6090_v4 = vand.u32 3, %v2052_v8 }
 0x207   :  { %7314 = vst [vmem:[#allocation5_spill] sm:$0xff] %v6082_v5  ;;  %v2230_v12 = vshll.u32 %v6078_v40, 30  ;;  %v6096_v60 = vsel %vm1743_vm1, %v6014_v53, %v1744_v29  ;;  %4655 = vcosq.f32 %v2047_v18  ;;  %v6101_v45 = vsel %vm1857_vm2, %v1941_v50, %v5966_v25 }
 0x208   :  { %v2078_v14 = vsub.s32 32, %v2077_v30  ;;  %4657 = vsinq.f32 %v2047_v18  ;;  %v1935_v3 = vand.u32 2147483647, %v1934_v35  ;;  %v1937_v51 = vcvt.s32.f32 %v1930_v2 }
 0x209   :  { %v6103_v15 = vsub.s32 %v2227_v7, %v2230_v12  ;;  %v2076_v52 = vshrl.u32 %v2075_v49, 5  ;;  %v6106_v57 = vshll.u32 %v2071_v24, 8  ;;  %v2379_v34 = vshrl.u32 %v2378_v44, 23 }
 0x20a   :  { %v2081_v59 = vshrl.u32 %v7271_v6, %v2078_v14  ;;  %v2080_v11 = vshll.u32 %v7270_v36, %v2077_v30  ;;  %v2083_v17 = vshll.u32 %v7271_v6, %v2077_v30  ;;  %v2084_v25 = vshrl.u32 %v7272_v54, %v2078_v14 }
 0x20b   :  { %v2233_v53 = vsub.s32 0, %v6103_v15  ;;  %v2086_v8 = vshll.u32 %v7272_v54, %v2077_v30  ;;  %v2087_v19 = vshrl.u32 %v7273_v48, %v2078_v14  ;;  %v2089_v7 = vshll.u32 %v7273_v48, %v2077_v30 }
 0x20c   :  { %v2090_v37 = vshrl.u32 %v7274_v21, %v2078_v14  ;;  %v7315_v38 = vand.u32 2147483647, %v5753_v56  ;;  %v6122_v29 = vmul.f32 %v1937_v51, %v1935_v3  ;;  %v2082_v49 = vor.u32 %v2081_v59, %v2080_v11 }
 0x20d   :  { %v4016_v50 = vmin.u32 %v2233_v53, %v6103_v15  ;;  %v2085_v18 = vor.u32 %v2084_v25, %v2083_v17  ;;  %vm1742_vm6 = vcmp.lt.s32.totalorder %v6041_v41, 2  ;;  %v2088_v2 = vor.u32 %v2087_v19, %v2086_v8 }
 0x20e   :  { %vm6118_vm5 = vcmp.le.f32.partialorder %v7315_v38, 0.7853982  ;;  %v2091_v35 = vor.u32 %v2090_v37, %v2089_v7  ;;  %v2092_v24 = vshll.u32 %v7274_v21, %v2077_v30  ;;  %v2093_v44 = vshrl.u32 %v7275_v61, %v2078_v14 }
 0x20f   :  { %v2235_v12 = vclz %v4016_v50  ;;  %v2079_v38 = vshrl.u32 %v7270_v36, %v2078_v14  ;;  %vm2095_vm7 = vcmp.lt.s32.totalorder %v2076_v52, 1  ;;  %v4023_v1 = vadd.s32 4294967169, %v2379_v34 }
 0x210   :  { %v2094_v5 = vor.u32 %v2093_v44, %v2092_v24  ;;  %vm2096_vm8 = vcmp.lt.s32.totalorder %v2076_v52, 2  ;;  %vm2097_vm9 = vcmp.lt.s32.totalorder %v2076_v52, 3  ;;  %vm2098_vm10 = vcmp.lt.s32.totalorder %v2076_v52, 4 }
 0x211   :  { %vm1739_vm11 = vweird.f32 %v5565_v28  ;;  %v4017_v3 = vadd.s32 4294967294, %v2235_v12  ;;  %v2100_v51 = vsel %vm2098_vm10, %v2088_v2, 2102212464  ;;  %v2103_v59 = vsel %vm2095_vm7, %v2082_v49, %v2085_v18 }
 0x212   :  { %v2104_v53 = vsel %vm2098_vm10, %v2091_v35, 920167782  ;;  %v2099_v11 = vsel %vm2095_vm7, %v2079_v38, %v2082_v49  ;;  %v2107_v30 = vsel %vm2095_vm7, %v2085_v18, %v2088_v2  ;;  %v2108_v25 = vsel %vm2098_vm10, %v2094_v5, 1326507024 }
 0x213   :  { %v2105_v17 = vsel %vm2097_vm9, %v2088_v2, %v2104_v53  ;;  %vm4018_vm12 = vcmp.lt.s32.totalorder %v4017_v3, 0  ;;  %v2101_v8 = vsel %vm2097_vm9, %v2085_v18, %v2100_v51  ;;  %v2109_v19 = vsel %vm2097_vm9, %v2091_v35, %v2108_v25  ;;  %v994_v2 = vpop.f32.mrf.mxu0 }
 0x214   :  { %v2106_v14 = vsel %vm2096_vm8, %v2103_v59, %v2105_v17  ;;  %v2238_v34 = vsel %vm4018_vm12, 0, %v4017_v3  ;;  %v2110_v7 = vsel %vm2096_vm8, %v2107_v30, %v2109_v19  ;;  %v6137_v24 = vpop.eup %4655  ;;  %vm2058_vm13 = vcmp.eq.s32.totalorder %v6090_v4, 2 }
 0x215   :  { %v6133_v37 = vmul.u32.u64.low %v6106_v57, %v2106_v14  ;;  %v6134_v50 = vmul.u32.u64.high %v6106_v57, %v2106_v14, %v6133_v37  ;;  %v2223_v5 = vadd.s32 %v6021_v55, %v6019_v0  ;;  %v2239_v49 = vsub.s32 32, %v2238_v34  ;;  %v6142_v44 = vpop.eup %4657 }
 0x216   :  { %v2243_v18 = vsub.s32 4294967266, %v2238_v34  ;;  %v1944_v35 = vsel %vm6118_vm5, 0, %v6101_v45  ;;  %v6148_v12 = vmul.u32.u64.low %v6106_v57, %v2110_v7  ;;  %v6149_v38 = vmul.u32.u64.high %v6106_v57, %v2110_v7, %v6148_v12 }
 0x217   :  { %v2385_v3 = vadd.s32 1, %v4023_v1  ;;  %v1749_v51 = vsel %vm1742_vm6, %v6096_v60, %v6088_v31  ;;  %v2241_v0 = vshrl.u32 %v2223_v5, %v2239_v49  ;;  %v2102_v59 = vsel %vm2096_vm8, %v2099_v11, %v2101_v8 }
 0x218   :  { %v2244_v55 = vadd.s32 127, %v2243_v18  ;;  %v1939_v53 = vxor.u32 2147483648, %v6122_v29  ;;  %v2121_v17 = vadd.s32 1, %v6134_v50  ;;  %v995_v45 = vadd.f32 %v994_v2, %v5820_v26 }
 0x219   :  { %vm2386_vm14 = vcmp.gt.s32.totalorder %v2385_v3, 0  ;;  %v1948_v30 = vadd.s32 3, %v1944_v35  ;;  %v2240_v25 = vshll.u32 %v6103_v15, %v2238_v34  ;;  %v1750_v41 = vsel %vm1739_vm11, nan, %v1749_v51 }
 0x21a   :  { %v2245_v1 = vshll.u32 %v2244_v55, 23  ;;  %v2387_v14 = vsel %vm2386_vm14, %v2385_v3, 0  ;;  %v2059_v31 = vxor.u32 2147483648, %v6137_v24  ;;  %v2118_v60 = vmul.u32 %v6106_v57, %v2102_v59  ;;  %v1156_v57 = vpop.f32.mrf.mxu1 }
 0x21b   :  { %vm2120_vm15 = vc.u32 %v6149_v38, %v6133_v37  ;;  %v2242_v52 = vor.u32 %v2241_v0, %v2240_v25  ;;  %v7251_v26 = vand.u32 2147483647, %v6069_v23  ;;  %v1940_v15 = vsel %vm1857_vm2, %v1939_v53, %v6122_v29 }
 0x21c   :  { %v2246_v11 = vor.u32 4788187, %v2245_v1  ;;  %v2122_v8 = vsel %vm2120_vm15, %v2121_v17, %v6134_v50  ;;  %v6173_v28 = vmul.f32 %v5422_v39, %v5987_v22  ;;  %v2389_v34 = vand.u32 31, %v2387_v14 }
 0x21d   :  { %v2123_v19 = vadd.s32 %v2122_v8, %v2118_v60  ;;  %v6176_v7 = vmul.f32 %v5439_v9, %v1750_v41  ;;  %v2056_v5 = vxor.u32 2147483648, %v6142_v44  ;;  %v6179_v49 = vand.u32 3, %v1948_v30 }
 0x21e   :  { %v6181_v50 = vadd.f32 %v1156_v57, %v995_v45  ;;  %v6186_v29 = vsel %vm2058_vm13, %v2059_v31, %v6142_v44  ;;  %v2247_v18 = vand.u32 2147483647, %v2246_v11  ;;  %v2390_v2 = vsub.s32 32, %v2389_v34 }
 0x21f   :  { %v2124_v22 = vadd.s32 536870912, %v2123_v19  ;;  %v1943_v35 = vsel %vm6118_vm5, %v5753_v56, %v1940_v15  ;;  %v2249_v12 = vcvt.s32.f32 %v2242_v52  ;;  %v2382_v3 = vand.u32 8388607, %v7251_v26  ;;  %v6365_v26 = vld [vmem:[%s7217_s2 + $0x8] ss:$0 sm:$0xff] }
 0x220   :  { %v6193_v51 = vshrl.u32 %v2387_v14, 5  ;;  %v2392_v55 = vshll.u32 %v7270_v36, %v2389_v34  ;;  %v2393_v44 = vshrl.u32 %v7271_v6, %v2390_v2  ;;  %v2396_v59 = vshrl.u32 %v7272_v54, %v2390_v2 }
 0x221   :  { %v6195_v0 = vshrl.u32 %v2124_v22, 30  ;;  %vm2055_vm0 = vcmp.eq.s32.totalorder %v6090_v4, 0  ;;  %vm2169_vm1 = vcmp.lt.s32.totalorder %v5895_v46, 0  ;;  %v2395_v43 = vshll.u32 %v7271_v6, %v2389_v34 }
 0x222   :  { %v2399_v53 = vshrl.u32 %v7273_v48, %v2390_v2  ;;  %v2401_v17 = vshll.u32 %v7273_v48, %v2389_v34  ;;  %v2402_v45 = vshrl.u32 %v7274_v21, %v2390_v2  ;;  %v2250_v30 = vmul.f32 %v2249_v12, %v2247_v18 }
 0x223   :  { %v2126_v25 = vshll.u32 %v6195_v0, 30  ;;  %v2398_v1 = vshll.u32 %v7272_v54, %v2389_v34  ;;  %v2404_v14 = vshll.u32 %v7274_v21, %v2389_v34  ;;  %v2394_v41 = vor.u32 %v2393_v44, %v2392_v55 }
 0x224   :  { %v2397_v31 = vor.u32 %v2396_v59, %v2395_v43  ;;  %v2403_v60 = vor.u32 %v2402_v45, %v2401_v17  ;;  %v2405_v52 = vshrl.u32 %v7275_v61, %v2390_v2  ;;  %vm2054_vm2 = vcmp.lt.s32.totalorder %v6090_v4, 2 }
 0x225   :  { %4659 = vcosq.f32 %v1943_v35  ;;  %v6211_v11 = vsub.s32 %v2123_v19, %v2126_v25  ;;  %v2383_v8 = vor.u32 8388608, %v2382_v3  ;;  %v2400_v15 = vor.u32 %v2399_v53, %v2398_v1 }
 0x226   :  { %4661 = vsinq.f32 %v1943_v35  ;;  %v7318_v57 = vand.u32 2147483647, %v5895_v46  ;;  %v2253_v34 = vsub.s32 4, %v6078_v40  ;;  %v2406_v22 = vor.u32 %v2405_v52, %v2404_v14 }
 0x227   :  { %v6222_v12 = vadd.f32 %v5749_v33, %v6181_v50  ;;  %v2251_v55 = vxor.u32 2147483648, %v2250_v30  ;;  %v2129_v19 = vsub.s32 0, %v6211_v11  ;;  %vm2407_vm4 = vcmp.lt.s32.totalorder %v6193_v51, 1 }
 0x228   :  { %vm6215_vm3 = vcmp.le.f32.partialorder %v7318_v57, 0.7853982  ;;  %vm2410_vm5 = vcmp.lt.s32.totalorder %v6193_v51, 4  ;;  %vm2408_vm6 = vcmp.lt.s32.totalorder %v6193_v51, 2  ;;  %vm2409_vm7 = vcmp.lt.s32.totalorder %v6193_v51, 3 }
 0x229   :  { %v2415_v35 = vsel %vm2407_vm4, %v2394_v41, %v2397_v31  ;;  %v2416_v3 = vsel %vm2410_vm5, %v2403_v60, 920167782  ;;  %v4012_v44 = vmin.u32 %v2129_v19, %v6211_v11  ;;  %v2391_v33 = vshrl.u32 %v7270_v36, %v2390_v2 }
 0x22a   :  { %v2412_v59 = vsel %vm2410_vm5, %v2400_v15, 2102212464  ;;  %v2417_v43 = vsel %vm2409_vm7, %v2400_v15, %v2416_v3  ;;  %v2419_v17 = vsel %vm2407_vm4, %v2397_v31, %v2400_v15  ;;  %v2420_v45 = vsel %vm2410_vm5, %v2406_v22, 1326507024 }
 0x22b   :  { %v2418_v53 = vsel %vm2408_vm6, %v2415_v35, %v2417_v43  ;;  %v2423_v25 = vshll.u32 %v2383_v8, 8  ;;  %vm2051_vm8 = vweird.f32 %v5660_v16  ;;  %v2057_v1 = vsel %vm2055_vm0, %v6137_v24, %v2056_v5 }
 0x22c   :  { %v2252_v2 = vsel %vm2169_vm1, %v2251_v55, %v2250_v30  ;;  %v2131_v14 = vclz %v4012_v44  ;;  %v2411_v52 = vsel %vm2407_vm4, %v2391_v33, %v2394_v41  ;;  %v2413_v57 = vsel %vm2409_vm7, %v2397_v31, %v2412_v59 }
 0x22d   :  { %v2421_v15 = vsel %vm2409_vm7, %v2403_v60, %v2420_v45  ;;  %v6251_v8 = vmul.u32.u64.low %v2423_v25, %v2418_v53  ;;  %v6252_v22 = vmul.u32.u64.high %v2423_v25, %v2418_v53, %v6251_v8  ;;  %v2254_v24 = vsel %vm2169_vm1, %v2253_v34, %v6078_v40 }
 0x22e   :  { %v4013_v5 = vadd.s32 4294967294, %v2131_v14  ;;  %v2422_v30 = vsel %vm2408_vm6, %v2419_v17, %v2421_v15  ;;  %v2274_v41 = vand.u32 2139095040, %v6222_v12  ;;  %v6263_v31 = vadd.f32 %v6176_v7, %v5938_v13 }
 0x22f   :  { %v2061_v60 = vsel %vm2054_vm2, %v2057_v1, %v6186_v29  ;;  %v6268_v55 = vmul.u32.u64.low %v2423_v25, %v2422_v30  ;;  %v6269_v19 = vmul.u32.u64.high %v2423_v25, %v2422_v30, %v6268_v55  ;;  %v2255_v40 = vsel %vm6215_vm3, %v5895_v46, %v2252_v2 }
 0x230   :  { %vm4014_vm9 = vcmp.lt.s32.totalorder %v4013_v5, 0  ;;  %v2414_v34 = vsel %vm2408_vm6, %v2411_v52, %v2413_v57  ;;  %v2275_v35 = vshrl.u32 %v2274_v41, 23  ;;  %v2256_v13 = vsel %vm6215_vm3, 0, %v2254_v24 }
 0x231   :  { %v2134_v7 = vsel %vm4014_vm9, 0, %v4013_v5  ;;  %v2433_v3 = vadd.s32 1, %v6252_v22  ;;  %v7250_v4 = vand.u32 2147483647, %v6222_v12  ;;  %vm1951_vm10 = vcmp.eq.s32.totalorder %v6179_v49, 0 }
 0x232   :  { %vm1954_vm11 = vcmp.eq.s32.totalorder %v6179_v49, 2  ;;  %v2119_v29 = vadd.s32 %v6133_v37, %v6149_v38  ;;  %v2135_v44 = vsub.s32 32, %v2134_v7  ;;  %v2139_v33 = vsub.s32 4294967266, %v2134_v7  ;;  %v4660_v59 = vpop.eup %4659 }
 0x233   :  { %v4019_v51 = vadd.s32 4294967169, %v2275_v35  ;;  %4663 = vcosq.f32 %v2255_v40  ;;  %v7321_v18 = vand.u32 2147483647, %v6005_v32  ;;  %v2136_v53 = vshll.u32 %v6211_v11, %v2134_v7  ;;  %v4662_v45 = vpop.eup %4661  ;;  %v4368_v11 = vpop.f32.mrf.mxu0 }
 0x234   :  { %v2430_v17 = vmul.u32 %v2423_v25, %v2414_v34  ;;  %vm2432_vm13 = vc.u32 %v6269_v19, %v6251_v8  ;;  %v2137_v1 = vshrl.u32 %v2119_v29, %v2135_v44  ;;  %v2140_v37 = vadd.s32 127, %v2139_v33 }
 0x235   :  { %vm6286_vm12 = vcmp.le.f32.partialorder %v7321_v18, 0.7853982  ;;  %v2434_v38 = vsel %vm2432_vm13, %v2433_v3, %v6252_v22  ;;  %v2281_v2 = vadd.s32 1, %v4019_v51  ;;  %v2062_v14 = vsel %vm2051_vm8, nan, %v2061_v60  ;;  %v7324_v60 = vld [vmem:[#allocation13_spill] sm:$0xff] }
 0x236   :  { %v2149_v52 = vsub.s32 4, %v6195_v0  ;;  %v2435_v57 = vadd.s32 %v2434_v38, %v2430_v17  ;;  %v2278_v15 = vand.u32 8388607, %v7250_v4  ;;  %v2260_v25 = vadd.s32 3, %v2256_v13 }
 0x237   :  { %v2138_v24 = vor.u32 %v2137_v1, %v2136_v53  ;;  %v2141_v5 = vshll.u32 %v2140_v37, 23  ;;  %vm2282_vm14 = vcmp.gt.s32.totalorder %v2281_v2, 0  ;;  %v1952_v30 = vxor.u32 2147483648, %v4662_v45  ;;  %v4394_v37 = vpop.f32.mrf.mxu1 }
 0x238   :  { %v1955_v41 = vxor.u32 2147483648, %v4660_v59  ;;  %v2436_v55 = vadd.s32 536870912, %v2435_v57  ;;  %v2283_v34 = vsel %vm2282_vm14, %v2281_v2, 0  ;;  %vm2065_vm15 = vcmp.lt.s32.totalorder %v6005_v32, 0 }
 0x239   :  { %v2142_v22 = vor.u32 4788187, %v2141_v5  ;;  %v6302_v16 = vmul.f32 %v5422_v39, %v6049_v10  ;;  %v1013_v35 = vadd.f32 %v4368_v11, %v7324_v60  ;;  %v6308_v13 = vsel %vm2065_vm15, %v2149_v52, %v6195_v0  ;;  %v1006_v10 = vpop.f32.mrf.mxu0 }
 0x23a   :  { %v6310_v7 = vshrl.u32 %v2436_v55, 30  ;;  %v2279_v3 = vor.u32 8388608, %v2278_v15  ;;  %v2285_v29 = vand.u32 31, %v2283_v34  ;;  %v6313_v44 = vmul.f32 %v5439_v9, %v2062_v14  ;;  %v7325_v15 = vld [vmem:[#allocation14_spill] sm:$0xff] }
 0x23b   :  { %v6315_v33 = vand.u32 3, %v2260_v25  ;;  %v2143_v51 = vand.u32 2147483647, %v2142_v22  ;;  %v2145_v18 = vcvt.s32.f32 %v2138_v24  ;;  %v6319_v53 = vsel %vm1951_vm10, %v4660_v59, %v1952_v30 }
 0x23c   :  { %v6323_v0 = vsel %vm1954_vm11, %v1955_v41, %v4662_v45  ;;  %v2438_v17 = vshll.u32 %v6310_v7, 30  ;;  %v2286_v1 = vsub.s32 32, %v2285_v29  ;;  %4665 = vsinq.f32 %v2255_v40 }
 0x23d   :  { %v2146_v38 = vmul.f32 %v2145_v18, %v2143_v51  ;;  %v2152_v2 = vsel %vm6286_vm12, 0, %v6308_v13  ;;  %v6329_v14 = vadd.f32 %v4394_v37, %v1013_v35  ;;  %v6333_v59 = vadd.s32 %v6251_v8, %v6269_v19 }
 0x23e   :  { %v6335_v52 = vsub.s32 %v2435_v57, %v2438_v17  ;;  %v6337_v45 = vshll.u32 %v2279_v3, 8  ;;  %v1007_v11 = vadd.f32 %v1006_v10, %v7325_v15  ;;  %v6340_v24 = vshrl.u32 %v2283_v34, 5  ;;  %v4599_v10 = vld [vmem:[#allocation2 + $0x38] sm:$0xff]  }
 0x23f   :  { %v2147_v25 = vxor.u32 2147483648, %v2146_v38  ;;  %v2289_v40 = vshrl.u32 %v7271_v6, %v2286_v1  ;;  %v2292_v5 = vshrl.u32 %v7272_v54, %v2286_v1  ;;  %v2288_v41 = vshll.u32 %v7270_v36, %v2285_v29  ;;  %4398 = vmatprep.subr.bf16.mxu0 %v4599_v10 }
 0x240   :  { %v2441_v30 = vsub.s32 0, %v6335_v52  ;;  %v2291_v8 = vshll.u32 %v7271_v6, %v2285_v29  ;;  %v2295_v19 = vshrl.u32 %v7273_v48, %v2286_v1  ;;  %v6348_v57 = vpop.eup %4663  ;;  %v2294_v34 = vshll.u32 %v7272_v54, %v2285_v29  ;;  %4399 = vmatpush3.bf16.msra.mxu0 %v4599_v10 }
 0x241   :  { %v2148_v55 = vsel %vm2065_vm15, %v2147_v25, %v2146_v38  ;;  %v2297_v22 = vshll.u32 %v7273_v48, %v2285_v29  ;;  %v2298_v60 = vshrl.u32 %v7274_v21, %v2286_v1  ;;  %v2290_v51 = vor.u32 %v2289_v40, %v2288_v41  ;;  %v4600_v41 = vld [vmem:[#allocation2 + $0x30] sm:$0xff]  }
 0x242   :  { %v2151_v35 = vsel %vm6286_vm12, %v6005_v32, %v2148_v55  ;;  %v4024_v3 = vmin.u32 %v2441_v30, %v6335_v52  ;;  %v2293_v18 = vor.u32 %v2292_v5, %v2291_v8  ;;  %v2296_v17 = vor.u32 %v2295_v19, %v2294_v34  ;;  %4400 = vmatprep.subr.bf16.mxu0 %v4600_v41 }
 0x243   :  { %v2299_v37 = vor.u32 %v2298_v60, %v2297_v22  ;;  %v2300_v15 = vshll.u32 %v7274_v21, %v2285_v29  ;;  %v2301_v38 = vshrl.u32 %v7275_v61, %v2286_v1  ;;  %4667 = vcosq.f32 %v2151_v35 }
 0x244   :  { %v2443_v4 = vclz %v4024_v3  ;;  %v6369_v40 = vadd.f32 %v6365_v26, %v6329_v14  ;;  %vm1950_vm0 = vcmp.lt.s32.totalorder %v6179_v49, 2  ;;  %4669 = vsinq.f32 %v2151_v35  ;;  %v1168_v35 = vpop.f32.mrf.mxu1  ;;  %4401 = vmatpush3.bf16.msra.mxu0 %v4600_v41 }
 0x245   :  { %v2302_v29 = vor.u32 %v2301_v38, %v2300_v15  ;;  %vm2303_vm1 = vcmp.lt.s32.totalorder %v6340_v24, 1  ;;  %vm2304_vm2 = vcmp.lt.s32.totalorder %v6340_v24, 2  ;;  %vm2305_vm3 = vcmp.lt.s32.totalorder %v6340_v24, 3 }
 0x246   :  { %v4025_v5 = vadd.s32 4294967294, %v2443_v4  ;;  %vm2306_vm4 = vcmp.lt.s32.totalorder %v6340_v24, 4  ;;  %v2311_v30 = vsel %vm2303_vm1, %v2290_v51, %v2293_v18  ;;  %v2315_v55 = vsel %vm2303_vm1, %v2293_v18, %v2296_v17 }
 0x247   :  { %v2308_v8 = vsel %vm2306_vm4, %v2296_v17, 2102212464  ;;  %v2312_v19 = vsel %vm2306_vm4, %v2299_v37, 920167782  ;;  %v2316_v34 = vsel %vm2306_vm4, %v2302_v29, 1326507024  ;;  %v2287_v22 = vshrl.u32 %v7270_v36, %v2286_v1 }
 0x248   :  { %vm2263_vm5 = vcmp.eq.s32.totalorder %v6315_v33, 0  ;;  %vm4026_vm6 = vcmp.lt.s32.totalorder %v4025_v5, 0  ;;  %v2313_v4 = vsel %vm2305_vm3, %v2296_v17, %v2312_v19  ;;  %v2317_v60 = vsel %vm2305_vm3, %v2299_v37, %v2316_v34  ;;  %v4601_v19 = vld [vmem:[#allocation2 + $0x28] sm:$0xff]  }
 0x249   :  { %v2446_v3 = vsel %vm4026_vm6, 0, %v4025_v5  ;;  %v2314_v10 = vsel %vm2304_vm2, %v2311_v30, %v2313_v4  ;;  %v2318_v15 = vsel %vm2304_vm2, %v2315_v55, %v2317_v60  ;;  %v6390_v38 = vadd.f32 %v1168_v35, %v1007_v11  ;;  %v4666_v29 = vpop.eup %4665  ;;  %4402 = vmatprep.subr.bf16.mxu0 %v4601_v19  ;;  %v4602_v35 = vld [vmem:[#allocation2 + $0x20] sm:$0xff]  }
 0x24a   :  { %v2447_v1 = vsub.s32 32, %v2446_v3  ;;  %v2451_v25 = vsub.s32 4294967266, %v2446_v3  ;;  %v2307_v17 = vsel %vm2303_vm1, %v2287_v22, %v2290_v51  ;;  %v2309_v37 = vsel %vm2305_vm3, %v2293_v18, %v2308_v8  ;;  %4403 = vmatpush3.bf16.msra.mxu0 %v4601_v19 }
 0x24b   :  { %7326 = vst [vmem:[#allocation9_spill] sm:$0xff] %v6390_v38  ;;  %vm1947_vm7 = vweird.f32 %v5753_v56  ;;  %v6398_v5 = vmul.u32.u64.low %v6337_v45, %v2318_v15  ;;  %v6399_v30 = vmul.u32.u64.high %v6337_v45, %v2318_v15, %v6398_v5  ;;  %vm2377_vm8 = vcmp.lt.s32.totalorder %v6069_v23, 0  ;;  %4404 = vmatprep.subr.bf16.mxu0 %v4602_v35  ;;  %v4604_v56 = vld [vmem:[#allocation2 + $0x10] sm:$0xff]  }
 0x24c   :  { %v6402_v11 = vmul.u32.u64.low %v6337_v45, %v2314_v10  ;;  %v6403_v55 = vmul.u32.u64.high %v6337_v45, %v2314_v10, %v6402_v11  ;;  %v2448_v41 = vshll.u32 %v6335_v52, %v2446_v3  ;;  %v2449_v51 = vshrl.u32 %v6333_v59, %v2447_v1 }
 0x24d   :  { %v2452_v34 = vadd.s32 127, %v2451_v25  ;;  %v2586_v18 = vand.u32 2139095040, %v6369_v40  ;;  %v2264_v8 = vxor.u32 2147483648, %v4666_v29  ;;  %vm2266_vm9 = vcmp.eq.s32.totalorder %v6315_v33, 2 }
 0x24e   :  { %v2310_v22 = vsel %vm2304_vm2, %v2307_v17, %v2309_v37  ;;  %v7252_v4 = vand.u32 2147483647, %v6369_v40  ;;  %v1957_v52 = vsel %vm1950_vm0, %v6319_v53, %v6323_v0  ;;  %v2450_v60 = vor.u32 %v2449_v51, %v2448_v41  ;;  %4405 = vmatpush3.bf16.msra.mxu0 %v4602_v35 }
 0x24f   :  { %v2453_v59 = vshll.u32 %v2452_v34, 23  ;;  %v2587_v25 = vshrl.u32 %v2586_v18, 23  ;;  %v2156_v3 = vadd.s32 3, %v2152_v2  ;;  %vm2328_vm10 = vc.u32 %v6399_v30, %v6402_v11  ;;  %v4603_v18 = vld [vmem:[#allocation2 + $0x18] sm:$0xff]  }
 0x250   :  { %v2329_v24 = vadd.s32 1, %v6403_v55  ;;  %v6427_v10 = vadd.f32 %v6365_v26, %v6390_v38  ;;  %vm2259_vm11 = vweird.f32 %v5895_v46  ;;  %v7327_v49 = vxor.u32 2147483648, %v6348_v57  ;;  %v4668_v1 = vpop.eup %4667  ;;  %4406 = vmatprep.subr.bf16.mxu0 %v4603_v18  ;;  %v4605_v46 = vld [vmem:[#allocation2 + $0x8] sm:$0xff]  }
 0x251   :  { %v7328_v43 = vand.u32 2147483647, %v6069_v23  ;;  %v2454_v0 = vor.u32 4788187, %v2453_v59  ;;  %v2326_v2 = vmul.u32 %v6337_v45, %v2310_v22  ;;  %v4031_v15 = vadd.s32 4294967169, %v2587_v25  ;;  %v4670_v5 = vpop.eup %4669 }
 0x252   :  { %v2268_v53 = vsel %vm2266_vm9, %v7327_v49, %v4666_v29  ;;  %v2265_v17 = vsel %vm2263_vm5, %v6348_v57, %v2264_v8  ;;  %v2461_v37 = vsub.s32 4, %v6310_v7  ;;  %v2330_v29 = vsel %vm2328_vm10, %v2329_v24, %v6403_v55  ;;  %4407 = vmatpush3.bf16.msra.mxu0 %v4603_v18 }
 0x253   :  { %vm6436_vm12 = vcmp.le.f32.partialorder %v7328_v43, 0.7853982  ;;  %v2590_v19 = vand.u32 8388607, %v7252_v4  ;;  %v2455_v41 = vand.u32 2147483647, %v2454_v0  ;;  %v2457_v51 = vcvt.s32.f32 %v2450_v60  ;;  %4408 = vmatprep.subr.bf16.mxu0 %v4604_v56 }
 0x254   :  { %v2331_v34 = vadd.s32 %v2330_v29, %v2326_v2  ;;  %v2593_v45 = vadd.s32 1, %v4031_v15  ;;  %v6450_v22 = vadd.f32 %v6313_v44, %v5974_v62  ;;  %vm2262_vm13 = vcmp.lt.s32.totalorder %v6315_v33, 2  ;;  %v4371_v33 = vpop.f32.mrf.mxu0  ;;  %v7331_v15 = vld [vmem:[#allocation15_spill] sm:$0xff] }
 0x255   :  { %v6453_v57 = vand.u32 3, %v2156_v3  ;;  %v2482_v55 = vand.u32 2139095040, %v6427_v10  ;;  %v1958_v8 = vsel %vm1947_vm7, nan, %v1957_v52  ;;  %v2458_v59 = vmul.f32 %v2457_v51, %v2455_v41 }
 0x256   :  { %v2332_v25 = vadd.s32 536870912, %v2331_v34  ;;  %vm2594_vm14 = vcmp.gt.s32.totalorder %v2593_v45, 0  ;;  %v2269_v60 = vsel %vm2262_vm13, %v2265_v17, %v2268_v53  ;;  %v6461_v35 = vsel %vm2377_vm8, %v2461_v37, %v6310_v7  ;;  %4409 = vmatpush3.bf16.msra.mxu0 %v4604_v56 }
 0x257   :  { %v2591_v62 = vor.u32 8388608, %v2590_v19  ;;  %v2595_v44 = vsel %vm2594_vm14, %v2593_v45, 0  ;;  %v2160_v3 = vxor.u32 2147483648, %v4670_v5  ;;  %v2163_v24 = vxor.u32 2147483648, %v4668_v1  ;;  %4410 = vmatprep.subr.bf16.mxu0 %v4605_v46 }
 0x258   :  { %v2459_v49 = vxor.u32 2147483648, %v2458_v59  ;;  %v6463_v43 = vshrl.u32 %v2332_v25, 30  ;;  %v6466_v52 = vmul.f32 %v5439_v9, %v1958_v8  ;;  %vm2159_vm15 = vcmp.eq.s32.totalorder %v6453_v57, 0 }
 0x259   :  { %v2597_v53 = vand.u32 31, %v2595_v44  ;;  %v2483_v0 = vshrl.u32 %v2482_v55, 23  ;;  %vm2162_vm0 = vcmp.eq.s32.totalorder %v6453_v57, 2  ;;  %v6474_v17 = vadd.f32 %v4371_v33, %v7331_v15 }
 0x25a   :  { %v2460_v7 = vsel %vm2377_vm8, %v2459_v49, %v2458_v59  ;;  %v2334_v2 = vshll.u32 %v6463_v43, 30  ;;  %v6478_v37 = vsel %vm2259_vm11, nan, %v2269_v60  ;;  %v6485_v19 = vadd.s32 %v6402_v11, %v6399_v30  ;;  %4411 = vmatpush3.bf16.msra.mxu0 %v4605_v46 }
 0x25b   :  { %v2598_v41 = vsub.s32 32, %v2597_v53  ;;  %v6487_v51 = vsel %vm2159_vm15, %v4668_v1, %v2160_v3  ;;  %v6489_v45 = vsel %vm2162_vm0, %v2163_v24, %v4670_v5  ;;  %v6493_v55 = vshll.u32 %v2591_v62, 8 }
 0x25c   :  { %v6491_v18 = vsub.s32 %v2331_v34, %v2334_v2  ;;  %v2463_v8 = vsel %vm6436_vm12, %v6069_v23, %v2460_v7  ;;  %v6498_v59 = vshrl.u32 %v2595_v44, 5  ;;  %v4027_v11 = vadd.s32 4294967169, %v2483_v0  ;;  %v4606_v0 = vld [vmem:[#allocation2] sm:$0xff]  }
 0x25d   :  { %v2601_v30 = vshrl.u32 %v7271_v6, %v2598_v41  ;;  %v2600_v1 = vshll.u32 %v7270_v36, %v2597_v53  ;;  %v2603_v5 = vshll.u32 %v7271_v6, %v2597_v53  ;;  %v2604_v34 = vshrl.u32 %v7272_v54, %v2598_v41  ;;  %4412 = vmatprep.subr.bf16.mxu0 %v4606_v0 }
 0x25e   :  { %v2337_v25 = vsub.s32 0, %v6491_v18  ;;  %vm2273_vm1 = vcmp.lt.s32.totalorder %v6222_v12, 0  ;;  %v2606_v60 = vshll.u32 %v7272_v54, %v2597_v53  ;;  %v2607_v62 = vshrl.u32 %v7273_v48, %v2598_v41  ;;  %4413 = vmatpush3.bf16.msra.mxu0 %v4606_v0 }
 0x25f   :  { %v2609_v44 = vshll.u32 %v7273_v48, %v2597_v53  ;;  %v2610_v33 = vshrl.u32 %v7274_v21, %v2598_v41  ;;  %v2357_v24 = vsub.s32 4, %v6463_v43  ;;  %v2602_v49 = vor.u32 %v2601_v30, %v2600_v1 }
 0x260   :  { %v4020_v3 = vmin.u32 %v2337_v25, %v6491_v18  ;;  %v2605_v56 = vor.u32 %v2604_v34, %v2603_v5  ;;  %v2608_v7 = vor.u32 %v2607_v62, %v2606_v60  ;;  %v2612_v15 = vshll.u32 %v7274_v21, %v2597_v53 }
 0x261   :  { %v2611_v2 = vor.u32 %v2610_v33, %v2609_v44  ;;  %v2613_v4 = vshrl.u32 %v7275_v61, %v2598_v41  ;;  %vm2158_vm2 = vcmp.lt.s32.totalorder %v6453_v57, 2  ;;  %4671 = vcosq.f32 %v2463_v8 }
 0x262   :  { %v7332_v29 = vand.u32 2147483647, %v6222_v12  ;;  %v2339_v25 = vclz %v4020_v3  ;;  %v2599_v30 = vshrl.u32 %v7270_v36, %v2598_v41  ;;  %vm2615_vm4 = vcmp.lt.s32.totalorder %v6498_v59, 1 }
 0x263   :  { %v2614_v1 = vor.u32 %v2613_v4, %v2612_v15  ;;  %vm2616_vm5 = vcmp.lt.s32.totalorder %v6498_v59, 2  ;;  %vm2617_vm6 = vcmp.lt.s32.totalorder %v6498_v59, 3  ;;  %vm2618_vm7 = vcmp.lt.s32.totalorder %v6498_v59, 4 }
 0x264   :  { %vm6517_vm3 = vcmp.le.f32.partialorder %v7332_v29, 0.7853982  ;;  %v4021_v53 = vadd.s32 4294967294, %v2339_v25  ;;  %v2620_v5 = vsel %vm2618_vm7, %v2608_v7, 2102212464  ;;  %v2623_v29 = vsel %vm2615_vm4, %v2602_v49, %v2605_v56 }
 0x265   :  { %v2624_v34 = vsel %vm2618_vm7, %v2611_v2, 920167782  ;;  %vm2155_vm8 = vweird.f32 %v6005_v32  ;;  %v2619_v60 = vsel %vm2615_vm4, %v2599_v30, %v2602_v49  ;;  %v2627_v41 = vsel %vm2615_vm4, %v2605_v56, %v2608_v7 }
 0x266   :  { %v2625_v62 = vsel %vm2617_vm6, %v2608_v7, %v2624_v34  ;;  %v2628_v44 = vsel %vm2618_vm7, %v2614_v1, 1326507024  ;;  %vm4022_vm9 = vcmp.lt.s32.totalorder %v4021_v53, 0  ;;  %v2621_v33 = vsel %vm2617_vm6, %v2605_v56, %v2620_v5 }
 0x267   :  { %v2626_v4 = vsel %vm2616_vm5, %v2623_v29, %v2625_v62  ;;  %v2629_v3 = vsel %vm2617_vm6, %v2611_v2, %v2628_v44  ;;  %v2342_v15 = vsel %vm4022_vm9, 0, %v4021_v53  ;;  %4673 = vsinq.f32 %v2463_v8 }
 0x268   :  { %v2630_v0 = vsel %vm2616_vm5, %v2627_v41, %v2629_v3  ;;  %v6532_v25 = vmul.u32.u64.low %v6493_v55, %v2626_v4  ;;  %v6533_v38 = vmul.u32.u64.high %v6493_v55, %v2626_v4, %v6532_v25  ;;  %v2343_v49 = vsub.s32 32, %v2342_v15 }
 0x269   :  { %v2347_v30 = vsub.s32 4294967266, %v2342_v15  ;;  %v2358_v56 = vsel %vm2273_vm1, %v2357_v24, %v6463_v43  ;;  %v6540_v7 = vmul.u32.u64.low %v6493_v55, %v2630_v0  ;;  %v6541_v1 = vmul.u32.u64.high %v6493_v55, %v2630_v0, %v6540_v7 }
 0x26a   :  { %v2479_v2 = vand.u32 2147483647, %v6427_v10  ;;  %v2489_v53 = vadd.s32 1, %v4027_v11  ;;  %v2344_v5 = vshll.u32 %v6491_v18, %v2342_v15  ;;  %v2345_v29 = vshrl.u32 %v6485_v19, %v2343_v49  ;;  %v4397_v15 = vpop.f32.mrf.mxu1 }
 0x26b   :  { %v2348_v34 = vadd.s32 127, %v2347_v30  ;;  %v2622_v8 = vsel %vm2616_vm5, %v2619_v60, %v2621_v33  ;;  %v2165_v43 = vsel %vm2158_vm2, %v6487_v51, %v6489_v45  ;;  %v2360_v24 = vsel %vm6517_vm3, 0, %v2358_v56 }
 0x26c   :  { %v2641_v62 = vadd.s32 1, %v6533_v38  ;;  %vm2490_vm10 = vcmp.gt.s32.totalorder %v2489_v53, 0  ;;  %v7335_v18 = vsel %vm6436_vm12, 0, %v6461_v35  ;;  %v2346_v11 = vor.u32 %v2345_v29, %v2344_v5 }
 0x26d   :  { %v2468_v19 = vadd.s32 3, %v7335_v18  ;;  %v2349_v41 = vshll.u32 %v2348_v34, 23  ;;  %v2491_v59 = vsel %vm2490_vm10, %v2489_v53, 0  ;;  %v6561_v60 = vmul.f32 %v5422_v39, %v6181_v50 }
 0x26e   :  { %v2638_v57 = vmul.u32 %v6493_v55, %v2622_v8  ;;  %vm2640_vm11 = vc.u32 %v6541_v1, %v6532_v25  ;;  %v6568_v51 = vand.u32 8388607, %v2479_v2  ;;  %v2166_v13 = vsel %vm2155_vm8, nan, %v2165_v43  ;;  %v6573_v33 = vpop.eup %4671 }
 0x26f   :  { %v2350_v35 = vor.u32 4788187, %v2349_v41  ;;  %v2364_v45 = vadd.s32 3, %v2360_v24  ;;  %v2642_v44 = vsel %vm2640_vm11, %v2641_v62, %v6533_v38  ;;  %v6577_v50 = vadd.f32 %v6466_v52, %v6034_v58 }
 0x270   :  { %v6581_v55 = vmul.f32 %v5439_v9, %v6478_v37  ;;  %v2643_v4 = vadd.s32 %v2642_v44, %v2638_v57  ;;  %v2493_v3 = vand.u32 31, %v2491_v59  ;;  %v6583_v0 = vand.u32 3, %v2468_v19 }
 0x271   :  { %v2351_v32 = vand.u32 2147483647, %v2350_v35  ;;  %v2353_v49 = vcvt.s32.f32 %v2346_v11  ;;  %v6586_v30 = vadd.f32 %v4397_v15, %v6474_v17  ;;  %v6589_v38 = vmul.f32 %v5439_v9, %v2166_v13 }
 0x272   :  { %v2644_v56 = vadd.s32 536870912, %v2643_v4  ;;  %v2487_v58 = vor.u32 8388608, %v6568_v51  ;;  %v2494_v52 = vsub.s32 32, %v2493_v3  ;;  %v6592_v37 = vand.u32 3, %v2364_v45 }
 0x273   :  { %v2354_v7 = vmul.f32 %v2353_v49, %v2351_v32  ;;  %v6594_v53 = vshrl.u32 %v2491_v59, 5  ;;  %v2496_v5 = vshll.u32 %v7270_v36, %v2493_v3  ;;  %v2499_v17 = vshll.u32 %v7271_v6, %v2493_v3 }
 0x274   :  { %v6597_v29 = vshrl.u32 %v2644_v56, 30  ;;  %v2497_v34 = vshrl.u32 %v7271_v6, %v2494_v52  ;;  %v2500_v8 = vshrl.u32 %v7272_v54, %v2494_v52  ;;  %vm2471_vm12 = vcmp.eq.s32.totalorder %v6583_v0, 0  ;;  %v4674_v19 = vpop.eup %4673 }
 0x275   :  { %vm2474_vm13 = vcmp.eq.s32.totalorder %v6583_v0, 2  ;;  %v2355_v43 = vxor.u32 2147483648, %v2354_v7  ;;  %v2503_v24 = vshrl.u32 %v7273_v48, %v2494_v52  ;;  %v2505_v62 = vshll.u32 %v7273_v48, %v2493_v3 }
 0x276   :  { %v2506_v18 = vshrl.u32 %v7274_v21, %v2494_v52  ;;  %v2646_v11 = vshll.u32 %v6597_v29, 30  ;;  %v2498_v41 = vor.u32 %v2497_v34, %v2496_v5  ;;  %v2502_v59 = vshll.u32 %v7272_v54, %v2493_v3 }
 0x277   :  { %v2508_v57 = vshll.u32 %v7274_v21, %v2493_v3  ;;  %v2356_v51 = vsel %vm2273_vm1, %v2355_v43, %v2354_v7  ;;  %v2501_v13 = vor.u32 %v2500_v8, %v2499_v17  ;;  %v2509_v45 = vshrl.u32 %v7275_v61, %v2494_v52 }
 0x278   :  { %v2507_v35 = vor.u32 %v2506_v18, %v2505_v62  ;;  %vm2470_vm14 = vcmp.lt.s32.totalorder %v6583_v0, 2  ;;  %v2475_v44 = vxor.u32 2147483648, %v6573_v33  ;;  %v2359_v15 = vsel %vm6517_vm3, %v6222_v12, %v2356_v51  ;;  %v4608_v62 = vld [vmem:[#allocation2 + $0x70] sm:$0xff]   ;;  %v1018_v51 = vpop.f32.mrf.mxu0 }
 0x279   :  { %v6618_v32 = vsub.s32 %v2643_v4, %v2646_v11  ;;  %v2504_v49 = vor.u32 %v2503_v24, %v2502_v59  ;;  %v2472_v56 = vxor.u32 2147483648, %v4674_v19  ;;  %4675 = vcosq.f32 %v2359_v15  ;;  %v4607_v24 = vld [vmem:[#allocation2 + $0x78] sm:$0xff]  }
 0x27a   :  { %v2510_v3 = vor.u32 %v2509_v45, %v2508_v57  ;;  %v6622_v7 = vadd.f32 %v6365_v26, %v6586_v30  ;;  %4677 = vsinq.f32 %v2359_v15  ;;  %vm2511_vm15 = vcmp.lt.s32.totalorder %v6594_v53, 1  ;;  %4430 = vmatprep.subr.bf16.mxu1 %v4607_v24 }
 0x27b   :  { %v2649_v5 = vsub.s32 0, %v6618_v32  ;;  %vm2514_vm0 = vcmp.lt.s32.totalorder %v6594_v53, 4  ;;  %vm2467_vm1 = vweird.f32 %v6069_v23  ;;  %vm2512_vm2 = vcmp.lt.s32.totalorder %v6594_v53, 2  ;;  %4431 = vmatpush3.bf16.msra.mxu1 %v4607_v24 }
 0x27c   :  { %vm2513_vm3 = vcmp.lt.s32.totalorder %v6594_v53, 3  ;;  %v2519_v46 = vsel %vm2511_vm15, %v2498_v41, %v2501_v13  ;;  %v2520_v4 = vsel %vm2514_vm0, %v2507_v35, 920167782  ;;  %v2495_v17 = vshrl.u32 %v7270_v36, %v2494_v52  ;;  %4432 = vmatprep.subr.bf16.mxu1 %v4608_v62 }
 0x27d   :  { %v4032_v34 = vmin.u32 %v2649_v5, %v6618_v32  ;;  %v2516_v8 = vsel %vm2514_vm0, %v2504_v49, 2102212464  ;;  %v2521_v43 = vsel %vm2513_vm3, %v2504_v49, %v2520_v4  ;;  %v2523_v11 = vsel %vm2511_vm15, %v2501_v13, %v2504_v49 }
 0x27e   :  { %v2522_v18 = vsel %vm2512_vm2, %v2519_v46, %v2521_v43  ;;  %v2524_v59 = vsel %vm2514_vm0, %v2510_v3, 1326507024  ;;  %v2527_v57 = vshll.u32 %v2487_v58, 8  ;;  %v2473_v45 = vsel %vm2471_vm12, %v6573_v33, %v2472_v56 }
 0x27f   :  { %v2476_v52 = vsel %vm2474_vm13, %v2475_v44, %v4674_v19  ;;  %v2651_v15 = vclz %v4032_v34  ;;  %v2515_v5 = vsel %vm2511_vm15, %v2495_v17, %v2498_v41  ;;  %v2517_v46 = vsel %vm2513_vm3, %v2501_v13, %v2516_v8  ;;  %v7336_v44 = vld [vmem:[#allocation16_spill] sm:$0xff]  ;;  %v4609_v13 = vld [vmem:[#allocation2 + $0x68] sm:$0xff]   ;;  %4433 = vmatpush3.bf16.msra.mxu1 %v4608_v62 }
 0x280   :  { %v2525_v49 = vsel %vm2513_vm3, %v2507_v35, %v2524_v59  ;;  %v6651_v58 = vmul.u32.u64.low %v2527_v57, %v2522_v18  ;;  %v6652_v3 = vmul.u32.u64.high %v2527_v57, %v2522_v18, %v6651_v58  ;;  %vm2370_vm4 = vcmp.eq.s32.totalorder %v6592_v37, 2  ;;  %4434 = vmatprep.subr.bf16.mxu1 %v4609_v13 }
 0x281   :  { %v4033_v33 = vadd.s32 4294967294, %v2651_v15  ;;  %v2526_v19 = vsel %vm2512_vm2, %v2523_v11, %v2525_v49  ;;  %v2794_v41 = vand.u32 2139095040, %v6622_v7  ;;  %v1019_v56 = vadd.f32 %v1018_v51, %v7336_v44 }
 0x282   :  { %v2477_v35 = vsel %vm2470_vm14, %v2473_v45, %v2476_v52  ;;  %vm2585_vm5 = vcmp.lt.s32.totalorder %v6369_v40, 0  ;;  %v2639_v4 = vadd.s32 %v6532_v25, %v6541_v1  ;;  %v2518_v8 = vsel %vm2512_vm2, %v2515_v5, %v2517_v46 }
 0x283   :  { %v6665_v34 = vmul.u32.u64.low %v2527_v57, %v2526_v19  ;;  %v6666_v17 = vmul.u32.u64.high %v2527_v57, %v2526_v19, %v6665_v34  ;;  %vm4034_vm6 = vcmp.lt.s32.totalorder %v4033_v33, 0  ;;  %v2795_v43 = vshrl.u32 %v2794_v41, 23  ;;  %4435 = vmatpush3.bf16.msra.mxu1 %v4609_v13  ;;  %v4611_v41 = vld [vmem:[#allocation2 + $0x58] sm:$0xff]  }
 0x284   :  { %v2947_v24 = vpack.c.bf16 %v5506_v42, %v5970_v20  ;;  %vm2366_vm7 = vcmp.lt.s32.totalorder %v6592_v37, 2  ;;  %v2654_v0 = vsel %vm4034_vm6, 0, %v4033_v33  ;;  %v2537_v18 = vadd.s32 1, %v6652_v3  ;;  %v4610_v42 = vld [vmem:[#allocation2 + $0x60] sm:$0xff]  }
 0x285   :  { %v2791_v11 = vand.u32 2147483647, %v6622_v7  ;;  %v2949_v25 = vpack.c.bf16 %v6086_v47, %v6263_v31  ;;  %v2478_v1 = vsel %vm2467_vm1, nan, %v2477_v35  ;;  %v2655_v53 = vsub.s32 32, %v2654_v0  ;;  %4436 = vmatprep.subr.bf16.mxu1 %v4610_v42 }
 0x286   :  { %v2659_v59 = vsub.s32 4294967266, %v2654_v0  ;;  %v4039_v51 = vadd.s32 4294967169, %v2795_v43  ;;  %4414 = vmatprep.mubr.bf16.mxu0 %v2947_v24  ;;  %v2656_v20 = vshll.u32 %v6618_v32, %v2654_v0  ;;  %v2669_v45 = vsub.s32 4, %v6597_v29  ;;  %v4676_v23 = vpop.eup %4675 }
 0x287   :  { %v2534_v52 = vmul.u32 %v2527_v57, %v2518_v8  ;;  %vm2536_vm8 = vc.u32 %v6666_v17, %v6651_v58  ;;  %v7337_v47 = vpack.c.bf16 %v5766_v63, %v5769_v27  ;;  %vm2363_vm9 = vweird.f32 %v6222_v12  ;;  %v4678_v32 = vpop.eup %4677  ;;  %4437 = vmatpush3.bf16.msra.mxu1 %v4610_v42 }
 0x288   :  { %v2657_v31 = vshrl.u32 %v2639_v4, %v2655_v53  ;;  %v2660_v62 = vadd.s32 127, %v2659_v59  ;;  %v2538_v15 = vsel %vm2536_vm8, %v2537_v18, %v6652_v3  ;;  %v2801_v5 = vadd.s32 1, %v4039_v51  ;;  %4438 = vmatprep.subr.bf16.mxu1 %v4611_v41  ;;  %v7341_v59 = vld [vmem:[#allocation5_spill] sm:$0xff] }
 0x289   :  { %4415 = vmatmul.mubr.bf16.vlgmr.msra.gmra.mxu0 %v7337_v47  ;;  %v2371_v46 = vxor.u32 2147483648, %v4676_v23  ;;  %v2539_v49 = vadd.s32 %v2538_v15, %v2534_v52  ;;  %v2798_v57 = vand.u32 8388607, %v2791_v11  ;;  %v2950_v33 = vpack.c.bf16 %v6450_v22, %v6577_v50  ;;  %v1180_v50 = vpop.f32.mrf.mxu1 }
 0x28a   :  { %4418 = vmatprep.mubr.bf16.mxu0 %v2949_v25  ;;  %v2368_v63 = vxor.u32 2147483648, %v4678_v32  ;;  %v2658_v27 = vor.u32 %v2657_v31, %v2656_v20  ;;  %v2661_v19 = vshll.u32 %v2660_v62, 23  ;;  %vm2802_vm10 = vcmp.gt.s32.totalorder %v2801_v5, 0 }
 0x28b   :  { %vm2367_vm11 = vcmp.eq.s32.totalorder %v6592_v37, 0  ;;  %v2372_v3 = vsel %vm2370_vm4, %v2371_v46, %v4678_v32  ;;  %v2540_v44 = vadd.s32 536870912, %v2539_v49  ;;  %v2803_v35 = vsel %vm2802_vm10, %v2801_v5, 0  ;;  %4439 = vmatpush3.bf16.msra.mxu1 %v4611_v41 }
 0x28c   :  { %v2910_v4 = vmul.f32 %v5439_v9, %v2478_v1  ;;  %v2369_v34 = vsel %vm2367_vm11, %v4676_v23, %v2368_v63  ;;  %v2662_v8 = vor.u32 4788187, %v2661_v19  ;;  %v6699_v22 = vsel %vm2585_vm5, %v2669_v45, %v6597_v29 }
 0x28d   :  { %v6701_v13 = vshrl.u32 %v2540_v44, 30  ;;  %v2799_v43 = vor.u32 8388608, %v2798_v57  ;;  %v2805_v24 = vand.u32 31, %v2803_v35  ;;  %v6703_v0 = vadd.f32 %v1180_v50, %v1019_v56 }
 0x28e   :  { %v2373_v18 = vsel %vm2366_vm7, %v2369_v34, %v2372_v3  ;;  %v7338_v25 = vand.u32 2147483647, %v6369_v40  ;;  %v2663_v53 = vand.u32 2147483647, %v2662_v8  ;;  %v2665_v29 = vcvt.s32.f32 %v2658_v27 }
 0x28f   :  { %v6715_v51 = vadd.f32 %v6581_v55, %v7341_v59  ;;  %v6719_v56 = vadd.f32 %v6589_v38, %v6173_v28  ;;  %v2542_v37 = vshll.u32 %v6701_v13, 30  ;;  %v2806_v42 = vsub.s32 32, %v2805_v24 }
 0x290   :  { %vm6709_vm12 = vcmp.le.f32.partialorder %v7338_v25, 0.7853982  ;;  %v6723_v20 = vadd.f32 %v2910_v4, %v6302_v16  ;;  %v2666_v45 = vmul.f32 %v2665_v29, %v2663_v53  ;;  %v2535_v55 = vadd.s32 %v6651_v58, %v6666_v17 }
 0x291   :  { %4419 = vmatmul.mubr.bf16.gmra.mxu0 %v2950_v33  ;;  %v2672_v52 = vsel %vm6709_vm12, 0, %v6699_v22  ;;  %v2374_v47 = vsel %vm2363_vm9, nan, %v2373_v18  ;;  %v6732_v28 = vsub.s32 %v2539_v49, %v2542_v37  ;;  %v6734_v38 = vshll.u32 %v2799_v43, 8 }
 0x292   :  { %v6738_v23 = vadd.f32 %v6365_v26, %v6703_v0  ;;  %v2667_v16 = vxor.u32 2147483648, %v2666_v45  ;;  %v2804_v31 = vshrl.u32 %v2803_v35, 5  ;;  %v2809_v62 = vshrl.u32 %v7271_v6, %v2806_v42 }
 0x293   :  { %v2812_v15 = vshrl.u32 %v7272_v54, %v2806_v42  ;;  %v2545_v58 = vsub.s32 0, %v6732_v28  ;;  %v2808_v12 = vshll.u32 %v7270_v36, %v2805_v24  ;;  %v2811_v17 = vshll.u32 %v7271_v6, %v2805_v24 }
 0x294   :  { %v2815_v5 = vshrl.u32 %v7273_v48, %v2806_v42  ;;  %v2909_v32 = vmul.f32 %v5439_v9, %v2374_v47  ;;  %v2814_v26 = vshll.u32 %v7272_v54, %v2805_v24  ;;  %v2817_v46 = vshll.u32 %v7273_v48, %v2805_v24 }
 0x295   :  { %v2818_v49 = vshrl.u32 %v7274_v21, %v2806_v42  ;;  %v2668_v57 = vsel %vm2585_vm5, %v2667_v16, %v2666_v45  ;;  %v4028_v33 = vmin.u32 %v2545_v58, %v6732_v28  ;;  %v2810_v63 = vor.u32 %v2809_v62, %v2808_v12 }
 0x296   :  { %v2813_v27 = vor.u32 %v2812_v15, %v2811_v17  ;;  %v2816_v19 = vor.u32 %v2815_v5, %v2814_v26  ;;  %v2820_v3 = vshll.u32 %v7274_v21, %v2805_v24  ;;  %v2821_v44 = vshrl.u32 %v7275_v61, %v2806_v42 }
 0x297   :  { %v2819_v41 = vor.u32 %v2818_v49, %v2817_v46  ;;  %v2547_v35 = vclz %v4028_v33  ;;  %v2565_v4 = vsub.s32 4, %v6701_v13  ;;  %vm2823_vm13 = vcmp.lt.s32.totalorder %v2804_v31, 1 }
 0x298   :  { %vm2824_vm14 = vcmp.lt.s32.totalorder %v2804_v31, 2  ;;  %v2925_v34 = vadd.f32 %v2909_v32, %v6561_v60  ;;  %v2671_v8 = vsel %vm6709_vm12, %v6369_v40, %v2668_v57  ;;  %vm2481_vm15 = vcmp.lt.s32.totalorder %v6427_v10, 0 }
 0x299   :  { %v2807_v50 = vshrl.u32 %v7270_v36, %v2806_v42  ;;  %v2822_v43 = vor.u32 %v2821_v44, %v2820_v3  ;;  %v4029_v18 = vadd.s32 4294967294, %v2547_v35  ;;  %vm2825_vm0 = vcmp.lt.s32.totalorder %v2804_v31, 3 }
 0x29a   :  { %vm2826_vm1 = vcmp.lt.s32.totalorder %v2804_v31, 4  ;;  %v2831_v24 = vsel %vm2823_vm13, %v2810_v63, %v2813_v27  ;;  %v2835_v29 = vsel %vm2823_vm13, %v2813_v27, %v2816_v19  ;;  %4679 = vcosq.f32 %v2671_v8 }
 0x29b   :  { %v2828_v25 = vsel %vm2826_vm1, %v2816_v19, 2102212464  ;;  %v2832_v53 = vsel %vm2826_vm1, %v2819_v41, 920167782  ;;  %v2836_v59 = vsel %vm2826_vm1, %v2822_v43, 1326507024  ;;  %4681 = vsinq.f32 %v2671_v8 }
 0x29c   :  { %vm4030_vm2 = vcmp.lt.s32.totalorder %v4029_v18, 0  ;;  %v2833_v60 = vsel %vm2825_vm0, %v2816_v19, %v2832_v53  ;;  %v2837_v37 = vsel %vm2825_vm0, %v2819_v41, %v2836_v59  ;;  %v2827_v15 = vsel %vm2823_vm13, %v2807_v50, %v2810_v63 }
 0x29d   :  { %v2550_v45 = vsel %vm4030_vm2, 0, %v4029_v18  ;;  %v2834_v42 = vsel %vm2824_vm14, %v2831_v24, %v2833_v60  ;;  %v2838_v47 = vsel %vm2824_vm14, %v2835_v29, %v2837_v37  ;;  %v2829_v58 = vsel %vm2825_vm0, %v2813_v27, %v2828_v25 }
 0x29e   :  { %v2551_v16 = vsub.s32 32, %v2550_v45  ;;  %v2555_v62 = vsub.s32 4294967266, %v2550_v45  ;;  %v6771_v12 = vmul.u32.u64.low %v6734_v38, %v2838_v47  ;;  %v6772_v17 = vmul.u32.u64.high %v6734_v38, %v2838_v47, %v6771_v12 }
 0x29f   :  { %v6775_v5 = vmul.u32.u64.low %v6734_v38, %v2834_v42  ;;  %v6776_v32 = vmul.u32.u64.high %v6734_v38, %v2834_v42, %v6775_v5  ;;  %v2552_v26 = vshll.u32 %v6732_v28, %v2550_v45  ;;  %v2690_v57 = vand.u32 2139095040, %v6738_v23 }
 0x2a0   :  { %v2553_v46 = vshrl.u32 %v2535_v55, %v2551_v16  ;;  %v2556_v49 = vadd.s32 127, %v2555_v62  ;;  %v2830_v33 = vsel %vm2824_vm14, %v2827_v15, %v2829_v58  ;;  %v2687_v63 = vand.u32 2147483647, %v6738_v23 }
 0x2a1   :  { %v2951_v27 = vpack.c.bf16 %v6715_v51, %v6719_v56  ;;  %v2952_v19 = vpack.c.bf16 %v6723_v20, %v2925_v34  ;;  %v2566_v44 = vsel %vm2481_vm15, %v2565_v4, %v6701_v13  ;;  %v2691_v28 = vshrl.u32 %v2690_v57, 23 }
 0x2a2   :  { %v2554_v41 = vor.u32 %v2553_v46, %v2552_v26  ;;  %v2557_v3 = vshll.u32 %v2556_v49, 23  ;;  %vm6791_vm3 = vcmp.le.f32.partialorder %v2479_v2, 0.7853982  ;;  %vm2848_vm4 = vc.u32 %v6772_v17, %v6775_v5 }
 0x2a3   :  { %v2849_v51 = vadd.s32 1, %v6776_v32  ;;  %4422 = vmatprep.mubr.bf16.mxu0 %v2951_v27  ;;  %v2676_v56 = vadd.s32 3, %v2672_v52  ;;  %v2846_v13 = vmul.u32 %v6734_v38, %v2830_v33  ;;  %v4035_v31 = vadd.s32 4294967169, %v2691_v28 }
 0x2a4   :  { %v2558_v20 = vor.u32 4788187, %v2557_v3  ;;  %4423 = vmatmul.mubr.bf16.gmra.mxu0 %v2952_v19  ;;  %v2568_v2 = vsel %vm6791_vm3, 0, %v2566_v44  ;;  %v2694_v4 = vand.u32 8388607, %v2687_v63  ;;  %v2561_v8 = vcvt.s32.f32 %v2554_v41 }
 0x2a5   :  { %v2850_v35 = vsel %vm2848_vm4, %v2849_v51, %v6776_v32  ;;  %v2697_v1 = vadd.s32 1, %v4035_v31  ;;  %v6808_v43 = vand.u32 3, %v2676_v56  ;;  %v2572_v18 = vadd.s32 3, %v2568_v2 }
 0x2a6   :  { %v2559_v34 = vand.u32 2147483647, %v2558_v20  ;;  %v2851_v50 = vadd.s32 %v2850_v35, %v2846_v13  ;;  %v2695_v59 = vor.u32 8388608, %v2694_v4  ;;  %vm2675_vm14 = vweird.f32 %v6369_v40 }
 0x2a7   :  { %vm2698_vm5 = vcmp.gt.s32.totalorder %v2697_v1, 0  ;;  %v4680_v38 = vpop.eup %4679  ;;  %vm2679_vm6 = vcmp.eq.s32.totalorder %v6808_v43, 0  ;;  %vm2682_vm7 = vcmp.eq.s32.totalorder %v6808_v43, 2  ;;  %v6820_v47 = vand.u32 3, %v2572_v18 }
 0x2a8   :  { %v2562_v22 = vmul.f32 %v2561_v8, %v2559_v34  ;;  %v2852_v52 = vadd.s32 536870912, %v2851_v50  ;;  %v2699_v24 = vsel %vm2698_vm5, %v2697_v1, 0  ;;  %v4682_v25 = vpop.eup %4681  ;;  %v2683_v62 = vxor.u32 2147483648, %v4680_v38 }
 0x2a9   :  { %v2701_v60 = vand.u32 31, %v2699_v24  ;;  %v6824_v58 = vshll.u32 %v2695_v59, 8  ;;  %v2680_v12 = vxor.u32 2147483648, %v4682_v25  ;;  %v2700_v32 = vshrl.u32 %v2699_v24, 5 }
 0x2aa   :  { %v2563_v53 = vxor.u32 2147483648, %v2562_v22  ;;  %v6810_v29 = vshrl.u32 %v2852_v52, 30  ;;  %vm2678_vm8 = vcmp.lt.s32.totalorder %v6808_v43, 2  ;;  %v2684_v44 = vsel %vm2682_vm7, %v2683_v62, %v4682_v25 }
 0x2ab   :  { %v2702_v16 = vsub.s32 32, %v2701_v60  ;;  %v2704_v49 = vshll.u32 %v7270_v36, %v2701_v60  ;;  %v2707_v57 = vshll.u32 %v7271_v6, %v2701_v60  ;;  %v2710_v27 = vshll.u32 %v7272_v54, %v2701_v60 }
 0x2ac   :  { %v2564_v37 = vsel %vm2481_vm15, %v2563_v53, %v2562_v22  ;;  %v2854_v45 = vshll.u32 %v6810_v29, 30  ;;  %v2713_v41 = vshll.u32 %v7273_v48, %v2701_v60  ;;  %v2716_v20 = vshll.u32 %v7274_v21, %v2701_v60 }
 0x2ad   :  { %v2567_v42 = vsel %vm6791_vm3, %v6427_v10, %v2564_v37  ;;  %v2705_v26 = vshrl.u32 %v7271_v6, %v2702_v16  ;;  %v2708_v33 = vshrl.u32 %v7272_v54, %v2702_v16  ;;  %v2711_v19 = vshrl.u32 %v7273_v48, %v2702_v16 }
 0x2ae   :  { %4683 = vcosq.f32 %v2567_v42  ;;  %v6822_v15 = vsub.s32 %v2851_v50, %v2854_v45  ;;  %v2714_v3 = vshrl.u32 %v7274_v21, %v2702_v16  ;;  %v2717_v13 = vshrl.u32 %v7275_v61, %v2702_v16 }
 0x2af   :  { %4685 = vsinq.f32 %v2567_v42  ;;  %v2706_v55 = vor.u32 %v2705_v26, %v2704_v49  ;;  %v2709_v51 = vor.u32 %v2708_v33, %v2707_v57  ;;  %v2712_v6 = vor.u32 %v2711_v19, %v2710_v27 }
 0x2b0   :  { %v2857_v46 = vsub.s32 0, %v6822_v15  ;;  %v2715_v56 = vor.u32 %v2714_v3, %v2713_v41  ;;  %v2681_v54 = vsel %vm2679_vm6, %v4680_v38, %v2680_v12  ;;  %v2703_v48 = vshrl.u32 %v7270_v36, %v2702_v16 }
 0x2b1   :  { %vm2719_vm9 = vcmp.lt.s32.totalorder %v2700_v32, 1  ;;  %v2718_v2 = vor.u32 %v2717_v13, %v2716_v20  ;;  %vm2720_vm10 = vcmp.lt.s32.totalorder %v2700_v32, 2  ;;  %vm2721_vm11 = vcmp.lt.s32.totalorder %v2700_v32, 3 }
 0x2b2   :  { %v4040_v28 = vmin.u32 %v2857_v46, %v6822_v15  ;;  %vm2722_vm12 = vcmp.lt.s32.totalorder %v2700_v32, 4  ;;  %v2727_v34 = vsel %vm2719_vm9, %v2706_v55, %v2709_v51  ;;  %v2723_v50 = vsel %vm2719_vm9, %v2703_v48, %v2706_v55 }
 0x2b3   :  { %v2724_v4 = vsel %vm2722_vm12, %v2712_v6, 2102212464  ;;  %v2728_v8 = vsel %vm2722_vm12, %v2715_v56, 920167782  ;;  %v2731_v21 = vsel %vm2719_vm9, %v2709_v51, %v2712_v6  ;;  %v2732_v22 = vsel %vm2722_vm12, %v2718_v2, 1326507024 }
 0x2b4   :  { %v2859_v31 = vclz %v4040_v28  ;;  %v2729_v1 = vsel %vm2721_vm11, %v2712_v6, %v2728_v8  ;;  %v2725_v61 = vsel %vm2721_vm11, %v2709_v51, %v2724_v4  ;;  %v2733_v38 = vsel %vm2721_vm11, %v2715_v56, %v2732_v22  ;;  %v4612_v8 = vld [vmem:[#allocation2 + $0x50] sm:$0xff]   ;;  %v4613_v22 = vld [vmem:[#allocation2 + $0x48] sm:$0xff]  }
 0x2b5   :  { %v2730_v52 = vsel %vm2720_vm10, %v2727_v34, %v2729_v1  ;;  %v2734_v36 = vsel %vm2720_vm10, %v2731_v21, %v2733_v38  ;;  %v2685_v53 = vsel %vm2678_vm8, %v2681_v54, %v2684_v44  ;;  %vm2578_vm15 = vcmp.eq.s32.totalorder %v6820_v47, 2  ;;  %4440 = vmatprep.subr.bf16.mxu1 %v4612_v8 }
 0x2b6   :  { %v4041_v35 = vadd.s32 4294967294, %v2859_v31  ;;  %v6847_v24 = vmul.u32.u64.low %v6824_v58, %v2730_v52  ;;  %v6848_v25 = vmul.u32.u64.high %v6824_v58, %v2730_v52, %v6847_v24  ;;  %v2726_v12 = vsel %vm2720_vm10, %v2723_v50, %v2725_v61  ;;  %4441 = vmatpush3.bf16.msra.mxu1 %v4612_v8  ;;  %v4614_v52 = vld [vmem:[#allocation2 + $0x40] sm:$0xff]  }
 0x2b7   :  { %v6855_v37 = vmul.u32.u64.low %v6824_v58, %v2734_v36  ;;  %v6856_v45 = vmul.u32.u64.high %v6824_v58, %v2734_v36, %v6855_v37  ;;  %v2686_v26 = vsel %vm2675_vm14, nan, %v2685_v53  ;;  %vm2574_vm0 = vcmp.lt.s32.totalorder %v6820_v47, 2  ;;  %4442 = vmatprep.subr.bf16.mxu1 %v4613_v22 }
 0x2b8   :  { %vm4042_vm13 = vcmp.lt.s32.totalorder %v4041_v35, 0  ;;  %v2745_v43 = vadd.s32 1, %v6848_v25  ;;  %vm2575_vm1 = vcmp.eq.s32.totalorder %v6820_v47, 0  ;;  %v2847_v57 = vadd.s32 %v6775_v5, %v6772_v17  ;;  %v7344_v5 = vld [vmem:[#allocation9_spill] sm:$0xff] }
 0x2b9   :  { %v2862_v18 = vsel %vm4042_vm13, 0, %v4041_v35  ;;  %v2742_v19 = vmul.u32 %v6824_v58, %v2726_v12  ;;  %vm2744_vm2 = vc.u32 %v6856_v45, %v6847_v24  ;;  %v2912_v32 = vmul.f32 %v5439_v9, %v2686_v26 }
 0x2ba   :  { %v2867_v59 = vsub.s32 4294967266, %v2862_v18  ;;  %v2863_v49 = vsub.s32 32, %v2862_v18  ;;  %vm2571_vm3 = vweird.f32 %v6427_v10  ;;  %v2746_v3 = vsel %vm2744_vm2, %v2745_v43, %v6848_v25  ;;  %4443 = vmatpush3.bf16.msra.mxu1 %v4613_v22  ;;  %v4616_v22 = vld [vmem:[#allocation2 + $0xb0] sm:$0xff]  }
 0x2bb   :  { %v4684_v60 = vpop.eup %4683  ;;  %v2747_v28 = vadd.s32 %v2746_v3, %v2742_v19  ;;  %v1207_v17 = vmul.f32 %v5422_v39, %v6329_v14  ;;  %v1206_v55 = vmul.f32 %v5422_v39, %v7344_v5  ;;  %v2864_v51 = vshll.u32 %v6822_v15, %v2862_v18  ;;  %4444 = vmatprep.subr.bf16.mxu1 %v4614_v52 }
 0x2bc   :  { %v4686_v42 = vpop.eup %4685  ;;  %v2579_v16 = vxor.u32 2147483648, %v4684_v60  ;;  %v2868_v62 = vadd.s32 127, %v2867_v59  ;;  %v2865_v47 = vshrl.u32 %v2847_v57, %v2863_v49  ;;  %vm2793_vm4 = vcmp.lt.s32.totalorder %v6622_v7, 0 }
 0x2bd   :  { %v2576_v46 = vxor.u32 2147483648, %v4686_v42  ;;  %v2748_v56 = vadd.s32 536870912, %v2747_v28  ;;  %v2928_v20 = vadd.f32 %v2912_v32, %v1207_v17  ;;  %vm6882_vm6 = vcmp.le.f32.partialorder %v2791_v11, 0.7853982 }
 0x2be   :  { %v2580_v40 = vsel %vm2578_vm15, %v2579_v16, %v4686_v42  ;;  %v2869_v27 = vshll.u32 %v2868_v62, 23  ;;  %v2866_v13 = vor.u32 %v2865_v47, %v2864_v51  ;;  %v2743_v36 = vadd.s32 %v6847_v24, %v6856_v45  ;;  %4445 = vmatpush3.bf16.msra.mxu1 %v4614_v52 }
 0x2bf   :  { %v2577_v33 = vsel %vm2575_vm1, %v4684_v60, %v2576_v46  ;;  %v2749_v54 = vshrl.u32 %v2748_v56, 30  ;;  %v2877_v62 = vsub.s32 4, %v6810_v29  ;;  %vm2689_vm7 = vcmp.lt.s32.totalorder %v6738_v23, 0 }
 0x2c0   :  { %v2581_v41 = vsel %vm2574_vm0, %v2577_v33, %v2580_v40  ;;  %v2870_v6 = vor.u32 4788187, %v2869_v27  ;;  %v2873_v35 = vcvt.s32.f32 %v2866_v13  ;;  %vm2688_vm8 = vcmp.le.f32.partialorder %v2687_v63, 0.7853982 }
 0x2c1   :  { %v2582_v44 = vsel %vm2571_vm3, nan, %v2581_v41  ;;  %v2750_v2 = vshll.u32 %v2749_v54, 30  ;;  %v2878_v45 = vsel %vm2793_vm4, %v2877_v62, %v6810_v29  ;;  %v2773_v40 = vsub.s32 4, %v2749_v54 }
 0x2c2   :  { %v2911_v58 = vmul.f32 %v5439_v9, %v2582_v44  ;;  %v2871_v48 = vand.u32 2147483647, %v2870_v6  ;;  %v2880_v43 = vsel %vm6882_vm6, 0, %v2878_v45  ;;  %vm2883_vm12 = vweird.f32 %v6622_v7 }
 0x2c3   :  { %v2751_v4 = vsub.s32 %v2747_v28, %v2750_v2  ;;  %v2884_v27 = vadd.s32 3, %v2880_v43  ;;  %v2774_v32 = vsel %vm2689_vm7, %v2773_v40, %v2749_v54  ;;  %vm2779_vm0 = vweird.f32 %v6738_v23 }
 0x2c4   :  { %v2927_v10 = vadd.f32 %v2911_v58, %v1206_v55  ;;  %v2874_v14 = vmul.f32 %v2873_v35, %v2871_v48  ;;  %v2776_v3 = vsel %vm2688_vm8, 0, %v2774_v32  ;;  %v1209_v2 = vmul.f32 %v5422_v39, %v6586_v30 }
 0x2c5   :  { %v2753_v34 = vsub.s32 0, %v2751_v4  ;;  %v2885_v41 = vand.u32 3, %v2884_v27  ;;  %v2780_v28 = vadd.s32 3, %v2776_v3 }
 0x2c6   :  { %v2953_v31 = vpack.c.bf16 %v2928_v20, %v2927_v10  ;;  %v2875_v1 = vxor.u32 2147483648, %v2874_v14 }
 0x2c7   :  { %v4036_v50 = vmin.u32 %v2753_v34, %v2751_v4  ;;  %vm2887_vm9 = vcmp.eq.s32.totalorder %v2885_v41, 0  ;;  %vm2890_vm10 = vcmp.eq.s32.totalorder %v2885_v41, 2  ;;  %vm2886_vm11 = vcmp.lt.s32.totalorder %v2885_v41, 2 }
 0x2c8   :  { %4426 = vmatprep.mubr.bf16.mxu0 %v2953_v31  ;;  %v2876_v61 = vsel %vm2793_vm4, %v2875_v1, %v2874_v14  ;;  %v2781_v63 = vand.u32 3, %v2780_v28 }
 0x2c9   :  { %v2755_v15 = vclz %v4036_v50  ;;  %v2879_v59 = vsel %vm6882_vm6, %v6622_v7, %v2876_v61  ;;  %v1208_v7 = vmul.f32 %v5422_v39, %v6703_v0  ;;  %v4617_v0 = vld [vmem:[#allocation2 + $0xa8] sm:$0xff]  }
 0x2ca   :  { %4687 = vcosq.f32 %v2879_v59  ;;  %vm2786_vm13 = vcmp.eq.s32.totalorder %v2781_v63, 2  ;;  %vm2783_vm14 = vcmp.eq.s32.totalorder %v2781_v63, 0  ;;  %vm2782_vm15 = vcmp.lt.s32.totalorder %v2781_v63, 2 }
 0x2cb   :  { %v4037_v21 = vadd.s32 4294967294, %v2755_v15  ;;  %4689 = vsinq.f32 %v2879_v59 }
 0x2cd   :  { %vm4038_vm5 = vcmp.lt.s32.totalorder %v4037_v21, 0 }
 0x2ce   :  { %v2758_v38 = vsel %vm4038_vm5, 0, %v4037_v21 }
 0x2cf   :  { %v2759_v25 = vsub.s32 32, %v2758_v38  ;;  %v2763_v53 = vsub.s32 4294967266, %v2758_v38  ;;  %v2760_v60 = vshll.u32 %v2751_v4, %v2758_v38 }
 0x2d1   :  { %v2761_v37 = vshrl.u32 %v2743_v36, %v2759_v25  ;;  %v2764_v42 = vadd.s32 127, %v2763_v53 }
 0x2d3   :  { %v2762_v16 = vor.u32 %v2761_v37, %v2760_v60  ;;  %v2765_v11 = vshll.u32 %v2764_v42, 23 }
 0x2d5   :  { %v2766_v12 = vor.u32 4788187, %v2765_v11  ;;  %v2769_v24 = vcvt.s32.f32 %v2762_v16  ;;  %v4618_v16 = vld [vmem:[#allocation2 + $0xa0] sm:$0xff]  }
 0x2d7   :  { %v2767_v26 = vand.u32 2147483647, %v2766_v12  ;;  %v4688_v19 = vpop.eup %4687 }
 0x2d8   :  { %v4690_v29 = vpop.eup %4689  ;;  %v2891_v47 = vxor.u32 2147483648, %v4688_v19 }
 0x2d9   :  { %v2770_v46 = vmul.f32 %v2769_v24, %v2767_v26  ;;  %v2888_v44 = vxor.u32 2147483648, %v4690_v29 }
 0x2da   :  { %v2892_v5 = vsel %vm2890_vm10, %v2891_v47, %v4690_v29 }
 0x2db   :  { %v2771_v49 = vxor.u32 2147483648, %v2770_v46  ;;  %v2889_v17 = vsel %vm2887_vm9, %v4688_v19, %v2888_v44 }
 0x2dc   :  { %v2893_v55 = vsel %vm2886_vm11, %v2889_v17, %v2892_v5 }
 0x2dd   :  { %v2772_v57 = vsel %vm2689_vm7, %v2771_v49, %v2770_v46  ;;  %v2894_v56 = vsel %vm2883_vm12, nan, %v2893_v55  ;;  %v4619_v46 = vld [vmem:[#allocation2 + $0x98] sm:$0xff]   ;;  %v4620_v55 = vld [vmem:[#allocation2 + $0x90] sm:$0xff]  }
 0x2de   :  { %v2775_v33 = vsel %vm2688_vm8, %v6738_v23, %v2772_v57  ;;  %v2914_v54 = vmul.f32 %v5439_v9, %v2894_v56  ;;  %v4615_v23 = vld [vmem:[#allocation2 + $0xb8] sm:$0xff]  }
 0x2df   :  { %4691 = vcosq.f32 %v2775_v33  ;;  %4462 = vmatprep.subr.bf16.mxu0 %v4615_v23 }
 0x2e0   :  { %4693 = vsinq.f32 %v2775_v33  ;;  %v2930_v4 = vadd.f32 %v2914_v54, %v1209_v2  ;;  %4463 = vmatpush3.bf16.msra.mxu0 %v4615_v23  ;;  %v4623_v23 = vld [vmem:[#allocation2 + $0xf8] sm:$0xff]  }
 0x2e1   :  { %4464 = vmatprep.subr.bf16.mxu0 %v4616_v22  ;;  %4494 = vmatprep.subr.bf16.mxu1 %v4623_v23 }
 0x2e4   :  { %4465 = vmatpush3.bf16.msra.mxu0 %v4616_v22  ;;  %v4624_v22 = vld [vmem:[#allocation2 + $0xf0] sm:$0xff]  }
 0x2e5   :  { %4466 = vmatprep.subr.bf16.mxu0 %v4617_v0 }
 0x2e8   :  { %4467 = vmatpush3.bf16.msra.mxu0 %v4617_v0  ;;  %v4625_v0 = vld [vmem:[#allocation2 + $0xe8] sm:$0xff]  }
 0x2e9   :  { %4468 = vmatprep.subr.bf16.mxu0 %v4618_v16 }
 0x2ec   :  { %v4692_v58 = vpop.eup %4691  ;;  %4469 = vmatpush3.bf16.msra.mxu0 %v4618_v16  ;;  %v4626_v16 = vld [vmem:[#allocation2 + $0xe0] sm:$0xff]  }
 0x2ed   :  { %v4694_v51 = vpop.eup %4693  ;;  %v2787_v6 = vxor.u32 2147483648, %v4692_v58  ;;  %4470 = vmatprep.subr.bf16.mxu0 %v4619_v46 }
 0x2ee   :  { %v2784_v20 = vxor.u32 2147483648, %v4694_v51 }
 0x2ef   :  { %v2788_v10 = vsel %vm2786_vm13, %v2787_v6, %v4694_v51  ;;  %v4622_v51 = vld [vmem:[#allocation2 + $0x80] sm:$0xff]  }
 0x2f0   :  { %v2785_v13 = vsel %vm2783_vm14, %v4692_v58, %v2784_v20  ;;  %4471 = vmatpush3.bf16.msra.mxu0 %v4619_v46  ;;  %v4621_v58 = vld [vmem:[#allocation2 + $0x88] sm:$0xff]   ;;  %v4627_v46 = vld [vmem:[#allocation2 + $0xd8] sm:$0xff]  }
 0x2f1   :  { %v2789_v31 = vsel %vm2782_vm15, %v2785_v13, %v2788_v10  ;;  %4472 = vmatprep.subr.bf16.mxu0 %v4620_v55 }
 0x2f2   :  { %v2790_v48 = vsel %vm2779_vm0, nan, %v2789_v31 }
 0x2f3   :  { %v2913_v35 = vmul.f32 %v5439_v9, %v2790_v48 }
 0x2f4   :  { %4473 = vmatpush3.bf16.msra.mxu0 %v4620_v55  ;;  %v4628_v55 = vld [vmem:[#allocation2 + $0xd0] sm:$0xff]  }
 0x2f5   :  { %v2929_v14 = vadd.f32 %v2913_v35, %v1208_v7  ;;  %4474 = vmatprep.subr.bf16.mxu0 %v4621_v58 }
 0x2f7   :  { %v2954_v34 = vpack.c.bf16 %v2930_v4, %v2929_v14 }
 0x2f8   :  { %4475 = vmatpush3.bf16.msra.mxu0 %v4621_v58  ;;  %v4629_v58 = vld [vmem:[#allocation2 + $0xc8] sm:$0xff]  }
 0x2f9   :  { %4427 = vmatmul.mubr.bf16.gmra.mxu0 %v2954_v34  ;;  %4476 = vmatprep.subr.bf16.mxu0 %v4622_v51 }
 0x2fc   :  { %4477 = vmatpush3.bf16.msra.mxu0 %v4622_v51  ;;  %v4630_v51 = vld [vmem:[#allocation2 + $0xc0] sm:$0xff]  }
 0x349   :  { %v4416_v8 = vpop.f32.mrf.mxu0 }
 0x34a   :  { %v3102_v61 = vmul.f32 0.2, %v4416_v8 }
 0x34b   :  { %v3037_v50 = vpop.f32.mrf.mxu0 }
 0x34c   :  { %v3100_v15 = vmul.f32 0.2, %v3037_v50  ;;  %v3118_v36 = vmax.f32 %v4416_v8, %v3102_v61 }
 0x34d   :  { %v4417_v1 = vpop.f32.mrf.mxu0 }
 0x34e   :  { %v3103_v21 = vmul.f32 0.2, %v4417_v1  ;;  %v3116_v39 = vmax.f32 %v3037_v50, %v3100_v15 }
 0x34f   :  { %v3040_v52 = vpop.f32.mrf.mxu0 }
 0x350   :  { %v3101_v38 = vmul.f32 0.2, %v3040_v52  ;;  %v3119_v30 = vmax.f32 %v4417_v1, %v3103_v21 }
 0x351   :  { %v4420_v18 = vpop.f32.mrf.mxu0 }
 0x352   :  { %v3117_v9 = vmax.f32 %v3040_v52, %v3101_v38  ;;  %v3149_v59 = vpack.c.bf16 %v3119_v30, %v3118_v36  ;;  %v3106_v11 = vmul.f32 0.2, %v4420_v18 }
 0x353   :  { %v3053_v25 = vpop.f32.mrf.mxu0 }
 0x354   :  { %v3148_v53 = vpack.c.bf16 %v3117_v9, %v3116_v39  ;;  %v3104_v37 = vmul.f32 0.2, %v3053_v25  ;;  %v3122_v49 = vmax.f32 %v4420_v18, %v3106_v11 }
 0x355   :  { %v4421_v60 = vpop.f32.mrf.mxu0 }
 0x356   :  { %v3107_v42 = vmul.f32 0.2, %v4421_v60  ;;  %4446 = vmatprep.mubr.bf16.mxu1 %v3148_v53  ;;  %v3120_v24 = vmax.f32 %v3053_v25, %v3104_v37 }
 0x357   :  { %v3056_v62 = vpop.f32.mrf.mxu0  ;;  %4447 = vmatmul.mubr.bf16.vlgmr.msra.gmra.mxu1 %v3149_v59 }
 0x358   :  { %v3105_v12 = vmul.f32 0.2, %v3056_v62  ;;  %v3123_v26 = vmax.f32 %v4421_v60, %v3107_v42  ;;  %4495 = vmatpush3.bf16.msra.mxu1 %v4623_v23 }
 0x359   :  { %4496 = vmatprep.subr.bf16.mxu1 %v4624_v22 }
 0x35a   :  { %v3121_v45 = vmax.f32 %v3056_v62, %v3105_v12  ;;  %v3151_v40 = vpack.c.bf16 %v3123_v26, %v3122_v49 }
 0x35c   :  { %v3150_v43 = vpack.c.bf16 %v3121_v45, %v3120_v24  ;;  %4497 = vmatpush3.bf16.msra.mxu1 %v4624_v22 }
 0x35d   :  { %4498 = vmatprep.subr.bf16.mxu1 %v4625_v0 }
 0x35e   :  { %4450 = vmatprep.mubr.bf16.mxu1 %v3150_v43 }
 0x35f   :  { %4451 = vmatmul.mubr.bf16.gmra.mxu1 %v3151_v40 }
 0x360   :  { %4499 = vmatpush3.bf16.msra.mxu1 %v4625_v0 }
 0x361   :  { %4500 = vmatprep.subr.bf16.mxu1 %v4626_v16 }
 0x364   :  { %v4424_v57 = vpop.f32.mrf.mxu0  ;;  %4501 = vmatpush3.bf16.msra.mxu1 %v4626_v16 }
 0x365   :  { %v3110_v29 = vmul.f32 0.2, %v4424_v57  ;;  %4502 = vmatprep.subr.bf16.mxu1 %v4627_v46 }
 0x366   :  { %v3069_v33 = vpop.f32.mrf.mxu0 }
 0x367   :  { %v3108_v19 = vmul.f32 0.2, %v3069_v33  ;;  %v3126_v17 = vmax.f32 %v4424_v57, %v3110_v29 }
 0x368   :  { %v4425_v27 = vpop.f32.mrf.mxu0  ;;  %4503 = vmatpush3.bf16.msra.mxu1 %v4627_v46 }
 0x369   :  { %v3111_v32 = vmul.f32 0.2, %v4425_v27  ;;  %v3124_v47 = vmax.f32 %v3069_v33, %v3108_v19  ;;  %4504 = vmatprep.subr.bf16.mxu1 %v4628_v55 }
 0x36a   :  { %v3072_v41 = vpop.f32.mrf.mxu0 }
 0x36b   :  { %v3109_v3 = vmul.f32 0.2, %v3072_v41  ;;  %v3127_v44 = vmax.f32 %v4425_v27, %v3111_v32 }
 0x36c   :  { %4505 = vmatpush3.bf16.msra.mxu1 %v4628_v55 }
 0x36d   :  { %v3125_v28 = vmax.f32 %v3072_v41, %v3109_v3  ;;  %v3153_v63 = vpack.c.bf16 %v3127_v44, %v3126_v17  ;;  %4506 = vmatprep.subr.bf16.mxu1 %v4629_v58 }
 0x36f   :  { %v3152_v5 = vpack.c.bf16 %v3125_v28, %v3124_v47 }
 0x370   :  { %4507 = vmatpush3.bf16.msra.mxu1 %v4629_v58 }
 0x371   :  { %4454 = vmatprep.mubr.bf16.mxu1 %v3152_v5  ;;  %4508 = vmatprep.subr.bf16.mxu1 %v4630_v51 }
 0x372   :  { %4455 = vmatmul.mubr.bf16.gmra.mxu1 %v3153_v63 }
 0x374   :  { %4509 = vmatpush3.bf16.msra.mxu1 %v4630_v51 }
 0x3b9   :  { %v4428_v6 = vpop.f32.mrf.mxu0 }
 0x3ba   :  { %v3114_v54 = vmul.f32 0.2, %v4428_v6 }
 0x3bb   :  { %v3085_v56 = vpop.f32.mrf.mxu0 }
 0x3bc   :  { %v3112_v10 = vmul.f32 0.2, %v3085_v56  ;;  %v3130_v4 = vmax.f32 %v4428_v6, %v3114_v54 }
 0x3bd   :  { %v4429_v20 = vpop.f32.mrf.mxu0 }
 0x3be   :  { %v3115_v13 = vmul.f32 0.2, %v4429_v20  ;;  %v3128_v7 = vmax.f32 %v3085_v56, %v3112_v10 }
 0x3bf   :  { %v3088_v31 = vpop.f32.mrf.mxu0 }
 0x3c0   :  { %v3113_v48 = vmul.f32 0.2, %v3088_v31  ;;  %v3131_v2 = vmax.f32 %v4429_v20, %v3115_v13 }
 0x3c2   :  { %v3129_v35 = vmax.f32 %v3088_v31, %v3113_v48  ;;  %v3155_v34 = vpack.c.bf16 %v3131_v2, %v3130_v4 }
 0x3c4   :  { %v3154_v14 = vpack.c.bf16 %v3129_v35, %v3128_v7 }
 0x3c6   :  { %4458 = vmatprep.mubr.bf16.mxu1 %v3154_v14 }
 0x3c7   :  { %4459 = vmatmul.mubr.bf16.gmra.mxu1 %v3155_v34 }
 0x417   :  { %v4448_v8 = vpop.f32.mrf.mxu1 }
 0x418   :  { %v3303_v61 = vmul.f32 0.2, %v4448_v8 }
 0x419   :  { %v3238_v50 = vpop.f32.mrf.mxu1 }
 0x41a   :  { %v3301_v15 = vmul.f32 0.2, %v3238_v50  ;;  %v3319_v36 = vmax.f32 %v4448_v8, %v3303_v61 }
 0x41b   :  { %v4449_v1 = vpop.f32.mrf.mxu1 }
 0x41c   :  { %v3304_v21 = vmul.f32 0.2, %v4449_v1  ;;  %v3317_v39 = vmax.f32 %v3238_v50, %v3301_v15 }
 0x41d   :  { %v3241_v52 = vpop.f32.mrf.mxu1 }
 0x41e   :  { %v3302_v38 = vmul.f32 0.2, %v3241_v52  ;;  %v3320_v30 = vmax.f32 %v4449_v1, %v3304_v21 }
 0x41f   :  { %v4452_v18 = vpop.f32.mrf.mxu1 }
 0x420   :  { %v3318_v9 = vmax.f32 %v3241_v52, %v3302_v38  ;;  %v3350_v59 = vpack.c.bf16 %v3320_v30, %v3319_v36  ;;  %v3307_v11 = vmul.f32 0.2, %v4452_v18 }
 0x421   :  { %v3254_v25 = vpop.f32.mrf.mxu1 }
 0x422   :  { %v3349_v53 = vpack.c.bf16 %v3318_v9, %v3317_v39  ;;  %v3305_v37 = vmul.f32 0.2, %v3254_v25  ;;  %v3323_v49 = vmax.f32 %v4452_v18, %v3307_v11 }
 0x423   :  { %v4453_v60 = vpop.f32.mrf.mxu1 }
 0x424   :  { %v3308_v42 = vmul.f32 0.2, %v4453_v60  ;;  %4478 = vmatprep.mubr.bf16.mxu0 %v3349_v53  ;;  %v3321_v24 = vmax.f32 %v3254_v25, %v3305_v37 }
 0x425   :  { %v3257_v62 = vpop.f32.mrf.mxu1  ;;  %4479 = vmatmul.mubr.bf16.vlgmr.msra.gmra.mxu0 %v3350_v59 }
 0x426   :  { %v3306_v12 = vmul.f32 0.2, %v3257_v62  ;;  %v3324_v26 = vmax.f32 %v4453_v60, %v3308_v42 }
 0x428   :  { %v3322_v45 = vmax.f32 %v3257_v62, %v3306_v12  ;;  %v3352_v40 = vpack.c.bf16 %v3324_v26, %v3323_v49 }
 0x42a   :  { %v3351_v43 = vpack.c.bf16 %v3322_v45, %v3321_v24 }
 0x42c   :  { %4482 = vmatprep.mubr.bf16.mxu0 %v3351_v43 }
 0x42d   :  { %4483 = vmatmul.mubr.bf16.gmra.mxu0 %v3352_v40 }
 0x432   :  { %v4456_v57 = vpop.f32.mrf.mxu1 }
 0x433   :  { %v3311_v29 = vmul.f32 0.2, %v4456_v57 }
 0x434   :  { %v3270_v33 = vpop.f32.mrf.mxu1 }
 0x435   :  { %v3309_v19 = vmul.f32 0.2, %v3270_v33  ;;  %v3327_v17 = vmax.f32 %v4456_v57, %v3311_v29 }
 0x436   :  { %v4457_v27 = vpop.f32.mrf.mxu1 }
 0x437   :  { %v3312_v32 = vmul.f32 0.2, %v4457_v27  ;;  %v3325_v47 = vmax.f32 %v3270_v33, %v3309_v19 }
 0x438   :  { %v3273_v41 = vpop.f32.mrf.mxu1 }
 0x439   :  { %v3310_v3 = vmul.f32 0.2, %v3273_v41  ;;  %v3328_v44 = vmax.f32 %v4457_v27, %v3312_v32 }
 0x43b   :  { %v3326_v28 = vmax.f32 %v3273_v41, %v3310_v3  ;;  %v3354_v63 = vpack.c.bf16 %v3328_v44, %v3327_v17 }
 0x43d   :  { %v3353_v5 = vpack.c.bf16 %v3326_v28, %v3325_v47 }
 0x43f   :  { %4486 = vmatprep.mubr.bf16.mxu0 %v3353_v5 }
 0x440   :  { %4487 = vmatmul.mubr.bf16.gmra.mxu0 %v3354_v63 }
 0x487   :  { %v4460_v6 = vpop.f32.mrf.mxu1 }
 0x488   :  { %v3315_v54 = vmul.f32 0.2, %v4460_v6 }
 0x489   :  { %v3286_v56 = vpop.f32.mrf.mxu1 }
 0x48a   :  { %v3313_v10 = vmul.f32 0.2, %v3286_v56  ;;  %v3331_v4 = vmax.f32 %v4460_v6, %v3315_v54 }
 0x48b   :  { %v4461_v20 = vpop.f32.mrf.mxu1 }
 0x48c   :  { %v3316_v13 = vmul.f32 0.2, %v4461_v20  ;;  %v3329_v7 = vmax.f32 %v3286_v56, %v3313_v10 }
 0x48d   :  { %v3289_v31 = vpop.f32.mrf.mxu1 }
 0x48e   :  { %v3314_v48 = vmul.f32 0.2, %v3289_v31  ;;  %v3332_v2 = vmax.f32 %v4461_v20, %v3316_v13 }
 0x490   :  { %v3330_v35 = vmax.f32 %v3289_v31, %v3314_v48  ;;  %v3356_v34 = vpack.c.bf16 %v3332_v2, %v3331_v4  ;;  %v48_v31 = vld [vmem:[%s7217_s2 + $0xa] sm:$0x1] }
 0x491   :  { %v3723_v48 = vsub.f32 1.0, %v48_v31 }
 0x492   :  { %v3355_v14 = vpack.c.bf16 %v3330_v35, %v3329_v7  ;;  %v7347_v7 = vld [vmem:[#allocation23_spill] sm:$0xff] }
 0x493   :  { %v3724_v2 = vmul.f32 1e+30, %v3723_v48  ;;  %v6913_v35 = vrot.slane %v48_v31, %v7347_v7 }
 0x494   :  { %4490 = vmatprep.mubr.bf16.mxu0 %v3355_v14 }
 0x495   :  { %4491 = vmatmul.mubr.bf16.gmra.mxu0 %v3356_v34  ;;  %v6916_v4 = vrot.slane %v3724_v2, %v7347_v7 }
 0x4e5   :  { %v4480_v8 = vpop.f32.mrf.mxu0 }
 0x4e6   :  { %v3504_v23 = vmul.f32 0.2, %v4480_v8 }
 0x4e7   :  { %v3439_v50 = vpop.f32.mrf.mxu0 }
 0x4e8   :  { %v3502_v15 = vmul.f32 0.2, %v3439_v50  ;;  %v3520_v39 = vmax.f32 %v4480_v8, %v3504_v23 }
 0x4e9   :  { %v4481_v1 = vpop.f32.mrf.mxu0 }
 0x4ea   :  { %v3505_v21 = vmul.f32 0.2, %v4481_v1  ;;  %v3518_v30 = vmax.f32 %v3439_v50, %v3502_v15 }
 0x4eb   :  { %v3442_v22 = vpop.f32.mrf.mxu0 }
 0x4ec   :  { %v3503_v61 = vmul.f32 0.2, %v3442_v22  ;;  %v3521_v52 = vmax.f32 %v4481_v1, %v3505_v21 }
 0x4ed   :  { %v4484_v38 = vpop.f32.mrf.mxu0 }
 0x4ee   :  { %v3519_v18 = vmax.f32 %v3442_v22, %v3503_v61  ;;  %v3551_v36 = vpack.c.bf16 %v3521_v52, %v3520_v39  ;;  %v3508_v60 = vmul.f32 0.2, %v4484_v38 }
 0x4ef   :  { %v3455_v9 = vpop.f32.mrf.mxu0 }
 0x4f0   :  { %v3550_v0 = vpack.c.bf16 %v3519_v18, %v3518_v30  ;;  %v3506_v53 = vmul.f32 0.2, %v3455_v9  ;;  %v3524_v12 = vmax.f32 %v4484_v38, %v3508_v60 }
 0x4f1   :  { %v4485_v25 = vpop.f32.mrf.mxu0 }
 0x4f2   :  { %v3509_v59 = vmul.f32 0.2, %v4485_v25  ;;  %4510 = vmatprep.mubr.bf16.mxu1 %v3550_v0  ;;  %v3522_v11 = vmax.f32 %v3455_v9, %v3506_v53 }
 0x4f3   :  { %v3458_v37 = vpop.f32.mrf.mxu0  ;;  %4511 = vmatmul.mubr.bf16.vlgmr.msra.gmra.mxu1 %v3551_v36 }
 0x4f4   :  { %v3507_v42 = vmul.f32 0.2, %v3458_v37  ;;  %v3525_v16 = vmax.f32 %v4485_v25, %v3509_v59 }
 0x4f6   :  { %v3523_v62 = vmax.f32 %v3458_v37, %v3507_v42  ;;  %v3553_v24 = vpack.c.bf16 %v3525_v16, %v3524_v12 }
 0x4f8   :  { %v3552_v26 = vpack.c.bf16 %v3523_v62, %v3522_v11 }
 0x4fa   :  { %4514 = vmatprep.mubr.bf16.mxu1 %v3552_v26 }
 0x4fb   :  { %4515 = vmatmul.mubr.bf16.gmra.mxu1 %v3553_v24 }
 0x500   :  { %v4488_v45 = vpop.f32.mrf.mxu0 }
 0x501   :  { %v3512_v57 = vmul.f32 0.2, %v4488_v45 }
 0x502   :  { %v3471_v46 = vpop.f32.mrf.mxu0 }
 0x503   :  { %v3510_v43 = vmul.f32 0.2, %v3471_v46  ;;  %v3528_v41 = vmax.f32 %v4488_v45, %v3512_v57 }
 0x504   :  { %v4489_v49 = vpop.f32.mrf.mxu0 }
 0x505   :  { %v3513_v40 = vmul.f32 0.2, %v4489_v49  ;;  %v3526_v32 = vmax.f32 %v3471_v46, %v3510_v43 }
 0x506   :  { %v3474_v33 = vpop.f32.mrf.mxu0 }
 0x507   :  { %v3511_v27 = vmul.f32 0.2, %v3474_v33  ;;  %v3529_v19 = vmax.f32 %v4489_v49, %v3513_v40 }
 0x509   :  { %v3527_v29 = vmax.f32 %v3474_v33, %v3511_v27  ;;  %v3555_v44 = vpack.c.bf16 %v3529_v19, %v3528_v41 }
 0x50b   :  { %v3554_v3 = vpack.c.bf16 %v3527_v29, %v3526_v32 }
 0x50d   :  { %4518 = vmatprep.mubr.bf16.mxu1 %v3554_v3 }
 0x50e   :  { %4519 = vmatmul.mubr.bf16.gmra.mxu1 %v3555_v44 }
 0x555   :  { %v4492_v47 = vpop.f32.mrf.mxu0 }
 0x556   :  { %v3516_v55 = vmul.f32 0.2, %v4492_v47 }
 0x557   :  { %v3487_v28 = vpop.f32.mrf.mxu0 }
 0x558   :  { %v3514_v5 = vmul.f32 0.2, %v3487_v28  ;;  %v3532_v10 = vmax.f32 %v4492_v47, %v3516_v55 }
 0x559   :  { %v4493_v17 = vpop.f32.mrf.mxu0 }
 0x55a   :  { %v3517_v63 = vmul.f32 0.2, %v4493_v17  ;;  %v3530_v56 = vmax.f32 %v3487_v28, %v3514_v5 }
 0x55b   :  { %v3490_v58 = vpop.f32.mrf.mxu0 }
 0x55c   :  { %v3515_v51 = vmul.f32 0.2, %v3490_v58  ;;  %v3533_v6 = vmax.f32 %v4493_v17, %v3517_v63 }
 0x55e   :  { %v3531_v20 = vmax.f32 %v3490_v58, %v3515_v51  ;;  %v3557_v54 = vpack.c.bf16 %v3533_v6, %v3532_v10 }
 0x560   :  { %v3556_v13 = vpack.c.bf16 %v3531_v20, %v3530_v56 }
 0x562   :  { %4522 = vmatprep.mubr.bf16.mxu1 %v3556_v13 }
 0x563   :  { %4523 = vmatmul.mubr.bf16.gmra.mxu1 %v3557_v54 }
 0x5b3   :  { %v6918_v14 = vpop.f32.mrf.mxu1 }
 0x5b4   :  { %v3709_v34 = vmul.f32 %v6918_v14, %v6913_v35 }
 0x5b5   :  { %v6922_v8 = vpop.f32.mrf.mxu1 }
 0x5b6   :  { %v3707_v50 = vmul.f32 %v6913_v35, %v6922_v8  ;;  %v6927_v1 = vsub.f32 %v3709_v34, %v6916_v4 }
 0x5b7   :  { %v6929_v15 = vpop.f32.mrf.mxu1 }
 0x5b8   :  { %v3710_v21 = vmul.f32 %v6929_v15, %v6913_v35  ;;  %3749 = vmax.xlane.f32.xlu1 %v6927_v1  ;;  %v6935_v23 = vsub.f32 %v3707_v50, %v6916_v4 }
 0x5b9   :  { %v6937_v22 = vpop.f32.mrf.mxu1 }
 0x5ba   :  { %v3708_v61 = vmul.f32 %v6913_v35, %v6937_v22  ;;  %3745 = vmax.xlane.f32.xlu0 %v6935_v23  ;;  %v6943_v52 = vsub.f32 %v3710_v21, %v6916_v4 }
 0x5bb   :  { %v6945_v38 = vpop.f32.mrf.mxu1 }
 0x5bc   :  { %v3713_v30 = vmul.f32 %v6945_v38, %v6913_v35  ;;  %3751 = vmax.xlane.f32.xlu1 %v6943_v52  ;;  %v3730_v18 = vsub.f32 %v3708_v61, %v6916_v4 }
 0x5bd   :  { %v6951_v39 = vpop.f32.mrf.mxu1 }
 0x5be   :  { %3747 = vmax.xlane.f32.xlu0 %v3730_v18  ;;  %v3711_v0 = vmul.f32 %v6913_v35, %v6951_v39  ;;  %v3735_v25 = vsub.f32 %v3713_v30, %v6916_v4 }
 0x5bf   :  { %v6953_v9 = vpop.f32.mrf.mxu1 }
 0x5c0   :  { %v3714_v36 = vmul.f32 %v6953_v9, %v6913_v35  ;;  %v6966_v37 = vsub.f32 %v3711_v0, %v6916_v4 }
 0x5c1   :  { %v6960_v53 = vpop.f32.mrf.mxu1 }
 0x5c2   :  { %v3712_v59 = vmul.f32 %v6913_v35, %v6960_v53  ;;  %3757 = vmax.xlane.f32.xlu0 %v3735_v25  ;;  %v3736_v60 = vsub.f32 %v3714_v36, %v6916_v4 }
 0x5c4   :  { %3759 = vmax.xlane.f32.xlu1 %v3736_v60  ;;  %v6970_v42 = vsub.f32 %v3712_v59, %v6916_v4 }
 0x5c6   :  { %3753 = vmax.xlane.f32.xlu0 %v6966_v37 }
 0x5c8   :  { %3755 = vmax.xlane.f32.xlu1 %v6970_v42 }
 0x5ce   :  { %v6973_v16 = vpop.f32.mrf.mxu1 }
 0x5cf   :  { %v3717_v11 = vmul.f32 %v6973_v16, %v6913_v35 }
 0x5d0   :  { %v6977_v62 = vpop.f32.mrf.mxu1 }
 0x5d1   :  { %v3715_v12 = vmul.f32 %v6913_v35, %v6977_v62  ;;  %v6982_v26 = vsub.f32 %v3717_v11, %v6916_v4 }
 0x5d2   :  { %v6984_v24 = vpop.f32.mrf.mxu1 }
 0x5d3   :  { %v3718_v45 = vmul.f32 %v6984_v24, %v6913_v35  ;;  %3765 = vmax.xlane.f32.xlu0 %v6982_v26  ;;  %v6997_v40 = vsub.f32 %v3715_v12, %v6916_v4 }
 0x5d4   :  { %v6989_v46 = vpop.f32.mrf.mxu1 }
 0x5d5   :  { %v3716_v49 = vmul.f32 %v6913_v35, %v6989_v46  ;;  %v6994_v43 = vsub.f32 %v3718_v45, %v6916_v4 }
 0x5d7   :  { %3767 = vmax.xlane.f32.xlu1 %v6994_v43  ;;  %3761 = vmax.xlane.f32.xlu0 %v6997_v40  ;;  %v7002_v57 = vsub.f32 %v3716_v49, %v6916_v4 }
 0x5db   :  { %3763 = vmax.xlane.f32.xlu1 %v7002_v57 }
 0x623   :  { %v7005_v33 = vpop.f32.mrf.mxu1 }
 0x624   :  { %v3721_v29 = vmul.f32 %v7005_v33, %v6913_v35 }
 0x625   :  { %v7007_v27 = vpop.f32.mrf.mxu1 }
 0x626   :  { %v3719_v19 = vmul.f32 %v6913_v35, %v7007_v27  ;;  %v7026_v28 = vsub.f32 %v3721_v29, %v6916_v4 }
 0x627   :  { %v7011_v32 = vpop.f32.mrf.mxu1 }
 0x628   :  { %v7016_v41 = vsub.f32 %v3719_v19, %v6916_v4  ;;  %v3722_v47 = vmul.f32 %v7011_v32, %v6913_v35 }
 0x629   :  { %v7018_v3 = vpop.f32.mrf.mxu1 }
 0x62a   :  { %v3720_v44 = vmul.f32 %v6913_v35, %v7018_v3  ;;  %3769 = vmax.xlane.f32.xlu0 %v7016_v41  ;;  %v7034_v5 = vsub.f32 %v3722_v47, %v6916_v4 }
 0x62c   :  { %v7029_v17 = vsub.f32 %v3720_v44, %v6916_v4 }
 0x62e   :  { %3773 = vmax.xlane.f32.xlu0 %v7026_v28  ;;  %3771 = vmax.xlane.f32.xlu1 %v7029_v17 }
 0x632   :  { %3775 = vmax.xlane.f32.xlu1 %v7034_v5 }
 0x641   :  { %v3750_v63 = vpop.xlane.xlu1 %3749 }
 0x642   :  { %v3779_v55 = vsub.f32 %v6927_v1, %v3750_v63 }
 0x643   :  { %v3746_v58 = vpop.xlane.xlu0 %3745 }
 0x644   :  { %v3797_v51 = vmul.f32 1.442695, %v3779_v55  ;;  %v3777_v6 = vsub.f32 %v6935_v23, %v3746_v58 }
 0x645   :  { %v3752_v56 = vpop.xlane.xlu1 %3751 }
 0x646   :  { %4695 = vpow2.f32 %v3797_v51  ;;  %v3793_v20 = vmul.f32 1.442695, %v3777_v6  ;;  %v3780_v10 = vsub.f32 %v6943_v52, %v3752_v56 }
 0x647   :  { %v3748_v13 = vpop.xlane.xlu0 %3747 }
 0x648   :  { %4697 = vpow2.f32 %v3793_v20  ;;  %v3799_v54 = vmul.f32 1.442695, %v3780_v10  ;;  %v3778_v31 = vsub.f32 %v3730_v18, %v3748_v13 }
 0x64a   :  { %4699 = vpow2.f32 %v3799_v54  ;;  %v3795_v48 = vmul.f32 1.442695, %v3778_v31 }
 0x64b   :  { %v3758_v2 = vpop.xlane.xlu0 %3757 }
 0x64c   :  { %4701 = vpow2.f32 %v3795_v48  ;;  %v3783_v7 = vsub.f32 %v3735_v25, %v3758_v2 }
 0x64d   :  { %v3760_v4 = vpop.xlane.xlu1 %3759 }
 0x64e   :  { %v3805_v34 = vmul.f32 1.442695, %v3783_v7  ;;  %v3784_v50 = vsub.f32 %v3736_v60, %v3760_v4 }
 0x64f   :  { %v3754_v1 = vpop.xlane.xlu0 %3753 }
 0x650   :  { %4703 = vpow2.f32 %v3805_v34  ;;  %v3807_v21 = vmul.f32 1.442695, %v3784_v50  ;;  %v3781_v23 = vsub.f32 %v6966_v37, %v3754_v1 }
 0x651   :  { %v3756_v61 = vpop.xlane.xlu1 %3755 }
 0x652   :  { %4705 = vpow2.f32 %v3807_v21  ;;  %v3801_v52 = vmul.f32 1.442695, %v3781_v23  ;;  %v3782_v30 = vsub.f32 %v6970_v42, %v3756_v61 }
 0x653   :  { %v4696_v0 = vpop.eup %4695 }
 0x654   :  { %4707 = vpow2.f32 %v3801_v52  ;;  %v3803_v18 = vmul.f32 1.442695, %v3782_v30  ;;  %v7043_v36 = vmul.f32 %v4696_v0, %v6913_v35 }
 0x655   :  { %v4698_v25 = vpop.eup %4697 }
 0x656   :  { %4709 = vpow2.f32 %v3803_v18  ;;  %3845 = vadd.xlane.f32.xlu0 %v7043_v36  ;;  %v7047_v60 = vmul.f32 %v4698_v25, %v6913_v35 }
 0x657   :  { %v4700_v59 = vpop.eup %4699 }
 0x658   :  { %v7050_v37 = vmul.f32 %v4700_v59, %v6913_v35 }
 0x659   :  { %v4702_v11 = vpop.eup %4701 }
 0x65a   :  { %3841 = vadd.xlane.f32.xlu0 %v7047_v60  ;;  %3847 = vadd.xlane.f32.xlu1 %v7050_v37  ;;  %v7055_v42 = vmul.f32 %v4702_v11, %v6913_v35 }
 0x65c   :  { %v3766_v45 = vpop.xlane.xlu0 %3765 }
 0x65d   :  { %v4704_v12 = vpop.eup %4703  ;;  %v3787_v49 = vsub.f32 %v6982_v26, %v3766_v45 }
 0x65e   :  { %3843 = vadd.xlane.f32.xlu1 %v7055_v42  ;;  %v7060_v19 = vmul.f32 %v4704_v12, %v6913_v35 }
 0x65f   :  { %v4706_v29 = vpop.eup %4705  ;;  %v3813_v44 = vmul.f32 1.442695, %v3787_v49 }
 0x660   :  { %3853 = vadd.xlane.f32.xlu0 %v7060_v19  ;;  %v7064_v47 = vmul.f32 %v4706_v29, %v6913_v35  ;;  %v3768_v55 = vpop.xlane.xlu1 %3767  ;;  %v3762_v58 = vpop.xlane.xlu0 %3761 }
 0x661   :  { %v4708_v63 = vpop.eup %4707  ;;  %4711 = vpow2.f32 %v3813_v44  ;;  %v3788_v51 = vsub.f32 %v6994_v43, %v3768_v55  ;;  %v3785_v26 = vsub.f32 %v6997_v40, %v3762_v58 }
 0x662   :  { %3855 = vadd.xlane.f32.xlu1 %v7064_v47  ;;  %v7070_v6 = vmul.f32 %v4708_v63, %v6913_v35 }
 0x663   :  { %v4710_v56 = vpop.eup %4709  ;;  %v3815_v20 = vmul.f32 1.442695, %v3788_v51  ;;  %v3809_v10 = vmul.f32 1.442695, %v3785_v26 }
 0x664   :  { %3849 = vadd.xlane.f32.xlu0 %v7070_v6  ;;  %v7074_v13 = vmul.f32 %v4710_v56, %v6913_v35  ;;  %v3764_v54 = vpop.xlane.xlu1 %3763  ;;  %v7117_v56 = vld [vmem:[%s7217_s2 + $0xb] ss:$0 sm:$0xff] }
 0x665   :  { %4713 = vpow2.f32 %v3815_v20  ;;  %v3786_v31 = vsub.f32 %v7002_v57, %v3764_v54  ;;  %v3927_v54 = vmul.f32 %v6918_v14, %v7117_v56  ;;  %v3928_v14 = vmul.f32 %v6929_v15, %v7117_v56 }
 0x666   :  { %3851 = vadd.xlane.f32.xlu1 %v7074_v13  ;;  %4715 = vpow2.f32 %v3809_v10  ;;  %v3931_v15 = vmul.f32 %v6945_v38, %v7117_v56 }
 0x667   :  { %v3811_v43 = vmul.f32 1.442695, %v3786_v31 }
 0x669   :  { %4717 = vpow2.f32 %v3811_v43 }
 0x66e   :  { %v4712_v40 = vpop.eup %4711 }
 0x66f   :  { %v7079_v48 = vmul.f32 %v4712_v40, %v6913_v35 }
 0x671   :  { %3861 = vadd.xlane.f32.xlu0 %v7079_v48 }
 0x672   :  { %v4714_v2 = vpop.eup %4713 }
 0x673   :  { %v4716_v7 = vpop.eup %4715  ;;  %v7083_v4 = vmul.f32 %v4714_v2, %v6913_v35 }
 0x674   :  { %v7086_v34 = vmul.f32 %v4716_v7, %v6913_v35 }
 0x675   :  { %3863 = vadd.xlane.f32.xlu1 %v7083_v4 }
 0x676   :  { %v4718_v57 = vpop.eup %4717  ;;  %3857 = vadd.xlane.f32.xlu0 %v7086_v34 }
 0x677   :  { %v7091_v50 = vmul.f32 %v4718_v57, %v6913_v35  ;;  %v3925_v57 = vmul.f32 %v7117_v56, %v6922_v8 }
 0x679   :  { %3859 = vadd.xlane.f32.xlu1 %v7091_v50 }
 0x6b3   :  { %v3770_v1 = vpop.xlane.xlu0 %3769 }
 0x6b4   :  { %v3789_v21 = vsub.f32 %v7016_v41, %v3770_v1 }
 0x6b6   :  { %v3817_v23 = vmul.f32 1.442695, %v3789_v21 }
 0x6b7   :  { %v3774_v61 = vpop.xlane.xlu0 %3773  ;;  %v3772_v52 = vpop.xlane.xlu1 %3771 }
 0x6b8   :  { %4719 = vpow2.f32 %v3817_v23  ;;  %v3791_v30 = vsub.f32 %v7026_v28, %v3774_v61  ;;  %v3790_v0 = vsub.f32 %v7029_v17, %v3772_v52  ;;  %v3926_v52 = vmul.f32 %v7117_v56, %v6937_v22 }
 0x6b9   :  { %v3932_v22 = vmul.f32 %v6953_v9, %v7117_v56 }
 0x6ba   :  { %v3821_v18 = vmul.f32 1.442695, %v3791_v30  ;;  %v3819_v25 = vmul.f32 1.442695, %v3790_v0 }
 0x6bb   :  { %v3776_v59 = vpop.xlane.xlu1 %3775 }
 0x6bc   :  { %4721 = vpow2.f32 %v3821_v18  ;;  %v3792_v11 = vsub.f32 %v7034_v5, %v3776_v59 }
 0x6bd   :  { %4723 = vpow2.f32 %v3819_v25 }
 0x6be   :  { %v3823_v12 = vmul.f32 1.442695, %v3792_v11  ;;  %v3929_v11 = vmul.f32 %v7117_v56, %v6951_v39 }
 0x6c0   :  { %4725 = vpow2.f32 %v3823_v12  ;;  %v3930_v12 = vmul.f32 %v7117_v56, %v6960_v53 }
 0x6c5   :  { %v4720_v45 = vpop.eup %4719 }
 0x6c6   :  { %v7099_v41 = vmul.f32 %v4720_v45, %v6913_v35 }
 0x6c8   :  { %3865 = vadd.xlane.f32.xlu0 %v7099_v41 }
 0x6c9   :  { %v4722_v49 = vpop.eup %4721 }
 0x6ca   :  { %v4724_v29 = vpop.eup %4723  ;;  %v7103_v28 = vmul.f32 %v4722_v49, %v6913_v35 }
 0x6cb   :  { %v7106_v17 = vmul.f32 %v4724_v29, %v6913_v35 }
 0x6cc   :  { %3869 = vadd.xlane.f32.xlu0 %v7103_v28 }
 0x6cd   :  { %v4726_v5 = vpop.eup %4725  ;;  %3867 = vadd.xlane.f32.xlu1 %v7106_v17 }
 0x6ce   :  { %v7111_v44 = vmul.f32 %v4726_v5, %v6913_v35  ;;  %v3935_v5 = vmul.f32 %v6973_v16, %v7117_v56 }
 0x6d1   :  { %3871 = vadd.xlane.f32.xlu1 %v7111_v44 }
 0x6df   :  { %v3846_v63 = vpop.xlane.xlu0 %3845 }
 0x6e0   :  { %4727 = vrcp.f32 %v3846_v63 }
 0x6e3   :  { %v3842_v55 = vpop.xlane.xlu0 %3841  ;;  %v3848_v58 = vpop.xlane.xlu1 %3847 }
 0x6e4   :  { %4729 = vrcp.f32 %v3842_v55 }
 0x6e5   :  { %4731 = vrcp.f32 %v3848_v58 }
 0x6e7   :  { %v3844_v51 = vpop.xlane.xlu1 %3843 }
 0x6e8   :  { %4733 = vrcp.f32 %v3844_v51  ;;  %v3936_v51 = vmul.f32 %v6984_v24, %v7117_v56 }
 0x6e9   :  { %v3854_v26 = vpop.xlane.xlu0 %3853 }
 0x6ea   :  { %4735 = vrcp.f32 %v3854_v26 }
 0x6eb   :  { %v3856_v20 = vpop.xlane.xlu1 %3855 }
 0x6ec   :  { %4737 = vrcp.f32 %v3856_v20  ;;  %v3933_v20 = vmul.f32 %v7117_v56, %v6977_v62 }
 0x6ed   :  { %v4728_v35 = vpop.eup %4727  ;;  %v3850_v10 = vpop.xlane.xlu0 %3849 }
 0x6ee   :  { %v3907_v31 = vmul.f32 %v4728_v35, %v7043_v36  ;;  %4739 = vrcp.f32 %v3850_v10 }
 0x6ef   :  { %v3852_v43 = vpop.xlane.xlu1 %3851 }
 0x6f0   :  { %v3943_v40 = vadd.f32 %v3927_v54, %v3907_v31  ;;  %4741 = vrcp.f32 %v3852_v43  ;;  %v3934_v54 = vmul.f32 %v7117_v56, %v6989_v46 }
 0x6f1   :  { %v4730_v2 = vpop.eup %4729 }
 0x6f2   :  { %v4732_v7 = vpop.eup %4731  ;;  %3959 = vst [vmem:[%s7218_s3 + $0x10] sm:$0xff] %v3943_v40  ;;  %v3905_v1 = vmul.f32 %v4730_v2, %v7047_v60 }
 0x6f3   :  { %v3908_v36 = vmul.f32 %v4732_v7, %v7050_v37 }
 0x6f4   :  { %v3941_v21 = vadd.f32 %v3925_v57, %v3905_v1  ;;  %v3939_v1 = vmul.f32 %v7005_v33, %v7117_v56  ;;  %v3940_v33 = vmul.f32 %v7011_v32, %v7117_v56 }
 0x6f5   :  { %v4734_v23 = vpop.eup %4733  ;;  %v3944_v61 = vadd.f32 %v3928_v14, %v3908_v36  ;;  %v3938_v36 = vmul.f32 %v7117_v56, %v7018_v3 }
 0x6f6   :  { %3957 = vst [vmem:[%s7218_s3] sm:$0xff] %v3941_v21  ;;  %v3906_v8 = vmul.f32 %v4734_v23, %v7055_v42 }
 0x6f7   :  { %v4736_v30 = vpop.eup %4735  ;;  %3960 = vst [vmem:[%s7218_s3 + $0x18] sm:$0xff] %v3944_v61 }
 0x6f8   :  { %v3942_v60 = vadd.f32 %v3926_v52, %v3906_v8  ;;  %v3911_v37 = vmul.f32 %v4736_v30, %v7060_v19 }
 0x6f9   :  { %v4738_v0 = vpop.eup %4737 }
 0x6fa   :  { %3958 = vst [vmem:[%s7218_s3 + $0x8] sm:$0xff] %v3942_v60  ;;  %v3947_v42 = vadd.f32 %v3931_v15, %v3911_v37  ;;  %v3912_v18 = vmul.f32 %v4738_v0, %v7064_v47  ;;  %v3862_v59 = vpop.xlane.xlu0 %3861 }
 0x6fb   :  { %v4740_v25 = vpop.eup %4739  ;;  %4743 = vrcp.f32 %v3862_v59 }
 0x6fc   :  { %3963 = vst [vmem:[%s7218_s3 + $0x30] sm:$0xff] %v3947_v42  ;;  %v3948_v38 = vadd.f32 %v3932_v22, %v3912_v18  ;;  %v3909_v19 = vmul.f32 %v4740_v25, %v7070_v6 }
 0x6fd   :  { %v4742_v9 = vpop.eup %4741 }
 0x6fe   :  { %3964 = vst [vmem:[%s7218_s3 + $0x38] sm:$0xff] %v3948_v38  ;;  %v3945_v47 = vadd.f32 %v3929_v11, %v3909_v19  ;;  %v3910_v45 = vmul.f32 %v4742_v9, %v7074_v13  ;;  %v3864_v39 = vpop.xlane.xlu1 %3863 }
 0x6ff   :  { %4745 = vrcp.f32 %v3864_v39  ;;  %v3858_v6 = vpop.xlane.xlu0 %3857 }
 0x700   :  { %3961 = vst [vmem:[%s7218_s3 + $0x20] sm:$0xff] %v3945_v47  ;;  %v3946_v49 = vadd.f32 %v3930_v12, %v3910_v45  ;;  %4747 = vrcp.f32 %v3858_v6 }
 0x702   :  { %3962 = vst [vmem:[%s7218_s3 + $0x28] sm:$0xff] %v3946_v49  ;;  %v3860_v53 = vpop.xlane.xlu1 %3859 }
 0x703   :  { %4749 = vrcp.f32 %v3860_v53 }
 0x708   :  { %v4744_v29 = vpop.eup %4743 }
 0x709   :  { %v3915_v13 = vmul.f32 %v4744_v29, %v7079_v48 }
 0x70b   :  { %v3951_v63 = vadd.f32 %v3935_v5, %v3915_v13 }
 0x70c   :  { %v4746_v55 = vpop.eup %4745 }
 0x70d   :  { %v4748_v58 = vpop.eup %4747  ;;  %3967 = vst [vmem:[%s7218_s3 + $0x50] sm:$0xff] %v3951_v63  ;;  %v3916_v26 = vmul.f32 %v4746_v55, %v7083_v4 }
 0x70e   :  { %v3913_v35 = vmul.f32 %v4748_v58, %v7086_v34 }
 0x70f   :  { %v3952_v16 = vadd.f32 %v3936_v51, %v3916_v26 }
 0x710   :  { %v4750_v10 = vpop.eup %4749  ;;  %v3949_v48 = vadd.f32 %v3933_v20, %v3913_v35 }
 0x711   :  { %3968 = vst [vmem:[%s7218_s3 + $0x58] sm:$0xff] %v3952_v16  ;;  %v3914_v24 = vmul.f32 %v4750_v10, %v7091_v50  ;;  %v3937_v50 = vmul.f32 %v7117_v56, %v7007_v27 }
 0x712   :  { %3965 = vst [vmem:[%s7218_s3 + $0x40] sm:$0xff] %v3949_v48 }
 0x713   :  { %v3950_v4 = vadd.f32 %v3934_v54, %v3914_v24 }
 0x715   :  { %3966 = vst [vmem:[%s7218_s3 + $0x48] sm:$0xff] %v3950_v4 }
 0x751   :  { %v3866_v62 = vpop.xlane.xlu0 %3865 }
 0x752   :  { %4751 = vrcp.f32 %v3866_v62 }
 0x755   :  { %v3870_v34 = vpop.xlane.xlu0 %3869 }
 0x756   :  { %4753 = vrcp.f32 %v3870_v34  ;;  %v3868_v46 = vpop.xlane.xlu1 %3867 }
 0x757   :  { %4755 = vrcp.f32 %v3868_v46 }
 0x75a   :  { %v3872_v31 = vpop.xlane.xlu1 %3871 }
 0x75b   :  { %4757 = vrcp.f32 %v3872_v31 }
 0x75f   :  { %v4752_v43 = vpop.eup %4751 }
 0x760   :  { %v3917_v40 = vmul.f32 %v4752_v43, %v7099_v41 }
 0x762   :  { %v3953_v2 = vadd.f32 %v3937_v50, %v3917_v40 }
 0x763   :  { %v4754_v7 = vpop.eup %4753 }
 0x764   :  { %v4756_v57 = vpop.eup %4755  ;;  %3969 = vst [vmem:[%s7218_s3 + $0x60] sm:$0xff] %v3953_v2  ;;  %v3919_v14 = vmul.f32 %v4754_v7, %v7103_v28 }
 0x765   :  { %v3918_v21 = vmul.f32 %v4756_v57, %v7106_v17 }
 0x766   :  { %v3955_v27 = vadd.f32 %v3939_v1, %v3919_v14 }
 0x767   :  { %v3954_v23 = vadd.f32 %v3938_v36, %v3918_v21 }
 0x768   :  { %v4758_v41 = vpop.eup %4757  ;;  %3971 = vst [vmem:[%s7218_s3 + $0x70] sm:$0xff] %v3955_v27 }
 0x769   :  { %3970 = vst [vmem:[%s7218_s3 + $0x68] sm:$0xff] %v3954_v23  ;;  %v3920_v28 = vmul.f32 %v4758_v41, %v7111_v44 }
 0x76b   :  { %v3956_v61 = vadd.f32 %v3940_v33, %v3920_v28 }
 0x76d   :  { %3972 = vst [vmem:[%s7218_s3 + $0x78] sm:$0xff] %v3956_v61 }
 0x76e   :  { %3977 = vsyncpa [#allocation3], 1 }

</bundles_post_ra>
